<compile_context>
chip_gen: v5e
topology: v5e:2x2
jax: 0.10.0
libtpu: 0.0.40
codegen_flags: <defaults>
</compile_context>

<pallas_src>
import functools

import jax
import jax.numpy as jnp
from jax.experimental import pallas as pl
from jax.experimental.pallas import tpu as pltpu

# ----------------- model config (small, consistent with the module) ---------
D_MODEL = 64
NUM_HEADS = 2
DIM_FF = 128
NUM_LAYERS = 2
LN_EPS = 1e-5          # PyTorch nn.LayerNorm default
POS_ENC_AT_INPUT = True
# MemoryAttentionLayer defaults in SAM2:
POS_ENC_AT_ATTN = False
POS_ENC_AT_CROSS_ATTN_QUERIES = False
POS_ENC_AT_CROSS_ATTN_KEYS = True


# ============================ fused Pallas kernel ============================

def _memory_attention_kernel(
    # data (batch-first, flattened to 2-D)
    x_ref, qpos_ref, mem_ref, mpos_ref,
    # self-attention params (stacked over layers)
    wqkv_s_ref, bqkv_s_ref, wo_s_ref, bo_s_ref,
    # cross-attention params
    wq_c_ref, bq_c_ref, wk_c_ref, bk_c_ref, wv_c_ref, bv_c_ref,
    wo_c_ref, bo_c_ref,
    # MLP params
    w1_ref, b1_ref, w2_ref, b2_ref,
    # LayerNorm params
    n1g_ref, n1b_ref, n2g_ref, n2b_ref, n3g_ref, n3b_ref,
    nfg_ref, nfb_ref,
    # output
    out_ref,
    # scratch
    attn_ref,
    *, B, Sq, Sm, num_heads, num_layers):
  """Full MemoryAttention forward (all layers + final norm) in one kernel."""
  f32 = jnp.float32
  D = out_ref.shape[-1]
  H = num_heads
  c = D // H
  scale = 1.0 / float(c) ** 0.5

  def ln(x2, g, b):
    mean = jnp.mean(x2, axis=-1, keepdims=True)
    xc = x2 - mean
    var = jnp.mean(xc * xc, axis=-1, keepdims=True)
    return xc * jax.lax.rsqrt(var + LN_EPS) * g + b

  def mha(q2, k2, v2, Tk, wo, bo):
    """q2: (B*Sq, D); k2/v2: (B*Tk, D). Heads assembled in VMEM scratch."""
    for b in range(B):
      for h in range(H):
        q = q2[b * Sq:(b + 1) * Sq, h * c:(h + 1) * c]
        k = k2[b * Tk:(b + 1) * Tk, h * c:(h + 1) * c]
        v = v2[b * Tk:(b + 1) * Tk, h * c:(h + 1) * c]
        # scores: contract last dims (no materialized k.T)
        s = jax.lax.dot_general(q, k, (((1,), (1,)), ((), ())),
                                preferred_element_type=f32) * scale
        s = s - jnp.max(s, axis=-1, keepdims=True)
        p = jnp.exp(s)
        p = p * pl.reciprocal(jnp.sum(p, axis=-1, keepdims=True), approx=True)
        attn_ref[b * Sq:(b + 1) * Sq, h * c:(h + 1) * c] = jnp.dot(
            p, v, preferred_element_type=f32)
    o2 = attn_ref[...]                               # (B*Sq, D), heads concat
    return jnp.dot(o2, wo, preferred_element_type=f32) + bo

  qpos = qpos_ref[...].astype(f32)
  tgt = x_ref[...].astype(f32)
  if POS_ENC_AT_INPUT:
    tgt = tgt + 0.1 * qpos

  mem = mem_ref[...].astype(f32)
  if POS_ENC_AT_CROSS_ATTN_KEYS:
    mem_k_in = mem + mpos_ref[...].astype(f32)
  else:
    mem_k_in = mem

  # Cross-attn K / V for ALL layers at once (memory is layer-invariant);
  # lane-dense (B*Sm, L*D) outputs.
  k_all = jnp.dot(mem_k_in, wk_c_ref[...], preferred_element_type=f32) + bk_c_ref[...]
  v_all = jnp.dot(mem, wv_c_ref[...], preferred_element_type=f32) + bv_c_ref[...]

  for l in range(num_layers):
    # ------------------ self attention ------------------
    t2 = ln(tgt, n1g_ref[l], n1b_ref[l])
    if POS_ENC_AT_ATTN:
      wqkv = wqkv_s_ref[l]
      bqkv = bqkv_s_ref[l]
      qk_src = t2 + qpos
      q_in = jnp.dot(qk_src, wqkv[:, 0:D], preferred_element_type=f32) + bqkv[:, 0:D]
      k_in = jnp.dot(qk_src, wqkv[:, D:2 * D], preferred_element_type=f32) + bqkv[:, D:2 * D]
      v_in = jnp.dot(t2, wqkv[:, 2 * D:3 * D], preferred_element_type=f32) + bqkv[:, 2 * D:3 * D]
    else:
      # fused lane-dense (M, 3D) QKV projection
      qkv = jnp.dot(t2, wqkv_s_ref[l], preferred_element_type=f32) + bqkv_s_ref[l]
      q_in = qkv[:, 0:D]
      k_in = qkv[:, D:2 * D]
      v_in = qkv[:, 2 * D:3 * D]
    tgt = tgt + mha(q_in, k_in, v_in, Sq, wo_s_ref[l], bo_s_ref[l])

    # ------------------ cross attention (image memory) ------------------
    t2 = ln(tgt, n2g_ref[l], n2b_ref[l])
    q_src = t2 + qpos if POS_ENC_AT_CROSS_ATTN_QUERIES else t2
    q_c = jnp.dot(q_src, wq_c_ref[l], preferred_element_type=f32) + bq_c_ref[l]
    k_c = k_all[:, l * D:(l + 1) * D]
    v_c = v_all[:, l * D:(l + 1) * D]
    tgt = tgt + mha(q_c, k_c, v_c, Sm, wo_c_ref[l], bo_c_ref[l])

    # ------------------ MLP (linear1 -> relu -> linear2) ------------------
    t2 = ln(tgt, n3g_ref[l], n3b_ref[l])
    h1 = jnp.maximum(jnp.dot(t2, w1_ref[l], preferred_element_type=f32) + b1_ref[l], 0.0)
    tgt = tgt + jnp.dot(h1, w2_ref[l], preferred_element_type=f32) + b2_ref[l]

  out_ref[...] = ln(tgt, nfg_ref[...], nfb_ref[...]).astype(out_ref.dtype)


# ============================ parameter packing ==============================

def _pack_params(params):
  """Stack per-layer params so the fused kernel gets a fixed small arg list."""
  layers = params["layers"]

  def stk(fn):
    return jnp.stack([fn(p) for p in layers], axis=0)

  wqkv_s = stk(lambda p: jnp.concatenate(
      [p["self_attn"]["wq"], p["self_attn"]["wk"], p["self_attn"]["wv"]], axis=1))
  bqkv_s = stk(lambda p: jnp.concatenate(
      [p["self_attn"]["bq"], p["self_attn"]["bk"], p["self_attn"]["bv"]])[None, :])
  wo_s = stk(lambda p: p["self_attn"]["wo"])
  bo_s = stk(lambda p: p["self_attn"]["bo"][None, :])

  wq_c = stk(lambda p: p["cross_attn"]["wq"])
  bq_c = stk(lambda p: p["cross_attn"]["bq"][None, :])
  wk_c = jnp.concatenate([p["cross_attn"]["wk"] for p in layers], axis=1)   # (D, L*D)
  bk_c = jnp.concatenate([p["cross_attn"]["bk"] for p in layers])[None, :]  # (1, L*D)
  wv_c = jnp.concatenate([p["cross_attn"]["wv"] for p in layers], axis=1)
  bv_c = jnp.concatenate([p["cross_attn"]["bv"] for p in layers])[None, :]
  wo_c = stk(lambda p: p["cross_attn"]["wo"])
  bo_c = stk(lambda p: p["cross_attn"]["bo"][None, :])

  w1 = stk(lambda p: p["w1"])
  b1 = stk(lambda p: p["b1"][None, :])
  w2 = stk(lambda p: p["w2"])
  b2 = stk(lambda p: p["b2"][None, :])

  n1g = stk(lambda p: p["norm1_g"][None, :])
  n1b = stk(lambda p: p["norm1_b"][None, :])
  n2g = stk(lambda p: p["norm2_g"][None, :])
  n2b = stk(lambda p: p["norm2_b"][None, :])
  n3g = stk(lambda p: p["norm3_g"][None, :])
  n3b = stk(lambda p: p["norm3_b"][None, :])
  nfg = params["norm_g"][None, :]
  nfb = params["norm_b"][None, :]

  return (wqkv_s, bqkv_s, wo_s, bo_s,
          wq_c, bq_c, wk_c, bk_c, wv_c, bv_c, wo_c, bo_c,
          w1, b1, w2, b2,
          n1g, n1b, n2g, n2b, n3g, n3b, nfg, nfb)


# ============================ forward wrapper ================================

@jax.jit
def _forward_jit(curr, memory, curr_pos, memory_pos, params):
  Sq, B, D = curr.shape
  Sm = memory.shape[0]

  # batch_first: (S, B, D) -> (B, S, D) -> (B*S, D)
  x2 = jnp.transpose(curr, (1, 0, 2)).reshape(B * Sq, D)
  qp2 = jnp.transpose(curr_pos, (1, 0, 2)).reshape(B * Sq, D)
  m2 = jnp.transpose(memory, (1, 0, 2)).reshape(B * Sm, D)
  mp2 = jnp.transpose(memory_pos, (1, 0, 2)).reshape(B * Sm, D)

  packed = _pack_params(params)

  out2 = pl.pallas_call(
      functools.partial(
          _memory_attention_kernel,
          B=B, Sq=Sq, Sm=Sm, num_heads=NUM_HEADS, num_layers=NUM_LAYERS),
      out_shape=jax.ShapeDtypeStruct((B * Sq, D), curr.dtype),
      scratch_shapes=[pltpu.VMEM((B * Sq, D), jnp.float32)],
  )(x2, qp2, m2, mp2, *packed)

  # back to (S_q, B, D)
  return out2.reshape(B, Sq, D).transpose(1, 0, 2)


def memory_attention_forward(curr, memory, curr_pos, memory_pos, params,
                             num_obj_ptr_tokens=0):
  """Mirrors MemoryAttention.forward (batch_first=True, pos_enc_at_input)."""
  assert curr.shape[1] == memory.shape[1], "Batch size must be the same"
  del num_obj_ptr_tokens  # inert for the base (non-RoPE) Attention path
  return _forward_jit(curr, memory, curr_pos, memory_pos, params)


# ============================ parameter init =================================

def _dense(key, fan_in, fan_out):
  kw, kb = jax.random.split(key)
  w = jax.random.normal(kw, (fan_in, fan_out), jnp.float32) * 0.05
  b = jax.random.normal(kb, (fan_out,), jnp.float32) * 0.01
  return w, b  # stored as (in, out), i.e. PyTorch nn.Linear weight.T


def _attn_params(key, d_model):
  ks = jax.random.split(key, 4)
  wq, bq = _dense(ks[0], d_model, d_model)
  wk, bk = _dense(ks[1], d_model, d_model)
  wv, bv = _dense(ks[2], d_model, d_model)
  wo, bo = _dense(ks[3], d_model, d_model)
  return dict(wq=wq, bq=bq, wk=wk, bk=bk, wv=wv, bv=bv, wo=wo, bo=bo)


def _layer_params(key, d_model, dff):
  ks = jax.random.split(key, 4)
  w1, b1 = _dense(ks[0], d_model, dff)
  w2, b2 = _dense(ks[1], dff, d_model)
  return dict(
      self_attn=_attn_params(ks[2], d_model),
      cross_attn=_attn_params(ks[3], d_model),
      w1=w1, b1=b1, w2=w2, b2=b2,
      norm1_g=jnp.ones((d_model,), jnp.float32),
      norm1_b=jnp.zeros((d_model,), jnp.float32),
      norm2_g=jnp.ones((d_model,), jnp.float32),
      norm2_b=jnp.zeros((d_model,), jnp.float32),
      norm3_g=jnp.ones((d_model,), jnp.float32),
      norm3_b=jnp.zeros((d_model,), jnp.float32),
  )


def init_params(key):
  ks = jax.random.split(key, NUM_LAYERS)
  return dict(
      layers=[_layer_params(ks[i], D_MODEL, DIM_FF) for i in range(NUM_LAYERS)],
      norm_g=jnp.ones((D_MODEL,), jnp.float32),
      norm_b=jnp.zeros((D_MODEL,), jnp.float32),
  )


# ============================ main ===========================================

if __name__ == "__main__":
  key = jax.random.PRNGKey(0)
  kp, k1, k2, k3, k4 = jax.random.split(key, 5)
  params = init_params(kp)

  S_q, S_m, B = 16, 32, 2
  curr = jax.random.normal(k1, (S_q, B, D_MODEL), jnp.float32)
  curr_pos = jax.random.normal(k2, (S_q, B, D_MODEL), jnp.float32)
  memory = jax.random.normal(k3, (S_m, B, D_MODEL), jnp.float32)
  memory_pos = jax.random.normal(k4, (S_m, B, D_MODEL), jnp.float32)

  out = memory_attention_forward(curr, memory, curr_pos, memory_pos, params)
  jax.block_until_ready(out)
  assert out.shape == (S_q, B, D_MODEL)
  assert bool(jnp.all(jnp.isfinite(out)))
  print("KERNEL_OK")
</pallas_src>

<mosaic_0001>
module attributes {stable_mosaic.version = 11 : i64} {
  func.func @_memory_attention_kernel(%arg0: memref<32x64xf32, #tpu.memory_space<vmem>>, %arg1: memref<32x64xf32, #tpu.memory_space<vmem>>, %arg2: memref<64x64xf32, #tpu.memory_space<vmem>>, %arg3: memref<64x64xf32, #tpu.memory_space<vmem>>, %arg4: memref<2x64x192xf32, #tpu.memory_space<vmem>>, %arg5: memref<2x1x192xf32, #tpu.memory_space<vmem>>, %arg6: memref<2x64x64xf32, #tpu.memory_space<vmem>>, %arg7: memref<2x1x64xf32, #tpu.memory_space<vmem>>, %arg8: memref<2x64x64xf32, #tpu.memory_space<vmem>>, %arg9: memref<2x1x64xf32, #tpu.memory_space<vmem>>, %arg10: memref<64x128xf32, #tpu.memory_space<vmem>>, %arg11: memref<1x128xf32, #tpu.memory_space<vmem>>, %arg12: memref<64x128xf32, #tpu.memory_space<vmem>>, %arg13: memref<1x128xf32, #tpu.memory_space<vmem>>, %arg14: memref<2x64x64xf32, #tpu.memory_space<vmem>>, %arg15: memref<2x1x64xf32, #tpu.memory_space<vmem>>, %arg16: memref<2x64x128xf32, #tpu.memory_space<vmem>>, %arg17: memref<2x1x128xf32, #tpu.memory_space<vmem>>, %arg18: memref<2x128x64xf32, #tpu.memory_space<vmem>>, %arg19: memref<2x1x64xf32, #tpu.memory_space<vmem>>, %arg20: memref<2x1x64xf32, #tpu.memory_space<vmem>>, %arg21: memref<2x1x64xf32, #tpu.memory_space<vmem>>, %arg22: memref<2x1x64xf32, #tpu.memory_space<vmem>>, %arg23: memref<2x1x64xf32, #tpu.memory_space<vmem>>, %arg24: memref<2x1x64xf32, #tpu.memory_space<vmem>>, %arg25: memref<2x1x64xf32, #tpu.memory_space<vmem>>, %arg26: memref<1x64xf32, #tpu.memory_space<vmem>>, %arg27: memref<1x64xf32, #tpu.memory_space<vmem>>, %arg28: memref<32x64xf32, #tpu.memory_space<vmem>>, %arg29: memref<32x64xf32, #tpu.memory_space<vmem>>) attributes {dimension_semantics = [], scalar_prefetch = 0 : i64, scratch_operands = 1 : i64, tpu.core_type = #tpu.core_type<tc>} {
    %c0 = arith.constant 0 : index
    %c0_0 = arith.constant 0 : index
    %0 = vector.load %arg1[%c0, %c0_0] : memref<32x64xf32, #tpu.memory_space<vmem>>, vector<32x64xf32>
    %c0_1 = arith.constant 0 : index
    %c0_2 = arith.constant 0 : index
    %1 = vector.load %arg0[%c0_1, %c0_2] : memref<32x64xf32, #tpu.memory_space<vmem>>, vector<32x64xf32>
    %cst = arith.constant 1.000000e-01 : f32
    %2 = vector.broadcast %cst : f32 to vector<32x64xf32>
    %3 = arith.mulf %2, %0 : vector<32x64xf32>
    %4 = arith.addf %1, %3 : vector<32x64xf32>
    %c0_3 = arith.constant 0 : index
    %c0_4 = arith.constant 0 : index
    %5 = vector.load %arg2[%c0_3, %c0_4] : memref<64x64xf32, #tpu.memory_space<vmem>>, vector<64x64xf32>
    %c0_5 = arith.constant 0 : index
    %c0_6 = arith.constant 0 : index
    %6 = vector.load %arg3[%c0_5, %c0_6] : memref<64x64xf32, #tpu.memory_space<vmem>>, vector<64x64xf32>
    %7 = arith.addf %5, %6 : vector<64x64xf32>
    %c0_7 = arith.constant 0 : index
    %c0_8 = arith.constant 0 : index
    %8 = vector.load %arg10[%c0_7, %c0_8] : memref<64x128xf32, #tpu.memory_space<vmem>>, vector<64x128xf32>
    %cst_9 = arith.constant dense<0.000000e+00> : vector<64x128xf32>
    %9 = tpu.matmul %7, %8, %cst_9 {dimension_numbers = #tpu.dot_dimension_numbers<[1], [0], [0], [1], [0, 0, 1, 1], [], []>} : vector<64x64xf32>, vector<64x128xf32>, vector<64x128xf32> -> vector<64x128xf32>
    %c0_10 = arith.constant 0 : index
    %c0_11 = arith.constant 0 : index
    %10 = vector.load %arg11[%c0_10, %c0_11] : memref<1x128xf32, #tpu.memory_space<vmem>>, vector<1x128xf32>
    %11 = vector.broadcast %10 : vector<1x128xf32> to vector<64x128xf32>
    %12 = arith.addf %9, %11 : vector<64x128xf32>
    %c0_12 = arith.constant 0 : index
    %c0_13 = arith.constant 0 : index
    %13 = vector.load %arg12[%c0_12, %c0_13] : memref<64x128xf32, #tpu.memory_space<vmem>>, vector<64x128xf32>
    %cst_14 = arith.constant dense<0.000000e+00> : vector<64x128xf32>
    %14 = tpu.matmul %5, %13, %cst_14 {dimension_numbers = #tpu.dot_dimension_numbers<[1], [0], [0], [1], [0, 0, 1, 1], [], []>} : vector<64x64xf32>, vector<64x128xf32>, vector<64x128xf32> -> vector<64x128xf32>
    %c0_15 = arith.constant 0 : index
    %c0_16 = arith.constant 0 : index
    %15 = vector.load %arg13[%c0_15, %c0_16] : memref<1x128xf32, #tpu.memory_space<vmem>>, vector<1x128xf32>
    %16 = vector.broadcast %15 : vector<1x128xf32> to vector<64x128xf32>
    %17 = arith.addf %14, %16 : vector<64x128xf32>
    %c0_17 = arith.constant 0 : index
    %c0_18 = arith.constant 0 : index
    %c0_19 = arith.constant 0 : index
    %18 = vector.load %arg20[%c0_17, %c0_18, %c0_19] : memref<2x1x64xf32, #tpu.memory_space<vmem>>, vector<1x1x64xf32>
    %19 = vector.shape_cast %18 : vector<1x1x64xf32> to vector<1x64xf32>
    %c0_20 = arith.constant 0 : index
    %c0_21 = arith.constant 0 : index
    %c0_22 = arith.constant 0 : index
    %20 = vector.load %arg21[%c0_20, %c0_21, %c0_22] : memref<2x1x64xf32, #tpu.memory_space<vmem>>, vector<1x1x64xf32>
    %21 = vector.shape_cast %20 : vector<1x1x64xf32> to vector<1x64xf32>
    %cst_23 = arith.constant dense<0.000000e+00> : vector<32xf32>
    %22 = vector.multi_reduction <add>, %4, %cst_23 [1] : vector<32x64xf32> to vector<32xf32>
    %23 = vector.shape_cast %22 : vector<32xf32> to vector<32x1xf32>
    %cst_24 = arith.constant 6.400000e+01 : f32
    %24 = vector.broadcast %cst_24 : f32 to vector<32x1xf32>
    %25 = arith.divf %23, %24 : vector<32x1xf32>
    %26 = vector.broadcast %25 : vector<32x1xf32> to vector<32x64xf32>
    %27 = arith.subf %4, %26 : vector<32x64xf32>
    %28 = arith.mulf %27, %27 : vector<32x64xf32>
    %cst_25 = arith.constant dense<0.000000e+00> : vector<32xf32>
    %29 = vector.multi_reduction <add>, %28, %cst_25 [1] : vector<32x64xf32> to vector<32xf32>
    %30 = vector.shape_cast %29 : vector<32xf32> to vector<32x1xf32>
    %cst_26 = arith.constant 6.400000e+01 : f32
    %31 = vector.broadcast %cst_26 : f32 to vector<32x1xf32>
    %32 = arith.divf %30, %31 : vector<32x1xf32>
    %cst_27 = arith.constant 9.99999974E-6 : f32
    %33 = vector.broadcast %cst_27 : f32 to vector<32x1xf32>
    %34 = arith.addf %32, %33 : vector<32x1xf32>
    %35 = math.rsqrt %34 : vector<32x1xf32>
    %36 = vector.broadcast %35 : vector<32x1xf32> to vector<32x64xf32>
    %37 = arith.mulf %27, %36 : vector<32x64xf32>
    %38 = vector.broadcast %19 : vector<1x64xf32> to vector<32x64xf32>
    %39 = arith.mulf %37, %38 : vector<32x64xf32>
    %40 = vector.broadcast %21 : vector<1x64xf32> to vector<32x64xf32>
    %41 = arith.addf %39, %40 : vector<32x64xf32>
    %c0_28 = arith.constant 0 : index
    %c0_29 = arith.constant 0 : index
    %c0_30 = arith.constant 0 : index
    %42 = vector.load %arg4[%c0_28, %c0_29, %c0_30] : memref<2x64x192xf32, #tpu.memory_space<vmem>>, vector<1x64x192xf32>
    %43 = vector.shape_cast %42 : vector<1x64x192xf32> to vector<64x192xf32>
    %cst_31 = arith.constant dense<0.000000e+00> : vector<32x192xf32>
    %44 = tpu.matmul %41, %43, %cst_31 {dimension_numbers = #tpu.dot_dimension_numbers<[1], [0], [0], [1], [0, 0, 1, 1], [], []>} : vector<32x64xf32>, vector<64x192xf32>, vector<32x192xf32> -> vector<32x192xf32>
    %c0_32 = arith.constant 0 : index
    %c0_33 = arith.constant 0 : index
    %c0_34 = arith.constant 0 : index
    %45 = vector.load %arg5[%c0_32, %c0_33, %c0_34] : memref<2x1x192xf32, #tpu.memory_space<vmem>>, vector<1x1x192xf32>
    %46 = vector.shape_cast %45 : vector<1x1x192xf32> to vector<1x192xf32>
    %47 = vector.broadcast %46 : vector<1x192xf32> to vector<32x192xf32>
    %48 = arith.addf %44, %47 : vector<32x192xf32>
    %49 = vector.extract_strided_slice %48 {offsets = [0, 0], sizes = [32, 64], strides = [1, 1]} : vector<32x192xf32> to vector<32x64xf32>
    %50 = vector.extract_strided_slice %48 {offsets = [0, 64], sizes = [32, 64], strides = [1, 1]} : vector<32x192xf32> to vector<32x64xf32>
    %51 = vector.extract_strided_slice %48 {offsets = [0, 128], sizes = [32, 64], strides = [1, 1]} : vector<32x192xf32> to vector<32x64xf32>
    %c0_35 = arith.constant 0 : index
    %c0_36 = arith.constant 0 : index
    %c0_37 = arith.constant 0 : index
    %52 = vector.load %arg6[%c0_35, %c0_36, %c0_37] : memref<2x64x64xf32, #tpu.memory_space<vmem>>, vector<1x64x64xf32>
    %53 = vector.shape_cast %52 : vector<1x64x64xf32> to vector<64x64xf32>
    %c0_38 = arith.constant 0 : index
    %c0_39 = arith.constant 0 : index
    %c0_40 = arith.constant 0 : index
    %54 = vector.load %arg7[%c0_38, %c0_39, %c0_40] : memref<2x1x64xf32, #tpu.memory_space<vmem>>, vector<1x1x64xf32>
    %55 = vector.shape_cast %54 : vector<1x1x64xf32> to vector<1x64xf32>
    %56 = vector.extract_strided_slice %49 {offsets = [0, 0], sizes = [16, 32], strides = [1, 1]} : vector<32x64xf32> to vector<16x32xf32>
    %57 = vector.extract_strided_slice %50 {offsets = [0, 0], sizes = [16, 32], strides = [1, 1]} : vector<32x64xf32> to vector<16x32xf32>
    %58 = vector.extract_strided_slice %51 {offsets = [0, 0], sizes = [16, 32], strides = [1, 1]} : vector<32x64xf32> to vector<16x32xf32>
    %cst_41 = arith.constant dense<0.000000e+00> : vector<16x16xf32>
    %59 = tpu.matmul %56, %57, %cst_41 {dimension_numbers = #tpu.dot_dimension_numbers<[1], [1], [0], [0], [0, 0, 1, 0], [], []>} : vector<16x32xf32>, vector<16x32xf32>, vector<16x16xf32> -> vector<16x16xf32>
    %cst_42 = arith.constant 0.176776692 : f32
    %60 = vector.broadcast %cst_42 : f32 to vector<16x16xf32>
    %61 = arith.mulf %59, %60 : vector<16x16xf32>
    %cst_43 = arith.constant dense<0xFF800000> : vector<16xf32>
    %62 = vector.multi_reduction <maximumf>, %61, %cst_43 [1] : vector<16x16xf32> to vector<16xf32>
    %63 = vector.shape_cast %62 : vector<16xf32> to vector<16x1xf32>
    %64 = vector.broadcast %63 : vector<16x1xf32> to vector<16x16xf32>
    %65 = arith.subf %61, %64 : vector<16x16xf32>
    %66 = math.exp %65 : vector<16x16xf32>
    %cst_44 = arith.constant dense<0.000000e+00> : vector<16xf32>
    %67 = vector.multi_reduction <add>, %66, %cst_44 [1] : vector<16x16xf32> to vector<16xf32>
    %68 = vector.shape_cast %67 : vector<16xf32> to vector<16x1xf32>
    %69 = tpu.reciprocal %68 {approx = true} : vector<16x1xf32> -> vector<16x1xf32>
    %70 = vector.broadcast %69 : vector<16x1xf32> to vector<16x16xf32>
    %71 = arith.mulf %66, %70 : vector<16x16xf32>
    %cst_45 = arith.constant dense<0.000000e+00> : vector<16x32xf32>
    %72 = tpu.matmul %71, %58, %cst_45 {dimension_numbers = #tpu.dot_dimension_numbers<[1], [0], [0], [1], [0, 0, 1, 1], [], []>} : vector<16x16xf32>, vector<16x32xf32>, vector<16x32xf32> -> vector<16x32xf32>
    %c0_46 = arith.constant 0 : index
    %c0_47 = arith.constant 0 : index
    %73 = vector.load %arg29[%c0_46, %c0_47] : memref<32x64xf32, #tpu.memory_space<vmem>>, vector<16x32xf32>
    tpu.vector_store %arg29[%c0_46, %c0_47], %72 {strides = array<i32>} : memref<32x64xf32, #tpu.memory_space<vmem>>, vector<16x32xf32>,
    %74 = vector.extract_strided_slice %49 {offsets = [0, 32], sizes = [16, 32], strides = [1, 1]} : vector<32x64xf32> to vector<16x32xf32>
    %75 = vector.extract_strided_slice %50 {offsets = [0, 32], sizes = [16, 32], strides = [1, 1]} : vector<32x64xf32> to vector<16x32xf32>
    %76 = vector.extract_strided_slice %51 {offsets = [0, 32], sizes = [16, 32], strides = [1, 1]} : vector<32x64xf32> to vector<16x32xf32>
    %cst_48 = arith.constant dense<0.000000e+00> : vector<16x16xf32>
    %77 = tpu.matmul %74, %75, %cst_48 {dimension_numbers = #tpu.dot_dimension_numbers<[1], [1], [0], [0], [0, 0, 1, 0], [], []>} : vector<16x32xf32>, vector<16x32xf32>, vector<16x16xf32> -> vector<16x16xf32>
    %cst_49 = arith.constant 0.176776692 : f32
    %78 = vector.broadcast %cst_49 : f32 to vector<16x16xf32>
    %79 = arith.mulf %77, %78 : vector<16x16xf32>
    %cst_50 = arith.constant dense<0xFF800000> : vector<16xf32>
    %80 = vector.multi_reduction <maximumf>, %79, %cst_50 [1] : vector<16x16xf32> to vector<16xf32>
    %81 = vector.shape_cast %80 : vector<16xf32> to vector<16x1xf32>
    %82 = vector.broadcast %81 : vector<16x1xf32> to vector<16x16xf32>
    %83 = arith.subf %79, %82 : vector<16x16xf32>
    %84 = math.exp %83 : vector<16x16xf32>
    %cst_51 = arith.constant dense<0.000000e+00> : vector<16xf32>
    %85 = vector.multi_reduction <add>, %84, %cst_51 [1] : vector<16x16xf32> to vector<16xf32>
    %86 = vector.shape_cast %85 : vector<16xf32> to vector<16x1xf32>
    %87 = tpu.reciprocal %86 {approx = true} : vector<16x1xf32> -> vector<16x1xf32>
    %88 = vector.broadcast %87 : vector<16x1xf32> to vector<16x16xf32>
    %89 = arith.mulf %84, %88 : vector<16x16xf32>
    %cst_52 = arith.constant dense<0.000000e+00> : vector<16x32xf32>
    %90 = tpu.matmul %89, %76, %cst_52 {dimension_numbers = #tpu.dot_dimension_numbers<[1], [0], [0], [1], [0, 0, 1, 1], [], []>} : vector<16x16xf32>, vector<16x32xf32>, vector<16x32xf32> -> vector<16x32xf32>
    %c0_53 = arith.constant 0 : index
    %c32 = arith.constant 32 : index
    %91 = vector.load %arg29[%c0_53, %c32] : memref<32x64xf32, #tpu.memory_space<vmem>>, vector<16x32xf32>
    tpu.vector_store %arg29[%c0_53, %c32], %90 {strides = array<i32>} : memref<32x64xf32, #tpu.memory_space<vmem>>, vector<16x32xf32>,
    %92 = vector.extract_strided_slice %49 {offsets = [16, 0], sizes = [16, 32], strides = [1, 1]} : vector<32x64xf32> to vector<16x32xf32>
    %93 = vector.extract_strided_slice %50 {offsets = [16, 0], sizes = [16, 32], strides = [1, 1]} : vector<32x64xf32> to vector<16x32xf32>
    %94 = vector.extract_strided_slice %51 {offsets = [16, 0], sizes = [16, 32], strides = [1, 1]} : vector<32x64xf32> to vector<16x32xf32>
    %cst_54 = arith.constant dense<0.000000e+00> : vector<16x16xf32>
    %95 = tpu.matmul %92, %93, %cst_54 {dimension_numbers = #tpu.dot_dimension_numbers<[1], [1], [0], [0], [0, 0, 1, 0], [], []>} : vector<16x32xf32>, vector<16x32xf32>, vector<16x16xf32> -> vector<16x16xf32>
    %cst_55 = arith.constant 0.176776692 : f32
    %96 = vector.broadcast %cst_55 : f32 to vector<16x16xf32>
    %97 = arith.mulf %95, %96 : vector<16x16xf32>
    %cst_56 = arith.constant dense<0xFF800000> : vector<16xf32>
    %98 = vector.multi_reduction <maximumf>, %97, %cst_56 [1] : vector<16x16xf32> to vector<16xf32>
    %99 = vector.shape_cast %98 : vector<16xf32> to vector<16x1xf32>
    %100 = vector.broadcast %99 : vector<16x1xf32> to vector<16x16xf32>
    %101 = arith.subf %97, %100 : vector<16x16xf32>
    %102 = math.exp %101 : vector<16x16xf32>
    %cst_57 = arith.constant dense<0.000000e+00> : vector<16xf32>
    %103 = vector.multi_reduction <add>, %102, %cst_57 [1] : vector<16x16xf32> to vector<16xf32>
    %104 = vector.shape_cast %103 : vector<16xf32> to vector<16x1xf32>
    %105 = tpu.reciprocal %104 {approx = true} : vector<16x1xf32> -> vector<16x1xf32>
    %106 = vector.broadcast %105 : vector<16x1xf32> to vector<16x16xf32>
    %107 = arith.mulf %102, %106 : vector<16x16xf32>
    %cst_58 = arith.constant dense<0.000000e+00> : vector<16x32xf32>
    %108 = tpu.matmul %107, %94, %cst_58 {dimension_numbers = #tpu.dot_dimension_numbers<[1], [0], [0], [1], [0, 0, 1, 1], [], []>} : vector<16x16xf32>, vector<16x32xf32>, vector<16x32xf32> -> vector<16x32xf32>
    %c16 = arith.constant 16 : index
    %c0_59 = arith.constant 0 : index
    %109 = vector.load %arg29[%c16, %c0_59] : memref<32x64xf32, #tpu.memory_space<vmem>>, vector<16x32xf32>
    tpu.vector_store %arg29[%c16, %c0_59], %108 {strides = array<i32>} : memref<32x64xf32, #tpu.memory_space<vmem>>, vector<16x32xf32>,
    %110 = vector.extract_strided_slice %49 {offsets = [16, 32], sizes = [16, 32], strides = [1, 1]} : vector<32x64xf32> to vector<16x32xf32>
    %111 = vector.extract_strided_slice %50 {offsets = [16, 32], sizes = [16, 32], strides = [1, 1]} : vector<32x64xf32> to vector<16x32xf32>
    %112 = vector.extract_strided_slice %51 {offsets = [16, 32], sizes = [16, 32], strides = [1, 1]} : vector<32x64xf32> to vector<16x32xf32>
    %cst_60 = arith.constant dense<0.000000e+00> : vector<16x16xf32>
    %113 = tpu.matmul %110, %111, %cst_60 {dimension_numbers = #tpu.dot_dimension_numbers<[1], [1], [0], [0], [0, 0, 1, 0], [], []>} : vector<16x32xf32>, vector<16x32xf32>, vector<16x16xf32> -> vector<16x16xf32>
    %cst_61 = arith.constant 0.176776692 : f32
    %114 = vector.broadcast %cst_61 : f32 to vector<16x16xf32>
    %115 = arith.mulf %113, %114 : vector<16x16xf32>
    %cst_62 = arith.constant dense<0xFF800000> : vector<16xf32>
    %116 = vector.multi_reduction <maximumf>, %115, %cst_62 [1] : vector<16x16xf32> to vector<16xf32>
    %117 = vector.shape_cast %116 : vector<16xf32> to vector<16x1xf32>
    %118 = vector.broadcast %117 : vector<16x1xf32> to vector<16x16xf32>
    %119 = arith.subf %115, %118 : vector<16x16xf32>
    %120 = math.exp %119 : vector<16x16xf32>
    %cst_63 = arith.constant dense<0.000000e+00> : vector<16xf32>
    %121 = vector.multi_reduction <add>, %120, %cst_63 [1] : vector<16x16xf32> to vector<16xf32>
    %122 = vector.shape_cast %121 : vector<16xf32> to vector<16x1xf32>
    %123 = tpu.reciprocal %122 {approx = true} : vector<16x1xf32> -> vector<16x1xf32>
    %124 = vector.broadcast %123 : vector<16x1xf32> to vector<16x16xf32>
    %125 = arith.mulf %120, %124 : vector<16x16xf32>
    %cst_64 = arith.constant dense<0.000000e+00> : vector<16x32xf32>
    %126 = tpu.matmul %125, %112, %cst_64 {dimension_numbers = #tpu.dot_dimension_numbers<[1], [0], [0], [1], [0, 0, 1, 1], [], []>} : vector<16x16xf32>, vector<16x32xf32>, vector<16x32xf32> -> vector<16x32xf32>
    %c16_65 = arith.constant 16 : index
    %c32_66 = arith.constant 32 : index
    %127 = vector.load %arg29[%c16_65, %c32_66] : memref<32x64xf32, #tpu.memory_space<vmem>>, vector<16x32xf32>
    tpu.vector_store %arg29[%c16_65, %c32_66], %126 {strides = array<i32>} : memref<32x64xf32, #tpu.memory_space<vmem>>, vector<16x32xf32>,
    %c0_67 = arith.constant 0 : index
    %c0_68 = arith.constant 0 : index
    %128 = vector.load %arg29[%c0_67, %c0_68] : memref<32x64xf32, #tpu.memory_space<vmem>>, vector<32x64xf32>
    %cst_69 = arith.constant dense<0.000000e+00> : vector<32x64xf32>
    %129 = tpu.matmul %128, %53, %cst_69 {dimension_numbers = #tpu.dot_dimension_numbers<[1], [0], [0], [1], [0, 0, 1, 1], [], []>} : vector<32x64xf32>, vector<64x64xf32>, vector<32x64xf32> -> vector<32x64xf32>
    %130 = vector.broadcast %55 : vector<1x64xf32> to vector<32x64xf32>
    %131 = arith.addf %129, %130 : vector<32x64xf32>
    %132 = arith.addf %4, %131 : vector<32x64xf32>
    %c0_70 = arith.constant 0 : index
    %c0_71 = arith.constant 0 : index
    %c0_72 = arith.constant 0 : index
    %133 = vector.load %arg22[%c0_70, %c0_71, %c0_72] : memref<2x1x64xf32, #tpu.memory_space<vmem>>, vector<1x1x64xf32>
    %134 = vector.shape_cast %133 : vector<1x1x64xf32> to vector<1x64xf32>
    %c0_73 = arith.constant 0 : index
    %c0_74 = arith.constant 0 : index
    %c0_75 = arith.constant 0 : index
    %135 = vector.load %arg23[%c0_73, %c0_74, %c0_75] : memref<2x1x64xf32, #tpu.memory_space<vmem>>, vector<1x1x64xf32>
    %136 = vector.shape_cast %135 : vector<1x1x64xf32> to vector<1x64xf32>
    %cst_76 = arith.constant dense<0.000000e+00> : vector<32xf32>
    %137 = vector.multi_reduction <add>, %132, %cst_76 [1] : vector<32x64xf32> to vector<32xf32>
    %138 = vector.shape_cast %137 : vector<32xf32> to vector<32x1xf32>
    %cst_77 = arith.constant 6.400000e+01 : f32
    %139 = vector.broadcast %cst_77 : f32 to vector<32x1xf32>
    %140 = arith.divf %138, %139 : vector<32x1xf32>
    %141 = vector.broadcast %140 : vector<32x1xf32> to vector<32x64xf32>
    %142 = arith.subf %132, %141 : vector<32x64xf32>
    %143 = arith.mulf %142, %142 : vector<32x64xf32>
    %cst_78 = arith.constant dense<0.000000e+00> : vector<32xf32>
    %144 = vector.multi_reduction <add>, %143, %cst_78 [1] : vector<32x64xf32> to vector<32xf32>
    %145 = vector.shape_cast %144 : vector<32xf32> to vector<32x1xf32>
    %cst_79 = arith.constant 6.400000e+01 : f32
    %146 = vector.broadcast %cst_79 : f32 to vector<32x1xf32>
    %147 = arith.divf %145, %146 : vector<32x1xf32>
    %cst_80 = arith.constant 9.99999974E-6 : f32
    %148 = vector.broadcast %cst_80 : f32 to vector<32x1xf32>
    %149 = arith.addf %147, %148 : vector<32x1xf32>
    %150 = math.rsqrt %149 : vector<32x1xf32>
    %151 = vector.broadcast %150 : vector<32x1xf32> to vector<32x64xf32>
    %152 = arith.mulf %142, %151 : vector<32x64xf32>
    %153 = vector.broadcast %134 : vector<1x64xf32> to vector<32x64xf32>
    %154 = arith.mulf %152, %153 : vector<32x64xf32>
    %155 = vector.broadcast %136 : vector<1x64xf32> to vector<32x64xf32>
    %156 = arith.addf %154, %155 : vector<32x64xf32>
    %c0_81 = arith.constant 0 : index
    %c0_82 = arith.constant 0 : index
    %c0_83 = arith.constant 0 : index
    %157 = vector.load %arg8[%c0_81, %c0_82, %c0_83] : memref<2x64x64xf32, #tpu.memory_space<vmem>>, vector<1x64x64xf32>
    %158 = vector.shape_cast %157 : vector<1x64x64xf32> to vector<64x64xf32>
    %cst_84 = arith.constant dense<0.000000e+00> : vector<32x64xf32>
    %159 = tpu.matmul %156, %158, %cst_84 {dimension_numbers = #tpu.dot_dimension_numbers<[1], [0], [0], [1], [0, 0, 1, 1], [], []>} : vector<32x64xf32>, vector<64x64xf32>, vector<32x64xf32> -> vector<32x64xf32>
    %c0_85 = arith.constant 0 : index
    %c0_86 = arith.constant 0 : index
    %c0_87 = arith.constant 0 : index
    %160 = vector.load %arg9[%c0_85, %c0_86, %c0_87] : memref<2x1x64xf32, #tpu.memory_space<vmem>>, vector<1x1x64xf32>
    %161 = vector.shape_cast %160 : vector<1x1x64xf32> to vector<1x64xf32>
    %162 = vector.broadcast %161 : vector<1x64xf32> to vector<32x64xf32>
    %163 = arith.addf %159, %162 : vector<32x64xf32>
    %164 = vector.extract_strided_slice %12 {offsets = [0, 0], sizes = [64, 64], strides = [1, 1]} : vector<64x128xf32> to vector<64x64xf32>
    %165 = vector.extract_strided_slice %17 {offsets = [0, 0], sizes = [64, 64], strides = [1, 1]} : vector<64x128xf32> to vector<64x64xf32>
    %c0_88 = arith.constant 0 : index
    %c0_89 = arith.constant 0 : index
    %c0_90 = arith.constant 0 : index
    %166 = vector.load %arg14[%c0_88, %c0_89, %c0_90] : memref<2x64x64xf32, #tpu.memory_space<vmem>>, vector<1x64x64xf32>
    %167 = vector.shape_cast %166 : vector<1x64x64xf32> to vector<64x64xf32>
    %c0_91 = arith.constant 0 : index
    %c0_92 = arith.constant 0 : index
    %c0_93 = arith.constant 0 : index
    %168 = vector.load %arg15[%c0_91, %c0_92, %c0_93] : memref<2x1x64xf32, #tpu.memory_space<vmem>>, vector<1x1x64xf32>
    %169 = vector.shape_cast %168 : vector<1x1x64xf32> to vector<1x64xf32>
    %170 = vector.extract_strided_slice %163 {offsets = [0, 0], sizes = [16, 32], strides = [1, 1]} : vector<32x64xf32> to vector<16x32xf32>
    %171 = vector.extract_strided_slice %164 {offsets = [0, 0], sizes = [32, 32], strides = [1, 1]} : vector<64x64xf32> to vector<32x32xf32>
    %172 = vector.extract_strided_slice %165 {offsets = [0, 0], sizes = [32, 32], strides = [1, 1]} : vector<64x64xf32> to vector<32x32xf32>
    %cst_94 = arith.constant dense<0.000000e+00> : vector<16x32xf32>
    %173 = tpu.matmul %170, %171, %cst_94 {dimension_numbers = #tpu.dot_dimension_numbers<[1], [1], [0], [0], [0, 0, 1, 0], [], []>} : vector<16x32xf32>, vector<32x32xf32>, vector<16x32xf32> -> vector<16x32xf32>
    %cst_95 = arith.constant 0.176776692 : f32
    %174 = vector.broadcast %cst_95 : f32 to vector<16x32xf32>
    %175 = arith.mulf %173, %174 : vector<16x32xf32>
    %cst_96 = arith.constant dense<0xFF800000> : vector<16xf32>
    %176 = vector.multi_reduction <maximumf>, %175, %cst_96 [1] : vector<16x32xf32> to vector<16xf32>
    %177 = vector.shape_cast %176 : vector<16xf32> to vector<16x1xf32>
    %178 = vector.broadcast %177 : vector<16x1xf32> to vector<16x32xf32>
    %179 = arith.subf %175, %178 : vector<16x32xf32>
    %180 = math.exp %179 : vector<16x32xf32>
    %cst_97 = arith.constant dense<0.000000e+00> : vector<16xf32>
    %181 = vector.multi_reduction <add>, %180, %cst_97 [1] : vector<16x32xf32> to vector<16xf32>
    %182 = vector.shape_cast %181 : vector<16xf32> to vector<16x1xf32>
    %183 = tpu.reciprocal %182 {approx = true} : vector<16x1xf32> -> vector<16x1xf32>
    %184 = vector.broadcast %183 : vector<16x1xf32> to vector<16x32xf32>
    %185 = arith.mulf %180, %184 : vector<16x32xf32>
    %cst_98 = arith.constant dense<0.000000e+00> : vector<16x32xf32>
    %186 = tpu.matmul %185, %172, %cst_98 {dimension_numbers = #tpu.dot_dimension_numbers<[1], [0], [0], [1], [0, 0, 1, 1], [], []>} : vector<16x32xf32>, vector<32x32xf32>, vector<16x32xf32> -> vector<16x32xf32>
    %c0_99 = arith.constant 0 : index
    %c0_100 = arith.constant 0 : index
    %187 = vector.load %arg29[%c0_99, %c0_100] : memref<32x64xf32, #tpu.memory_space<vmem>>, vector<16x32xf32>
    tpu.vector_store %arg29[%c0_99, %c0_100], %186 {strides = array<i32>} : memref<32x64xf32, #tpu.memory_space<vmem>>, vector<16x32xf32>,
    %188 = vector.extract_strided_slice %163 {offsets = [0, 32], sizes = [16, 32], strides = [1, 1]} : vector<32x64xf32> to vector<16x32xf32>
    %189 = vector.extract_strided_slice %164 {offsets = [0, 32], sizes = [32, 32], strides = [1, 1]} : vector<64x64xf32> to vector<32x32xf32>
    %190 = vector.extract_strided_slice %165 {offsets = [0, 32], sizes = [32, 32], strides = [1, 1]} : vector<64x64xf32> to vector<32x32xf32>
    %cst_101 = arith.constant dense<0.000000e+00> : vector<16x32xf32>
    %191 = tpu.matmul %188, %189, %cst_101 {dimension_numbers = #tpu.dot_dimension_numbers<[1], [1], [0], [0], [0, 0, 1, 0], [], []>} : vector<16x32xf32>, vector<32x32xf32>, vector<16x32xf32> -> vector<16x32xf32>
    %cst_102 = arith.constant 0.176776692 : f32
    %192 = vector.broadcast %cst_102 : f32 to vector<16x32xf32>
    %193 = arith.mulf %191, %192 : vector<16x32xf32>
    %cst_103 = arith.constant dense<0xFF800000> : vector<16xf32>
    %194 = vector.multi_reduction <maximumf>, %193, %cst_103 [1] : vector<16x32xf32> to vector<16xf32>
    %195 = vector.shape_cast %194 : vector<16xf32> to vector<16x1xf32>
    %196 = vector.broadcast %195 : vector<16x1xf32> to vector<16x32xf32>
    %197 = arith.subf %193, %196 : vector<16x32xf32>
    %198 = math.exp %197 : vector<16x32xf32>
    %cst_104 = arith.constant dense<0.000000e+00> : vector<16xf32>
    %199 = vector.multi_reduction <add>, %198, %cst_104 [1] : vector<16x32xf32> to vector<16xf32>
    %200 = vector.shape_cast %199 : vector<16xf32> to vector<16x1xf32>
    %201 = tpu.reciprocal %200 {approx = true} : vector<16x1xf32> -> vector<16x1xf32>
    %202 = vector.broadcast %201 : vector<16x1xf32> to vector<16x32xf32>
    %203 = arith.mulf %198, %202 : vector<16x32xf32>
    %cst_105 = arith.constant dense<0.000000e+00> : vector<16x32xf32>
    %204 = tpu.matmul %203, %190, %cst_105 {dimension_numbers = #tpu.dot_dimension_numbers<[1], [0], [0], [1], [0, 0, 1, 1], [], []>} : vector<16x32xf32>, vector<32x32xf32>, vector<16x32xf32> -> vector<16x32xf32>
    %c0_106 = arith.constant 0 : index
    %c32_107 = arith.constant 32 : index
    %205 = vector.load %arg29[%c0_106, %c32_107] : memref<32x64xf32, #tpu.memory_space<vmem>>, vector<16x32xf32>
    tpu.vector_store %arg29[%c0_106, %c32_107], %204 {strides = array<i32>} : memref<32x64xf32, #tpu.memory_space<vmem>>, vector<16x32xf32>,
    %206 = vector.extract_strided_slice %163 {offsets = [16, 0], sizes = [16, 32], strides = [1, 1]} : vector<32x64xf32> to vector<16x32xf32>
    %207 = vector.extract_strided_slice %164 {offsets = [32, 0], sizes = [32, 32], strides = [1, 1]} : vector<64x64xf32> to vector<32x32xf32>
    %208 = vector.extract_strided_slice %165 {offsets = [32, 0], sizes = [32, 32], strides = [1, 1]} : vector<64x64xf32> to vector<32x32xf32>
    %cst_108 = arith.constant dense<0.000000e+00> : vector<16x32xf32>
    %209 = tpu.matmul %206, %207, %cst_108 {dimension_numbers = #tpu.dot_dimension_numbers<[1], [1], [0], [0], [0, 0, 1, 0], [], []>} : vector<16x32xf32>, vector<32x32xf32>, vector<16x32xf32> -> vector<16x32xf32>
    %cst_109 = arith.constant 0.176776692 : f32
    %210 = vector.broadcast %cst_109 : f32 to vector<16x32xf32>
    %211 = arith.mulf %209, %210 : vector<16x32xf32>
    %cst_110 = arith.constant dense<0xFF800000> : vector<16xf32>
    %212 = vector.multi_reduction <maximumf>, %211, %cst_110 [1] : vector<16x32xf32> to vector<16xf32>
    %213 = vector.shape_cast %212 : vector<16xf32> to vector<16x1xf32>
    %214 = vector.broadcast %213 : vector<16x1xf32> to vector<16x32xf32>
    %215 = arith.subf %211, %214 : vector<16x32xf32>
    %216 = math.exp %215 : vector<16x32xf32>
    %cst_111 = arith.constant dense<0.000000e+00> : vector<16xf32>
    %217 = vector.multi_reduction <add>, %216, %cst_111 [1] : vector<16x32xf32> to vector<16xf32>
    %218 = vector.shape_cast %217 : vector<16xf32> to vector<16x1xf32>
    %219 = tpu.reciprocal %218 {approx = true} : vector<16x1xf32> -> vector<16x1xf32>
    %220 = vector.broadcast %219 : vector<16x1xf32> to vector<16x32xf32>
    %221 = arith.mulf %216, %220 : vector<16x32xf32>
    %cst_112 = arith.constant dense<0.000000e+00> : vector<16x32xf32>
    %222 = tpu.matmul %221, %208, %cst_112 {dimension_numbers = #tpu.dot_dimension_numbers<[1], [0], [0], [1], [0, 0, 1, 1], [], []>} : vector<16x32xf32>, vector<32x32xf32>, vector<16x32xf32> -> vector<16x32xf32>
    %c16_113 = arith.constant 16 : index
    %c0_114 = arith.constant 0 : index
    %223 = vector.load %arg29[%c16_113, %c0_114] : memref<32x64xf32, #tpu.memory_space<vmem>>, vector<16x32xf32>
    tpu.vector_store %arg29[%c16_113, %c0_114], %222 {strides = array<i32>} : memref<32x64xf32, #tpu.memory_space<vmem>>, vector<16x32xf32>,
    %224 = vector.extract_strided_slice %163 {offsets = [16, 32], sizes = [16, 32], strides = [1, 1]} : vector<32x64xf32> to vector<16x32xf32>
    %225 = vector.extract_strided_slice %164 {offsets = [32, 32], sizes = [32, 32], strides = [1, 1]} : vector<64x64xf32> to vector<32x32xf32>
    %226 = vector.extract_strided_slice %165 {offsets = [32, 32], sizes = [32, 32], strides = [1, 1]} : vector<64x64xf32> to vector<32x32xf32>
    %cst_115 = arith.constant dense<0.000000e+00> : vector<16x32xf32>
    %227 = tpu.matmul %224, %225, %cst_115 {dimension_numbers = #tpu.dot_dimension_numbers<[1], [1], [0], [0], [0, 0, 1, 0], [], []>} : vector<16x32xf32>, vector<32x32xf32>, vector<16x32xf32> -> vector<16x32xf32>
    %cst_116 = arith.constant 0.176776692 : f32
    %228 = vector.broadcast %cst_116 : f32 to vector<16x32xf32>
    %229 = arith.mulf %227, %228 : vector<16x32xf32>
    %cst_117 = arith.constant dense<0xFF800000> : vector<16xf32>
    %230 = vector.multi_reduction <maximumf>, %229, %cst_117 [1] : vector<16x32xf32> to vector<16xf32>
    %231 = vector.shape_cast %230 : vector<16xf32> to vector<16x1xf32>
    %232 = vector.broadcast %231 : vector<16x1xf32> to vector<16x32xf32>
    %233 = arith.subf %229, %232 : vector<16x32xf32>
    %234 = math.exp %233 : vector<16x32xf32>
    %cst_118 = arith.constant dense<0.000000e+00> : vector<16xf32>
    %235 = vector.multi_reduction <add>, %234, %cst_118 [1] : vector<16x32xf32> to vector<16xf32>
    %236 = vector.shape_cast %235 : vector<16xf32> to vector<16x1xf32>
    %237 = tpu.reciprocal %236 {approx = true} : vector<16x1xf32> -> vector<16x1xf32>
    %238 = vector.broadcast %237 : vector<16x1xf32> to vector<16x32xf32>
    %239 = arith.mulf %234, %238 : vector<16x32xf32>
    %cst_119 = arith.constant dense<0.000000e+00> : vector<16x32xf32>
    %240 = tpu.matmul %239, %226, %cst_119 {dimension_numbers = #tpu.dot_dimension_numbers<[1], [0], [0], [1], [0, 0, 1, 1], [], []>} : vector<16x32xf32>, vector<32x32xf32>, vector<16x32xf32> -> vector<16x32xf32>
    %c16_120 = arith.constant 16 : index
    %c32_121 = arith.constant 32 : index
    %241 = vector.load %arg29[%c16_120, %c32_121] : memref<32x64xf32, #tpu.memory_space<vmem>>, vector<16x32xf32>
    tpu.vector_store %arg29[%c16_120, %c32_121], %240 {strides = array<i32>} : memref<32x64xf32, #tpu.memory_space<vmem>>, vector<16x32xf32>,
    %c0_122 = arith.constant 0 : index
    %c0_123 = arith.constant 0 : index
    %242 = vector.load %arg29[%c0_122, %c0_123] : memref<32x64xf32, #tpu.memory_space<vmem>>, vector<32x64xf32>
    %cst_124 = arith.constant dense<0.000000e+00> : vector<32x64xf32>
    %243 = tpu.matmul %242, %167, %cst_124 {dimension_numbers = #tpu.dot_dimension_numbers<[1], [0], [0], [1], [0, 0, 1, 1], [], []>} : vector<32x64xf32>, vector<64x64xf32>, vector<32x64xf32> -> vector<32x64xf32>
    %244 = vector.broadcast %169 : vector<1x64xf32> to vector<32x64xf32>
    %245 = arith.addf %243, %244 : vector<32x64xf32>
    %246 = arith.addf %132, %245 : vector<32x64xf32>
    %c0_125 = arith.constant 0 : index
    %c0_126 = arith.constant 0 : index
    %c0_127 = arith.constant 0 : index
    %247 = vector.load %arg24[%c0_125, %c0_126, %c0_127] : memref<2x1x64xf32, #tpu.memory_space<vmem>>, vector<1x1x64xf32>
    %248 = vector.shape_cast %247 : vector<1x1x64xf32> to vector<1x64xf32>
    %c0_128 = arith.constant 0 : index
    %c0_129 = arith.constant 0 : index
    %c0_130 = arith.constant 0 : index
    %249 = vector.load %arg25[%c0_128, %c0_129, %c0_130] : memref<2x1x64xf32, #tpu.memory_space<vmem>>, vector<1x1x64xf32>
    %250 = vector.shape_cast %249 : vector<1x1x64xf32> to vector<1x64xf32>
    %cst_131 = arith.constant dense<0.000000e+00> : vector<32xf32>
    %251 = vector.multi_reduction <add>, %246, %cst_131 [1] : vector<32x64xf32> to vector<32xf32>
    %252 = vector.shape_cast %251 : vector<32xf32> to vector<32x1xf32>
    %cst_132 = arith.constant 6.400000e+01 : f32
    %253 = vector.broadcast %cst_132 : f32 to vector<32x1xf32>
    %254 = arith.divf %252, %253 : vector<32x1xf32>
    %255 = vector.broadcast %254 : vector<32x1xf32> to vector<32x64xf32>
    %256 = arith.subf %246, %255 : vector<32x64xf32>
    %257 = arith.mulf %256, %256 : vector<32x64xf32>
    %cst_133 = arith.constant dense<0.000000e+00> : vector<32xf32>
    %258 = vector.multi_reduction <add>, %257, %cst_133 [1] : vector<32x64xf32> to vector<32xf32>
    %259 = vector.shape_cast %258 : vector<32xf32> to vector<32x1xf32>
    %cst_134 = arith.constant 6.400000e+01 : f32
    %260 = vector.broadcast %cst_134 : f32 to vector<32x1xf32>
    %261 = arith.divf %259, %260 : vector<32x1xf32>
    %cst_135 = arith.constant 9.99999974E-6 : f32
    %262 = vector.broadcast %cst_135 : f32 to vector<32x1xf32>
    %263 = arith.addf %261, %262 : vector<32x1xf32>
    %264 = math.rsqrt %263 : vector<32x1xf32>
    %265 = vector.broadcast %264 : vector<32x1xf32> to vector<32x64xf32>
    %266 = arith.mulf %256, %265 : vector<32x64xf32>
    %267 = vector.broadcast %248 : vector<1x64xf32> to vector<32x64xf32>
    %268 = arith.mulf %266, %267 : vector<32x64xf32>
    %269 = vector.broadcast %250 : vector<1x64xf32> to vector<32x64xf32>
    %270 = arith.addf %268, %269 : vector<32x64xf32>
    %c0_136 = arith.constant 0 : index
    %c0_137 = arith.constant 0 : index
    %c0_138 = arith.constant 0 : index
    %271 = vector.load %arg16[%c0_136, %c0_137, %c0_138] : memref<2x64x128xf32, #tpu.memory_space<vmem>>, vector<1x64x128xf32>
    %272 = vector.shape_cast %271 : vector<1x64x128xf32> to vector<64x128xf32>
    %cst_139 = arith.constant dense<0.000000e+00> : vector<32x128xf32>
    %273 = tpu.matmul %270, %272, %cst_139 {dimension_numbers = #tpu.dot_dimension_numbers<[1], [0], [0], [1], [0, 0, 1, 1], [], []>} : vector<32x64xf32>, vector<64x128xf32>, vector<32x128xf32> -> vector<32x128xf32>
    %c0_140 = arith.constant 0 : index
    %c0_141 = arith.constant 0 : index
    %c0_142 = arith.constant 0 : index
    %274 = vector.load %arg17[%c0_140, %c0_141, %c0_142] : memref<2x1x128xf32, #tpu.memory_space<vmem>>, vector<1x1x128xf32>
    %275 = vector.shape_cast %274 : vector<1x1x128xf32> to vector<1x128xf32>
    %276 = vector.broadcast %275 : vector<1x128xf32> to vector<32x128xf32>
    %277 = arith.addf %273, %276 : vector<32x128xf32>
    %cst_143 = arith.constant 0.000000e+00 : f32
    %278 = vector.broadcast %cst_143 : f32 to vector<32x128xf32>
    %279 = arith.maximumf %277, %278 : vector<32x128xf32>
    %c0_144 = arith.constant 0 : index
    %c0_145 = arith.constant 0 : index
    %c0_146 = arith.constant 0 : index
    %280 = vector.load %arg18[%c0_144, %c0_145, %c0_146] : memref<2x128x64xf32, #tpu.memory_space<vmem>>, vector<1x128x64xf32>
    %281 = vector.shape_cast %280 : vector<1x128x64xf32> to vector<128x64xf32>
    %cst_147 = arith.constant dense<0.000000e+00> : vector<32x64xf32>
    %282 = tpu.matmul %279, %281, %cst_147 {dimension_numbers = #tpu.dot_dimension_numbers<[1], [0], [0], [1], [0, 0, 1, 1], [], []>} : vector<32x128xf32>, vector<128x64xf32>, vector<32x64xf32> -> vector<32x64xf32>
    %283 = arith.addf %246, %282 : vector<32x64xf32>
    %c0_148 = arith.constant 0 : index
    %c0_149 = arith.constant 0 : index
    %c0_150 = arith.constant 0 : index
    %284 = vector.load %arg19[%c0_148, %c0_149, %c0_150] : memref<2x1x64xf32, #tpu.memory_space<vmem>>, vector<1x1x64xf32>
    %285 = vector.shape_cast %284 : vector<1x1x64xf32> to vector<1x64xf32>
    %286 = vector.broadcast %285 : vector<1x64xf32> to vector<32x64xf32>
    %287 = arith.addf %283, %286 : vector<32x64xf32>
    %c1 = arith.constant 1 : index
    %c0_151 = arith.constant 0 : index
    %c0_152 = arith.constant 0 : index
    %288 = vector.load %arg20[%c1, %c0_151, %c0_152] : memref<2x1x64xf32, #tpu.memory_space<vmem>>, vector<1x1x64xf32>
    %289 = vector.shape_cast %288 : vector<1x1x64xf32> to vector<1x64xf32>
    %c1_153 = arith.constant 1 : index
    %c0_154 = arith.constant 0 : index
    %c0_155 = arith.constant 0 : index
    %290 = vector.load %arg21[%c1_153, %c0_154, %c0_155] : memref<2x1x64xf32, #tpu.memory_space<vmem>>, vector<1x1x64xf32>
    %291 = vector.shape_cast %290 : vector<1x1x64xf32> to vector<1x64xf32>
    %cst_156 = arith.constant dense<0.000000e+00> : vector<32xf32>
    %292 = vector.multi_reduction <add>, %287, %cst_156 [1] : vector<32x64xf32> to vector<32xf32>
    %293 = vector.shape_cast %292 : vector<32xf32> to vector<32x1xf32>
    %cst_157 = arith.constant 6.400000e+01 : f32
    %294 = vector.broadcast %cst_157 : f32 to vector<32x1xf32>
    %295 = arith.divf %293, %294 : vector<32x1xf32>
    %296 = vector.broadcast %295 : vector<32x1xf32> to vector<32x64xf32>
    %297 = arith.subf %287, %296 : vector<32x64xf32>
    %298 = arith.mulf %297, %297 : vector<32x64xf32>
    %cst_158 = arith.constant dense<0.000000e+00> : vector<32xf32>
    %299 = vector.multi_reduction <add>, %298, %cst_158 [1] : vector<32x64xf32> to vector<32xf32>
    %300 = vector.shape_cast %299 : vector<32xf32> to vector<32x1xf32>
    %cst_159 = arith.constant 6.400000e+01 : f32
    %301 = vector.broadcast %cst_159 : f32 to vector<32x1xf32>
    %302 = arith.divf %300, %301 : vector<32x1xf32>
    %cst_160 = arith.constant 9.99999974E-6 : f32
    %303 = vector.broadcast %cst_160 : f32 to vector<32x1xf32>
    %304 = arith.addf %302, %303 : vector<32x1xf32>
    %305 = math.rsqrt %304 : vector<32x1xf32>
    %306 = vector.broadcast %305 : vector<32x1xf32> to vector<32x64xf32>
    %307 = arith.mulf %297, %306 : vector<32x64xf32>
    %308 = vector.broadcast %289 : vector<1x64xf32> to vector<32x64xf32>
    %309 = arith.mulf %307, %308 : vector<32x64xf32>
    %310 = vector.broadcast %291 : vector<1x64xf32> to vector<32x64xf32>
    %311 = arith.addf %309, %310 : vector<32x64xf32>
    %c1_161 = arith.constant 1 : index
    %c0_162 = arith.constant 0 : index
    %c0_163 = arith.constant 0 : index
    %312 = vector.load %arg4[%c1_161, %c0_162, %c0_163] : memref<2x64x192xf32, #tpu.memory_space<vmem>>, vector<1x64x192xf32>
    %313 = vector.shape_cast %312 : vector<1x64x192xf32> to vector<64x192xf32>
    %cst_164 = arith.constant dense<0.000000e+00> : vector<32x192xf32>
    %314 = tpu.matmul %311, %313, %cst_164 {dimension_numbers = #tpu.dot_dimension_numbers<[1], [0], [0], [1], [0, 0, 1, 1], [], []>} : vector<32x64xf32>, vector<64x192xf32>, vector<32x192xf32> -> vector<32x192xf32>
    %c1_165 = arith.constant 1 : index
    %c0_166 = arith.constant 0 : index
    %c0_167 = arith.constant 0 : index
    %315 = vector.load %arg5[%c1_165, %c0_166, %c0_167] : memref<2x1x192xf32, #tpu.memory_space<vmem>>, vector<1x1x192xf32>
    %316 = vector.shape_cast %315 : vector<1x1x192xf32> to vector<1x192xf32>
    %317 = vector.broadcast %316 : vector<1x192xf32> to vector<32x192xf32>
    %318 = arith.addf %314, %317 : vector<32x192xf32>
    %319 = vector.extract_strided_slice %318 {offsets = [0, 0], sizes = [32, 64], strides = [1, 1]} : vector<32x192xf32> to vector<32x64xf32>
    %320 = vector.extract_strided_slice %318 {offsets = [0, 64], sizes = [32, 64], strides = [1, 1]} : vector<32x192xf32> to vector<32x64xf32>
    %321 = vector.extract_strided_slice %318 {offsets = [0, 128], sizes = [32, 64], strides = [1, 1]} : vector<32x192xf32> to vector<32x64xf32>
    %c1_168 = arith.constant 1 : index
    %c0_169 = arith.constant 0 : index
    %c0_170 = arith.constant 0 : index
    %322 = vector.load %arg6[%c1_168, %c0_169, %c0_170] : memref<2x64x64xf32, #tpu.memory_space<vmem>>, vector<1x64x64xf32>
    %323 = vector.shape_cast %322 : vector<1x64x64xf32> to vector<64x64xf32>
    %c1_171 = arith.constant 1 : index
    %c0_172 = arith.constant 0 : index
    %c0_173 = arith.constant 0 : index
    %324 = vector.load %arg7[%c1_171, %c0_172, %c0_173] : memref<2x1x64xf32, #tpu.memory_space<vmem>>, vector<1x1x64xf32>
    %325 = vector.shape_cast %324 : vector<1x1x64xf32> to vector<1x64xf32>
    %326 = vector.extract_strided_slice %319 {offsets = [0, 0], sizes = [16, 32], strides = [1, 1]} : vector<32x64xf32> to vector<16x32xf32>
    %327 = vector.extract_strided_slice %320 {offsets = [0, 0], sizes = [16, 32], strides = [1, 1]} : vector<32x64xf32> to vector<16x32xf32>
    %328 = vector.extract_strided_slice %321 {offsets = [0, 0], sizes = [16, 32], strides = [1, 1]} : vector<32x64xf32> to vector<16x32xf32>
    %cst_174 = arith.constant dense<0.000000e+00> : vector<16x16xf32>
    %329 = tpu.matmul %326, %327, %cst_174 {dimension_numbers = #tpu.dot_dimension_numbers<[1], [1], [0], [0], [0, 0, 1, 0], [], []>} : vector<16x32xf32>, vector<16x32xf32>, vector<16x16xf32> -> vector<16x16xf32>
    %cst_175 = arith.constant 0.176776692 : f32
    %330 = vector.broadcast %cst_175 : f32 to vector<16x16xf32>
    %331 = arith.mulf %329, %330 : vector<16x16xf32>
    %cst_176 = arith.constant dense<0xFF800000> : vector<16xf32>
    %332 = vector.multi_reduction <maximumf>, %331, %cst_176 [1] : vector<16x16xf32> to vector<16xf32>
    %333 = vector.shape_cast %332 : vector<16xf32> to vector<16x1xf32>
    %334 = vector.broadcast %333 : vector<16x1xf32> to vector<16x16xf32>
    %335 = arith.subf %331, %334 : vector<16x16xf32>
    %336 = math.exp %335 : vector<16x16xf32>
    %cst_177 = arith.constant dense<0.000000e+00> : vector<16xf32>
    %337 = vector.multi_reduction <add>, %336, %cst_177 [1] : vector<16x16xf32> to vector<16xf32>
    %338 = vector.shape_cast %337 : vector<16xf32> to vector<16x1xf32>
    %339 = tpu.reciprocal %338 {approx = true} : vector<16x1xf32> -> vector<16x1xf32>
    %340 = vector.broadcast %339 : vector<16x1xf32> to vector<16x16xf32>
    %341 = arith.mulf %336, %340 : vector<16x16xf32>
    %cst_178 = arith.constant dense<0.000000e+00> : vector<16x32xf32>
    %342 = tpu.matmul %341, %328, %cst_178 {dimension_numbers = #tpu.dot_dimension_numbers<[1], [0], [0], [1], [0, 0, 1, 1], [], []>} : vector<16x16xf32>, vector<16x32xf32>, vector<16x32xf32> -> vector<16x32xf32>
    %c0_179 = arith.constant 0 : index
    %c0_180 = arith.constant 0 : index
    %343 = vector.load %arg29[%c0_179, %c0_180] : memref<32x64xf32, #tpu.memory_space<vmem>>, vector<16x32xf32>
    tpu.vector_store %arg29[%c0_179, %c0_180], %342 {strides = array<i32>} : memref<32x64xf32, #tpu.memory_space<vmem>>, vector<16x32xf32>,
    %344 = vector.extract_strided_slice %319 {offsets = [0, 32], sizes = [16, 32], strides = [1, 1]} : vector<32x64xf32> to vector<16x32xf32>
    %345 = vector.extract_strided_slice %320 {offsets = [0, 32], sizes = [16, 32], strides = [1, 1]} : vector<32x64xf32> to vector<16x32xf32>
    %346 = vector.extract_strided_slice %321 {offsets = [0, 32], sizes = [16, 32], strides = [1, 1]} : vector<32x64xf32> to vector<16x32xf32>
    %cst_181 = arith.constant dense<0.000000e+00> : vector<16x16xf32>
    %347 = tpu.matmul %344, %345, %cst_181 {dimension_numbers = #tpu.dot_dimension_numbers<[1], [1], [0], [0], [0, 0, 1, 0], [], []>} : vector<16x32xf32>, vector<16x32xf32>, vector<16x16xf32> -> vector<16x16xf32>
    %cst_182 = arith.constant 0.176776692 : f32
    %348 = vector.broadcast %cst_182 : f32 to vector<16x16xf32>
    %349 = arith.mulf %347, %348 : vector<16x16xf32>
    %cst_183 = arith.constant dense<0xFF800000> : vector<16xf32>
    %350 = vector.multi_reduction <maximumf>, %349, %cst_183 [1] : vector<16x16xf32> to vector<16xf32>
    %351 = vector.shape_cast %350 : vector<16xf32> to vector<16x1xf32>
    %352 = vector.broadcast %351 : vector<16x1xf32> to vector<16x16xf32>
    %353 = arith.subf %349, %352 : vector<16x16xf32>
    %354 = math.exp %353 : vector<16x16xf32>
    %cst_184 = arith.constant dense<0.000000e+00> : vector<16xf32>
    %355 = vector.multi_reduction <add>, %354, %cst_184 [1] : vector<16x16xf32> to vector<16xf32>
    %356 = vector.shape_cast %355 : vector<16xf32> to vector<16x1xf32>
    %357 = tpu.reciprocal %356 {approx = true} : vector<16x1xf32> -> vector<16x1xf32>
    %358 = vector.broadcast %357 : vector<16x1xf32> to vector<16x16xf32>
    %359 = arith.mulf %354, %358 : vector<16x16xf32>
    %cst_185 = arith.constant dense<0.000000e+00> : vector<16x32xf32>
    %360 = tpu.matmul %359, %346, %cst_185 {dimension_numbers = #tpu.dot_dimension_numbers<[1], [0], [0], [1], [0, 0, 1, 1], [], []>} : vector<16x16xf32>, vector<16x32xf32>, vector<16x32xf32> -> vector<16x32xf32>
    %c0_186 = arith.constant 0 : index
    %c32_187 = arith.constant 32 : index
    %361 = vector.load %arg29[%c0_186, %c32_187] : memref<32x64xf32, #tpu.memory_space<vmem>>, vector<16x32xf32>
    tpu.vector_store %arg29[%c0_186, %c32_187], %360 {strides = array<i32>} : memref<32x64xf32, #tpu.memory_space<vmem>>, vector<16x32xf32>,
    %362 = vector.extract_strided_slice %319 {offsets = [16, 0], sizes = [16, 32], strides = [1, 1]} : vector<32x64xf32> to vector<16x32xf32>
    %363 = vector.extract_strided_slice %320 {offsets = [16, 0], sizes = [16, 32], strides = [1, 1]} : vector<32x64xf32> to vector<16x32xf32>
    %364 = vector.extract_strided_slice %321 {offsets = [16, 0], sizes = [16, 32], strides = [1, 1]} : vector<32x64xf32> to vector<16x32xf32>
    %cst_188 = arith.constant dense<0.000000e+00> : vector<16x16xf32>
    %365 = tpu.matmul %362, %363, %cst_188 {dimension_numbers = #tpu.dot_dimension_numbers<[1], [1], [0], [0], [0, 0, 1, 0], [], []>} : vector<16x32xf32>, vector<16x32xf32>, vector<16x16xf32> -> vector<16x16xf32>
    %cst_189 = arith.constant 0.176776692 : f32
    %366 = vector.broadcast %cst_189 : f32 to vector<16x16xf32>
    %367 = arith.mulf %365, %366 : vector<16x16xf32>
    %cst_190 = arith.constant dense<0xFF800000> : vector<16xf32>
    %368 = vector.multi_reduction <maximumf>, %367, %cst_190 [1] : vector<16x16xf32> to vector<16xf32>
    %369 = vector.shape_cast %368 : vector<16xf32> to vector<16x1xf32>
    %370 = vector.broadcast %369 : vector<16x1xf32> to vector<16x16xf32>
    %371 = arith.subf %367, %370 : vector<16x16xf32>
    %372 = math.exp %371 : vector<16x16xf32>
    %cst_191 = arith.constant dense<0.000000e+00> : vector<16xf32>
    %373 = vector.multi_reduction <add>, %372, %cst_191 [1] : vector<16x16xf32> to vector<16xf32>
    %374 = vector.shape_cast %373 : vector<16xf32> to vector<16x1xf32>
    %375 = tpu.reciprocal %374 {approx = true} : vector<16x1xf32> -> vector<16x1xf32>
    %376 = vector.broadcast %375 : vector<16x1xf32> to vector<16x16xf32>
    %377 = arith.mulf %372, %376 : vector<16x16xf32>
    %cst_192 = arith.constant dense<0.000000e+00> : vector<16x32xf32>
    %378 = tpu.matmul %377, %364, %cst_192 {dimension_numbers = #tpu.dot_dimension_numbers<[1], [0], [0], [1], [0, 0, 1, 1], [], []>} : vector<16x16xf32>, vector<16x32xf32>, vector<16x32xf32> -> vector<16x32xf32>
    %c16_193 = arith.constant 16 : index
    %c0_194 = arith.constant 0 : index
    %379 = vector.load %arg29[%c16_193, %c0_194] : memref<32x64xf32, #tpu.memory_space<vmem>>, vector<16x32xf32>
    tpu.vector_store %arg29[%c16_193, %c0_194], %378 {strides = array<i32>} : memref<32x64xf32, #tpu.memory_space<vmem>>, vector<16x32xf32>,
    %380 = vector.extract_strided_slice %319 {offsets = [16, 32], sizes = [16, 32], strides = [1, 1]} : vector<32x64xf32> to vector<16x32xf32>
    %381 = vector.extract_strided_slice %320 {offsets = [16, 32], sizes = [16, 32], strides = [1, 1]} : vector<32x64xf32> to vector<16x32xf32>
    %382 = vector.extract_strided_slice %321 {offsets = [16, 32], sizes = [16, 32], strides = [1, 1]} : vector<32x64xf32> to vector<16x32xf32>
    %cst_195 = arith.constant dense<0.000000e+00> : vector<16x16xf32>
    %383 = tpu.matmul %380, %381, %cst_195 {dimension_numbers = #tpu.dot_dimension_numbers<[1], [1], [0], [0], [0, 0, 1, 0], [], []>} : vector<16x32xf32>, vector<16x32xf32>, vector<16x16xf32> -> vector<16x16xf32>
    %cst_196 = arith.constant 0.176776692 : f32
    %384 = vector.broadcast %cst_196 : f32 to vector<16x16xf32>
    %385 = arith.mulf %383, %384 : vector<16x16xf32>
    %cst_197 = arith.constant dense<0xFF800000> : vector<16xf32>
    %386 = vector.multi_reduction <maximumf>, %385, %cst_197 [1] : vector<16x16xf32> to vector<16xf32>
    %387 = vector.shape_cast %386 : vector<16xf32> to vector<16x1xf32>
    %388 = vector.broadcast %387 : vector<16x1xf32> to vector<16x16xf32>
    %389 = arith.subf %385, %388 : vector<16x16xf32>
    %390 = math.exp %389 : vector<16x16xf32>
    %cst_198 = arith.constant dense<0.000000e+00> : vector<16xf32>
    %391 = vector.multi_reduction <add>, %390, %cst_198 [1] : vector<16x16xf32> to vector<16xf32>
    %392 = vector.shape_cast %391 : vector<16xf32> to vector<16x1xf32>
    %393 = tpu.reciprocal %392 {approx = true} : vector<16x1xf32> -> vector<16x1xf32>
    %394 = vector.broadcast %393 : vector<16x1xf32> to vector<16x16xf32>
    %395 = arith.mulf %390, %394 : vector<16x16xf32>
    %cst_199 = arith.constant dense<0.000000e+00> : vector<16x32xf32>
    %396 = tpu.matmul %395, %382, %cst_199 {dimension_numbers = #tpu.dot_dimension_numbers<[1], [0], [0], [1], [0, 0, 1, 1], [], []>} : vector<16x16xf32>, vector<16x32xf32>, vector<16x32xf32> -> vector<16x32xf32>
    %c16_200 = arith.constant 16 : index
    %c32_201 = arith.constant 32 : index
    %397 = vector.load %arg29[%c16_200, %c32_201] : memref<32x64xf32, #tpu.memory_space<vmem>>, vector<16x32xf32>
    tpu.vector_store %arg29[%c16_200, %c32_201], %396 {strides = array<i32>} : memref<32x64xf32, #tpu.memory_space<vmem>>, vector<16x32xf32>,
    %c0_202 = arith.constant 0 : index
    %c0_203 = arith.constant 0 : index
    %398 = vector.load %arg29[%c0_202, %c0_203] : memref<32x64xf32, #tpu.memory_space<vmem>>, vector<32x64xf32>
    %cst_204 = arith.constant dense<0.000000e+00> : vector<32x64xf32>
    %399 = tpu.matmul %398, %323, %cst_204 {dimension_numbers = #tpu.dot_dimension_numbers<[1], [0], [0], [1], [0, 0, 1, 1], [], []>} : vector<32x64xf32>, vector<64x64xf32>, vector<32x64xf32> -> vector<32x64xf32>
    %400 = vector.broadcast %325 : vector<1x64xf32> to vector<32x64xf32>
    %401 = arith.addf %399, %400 : vector<32x64xf32>
    %402 = arith.addf %287, %401 : vector<32x64xf32>
    %c1_205 = arith.constant 1 : index
    %c0_206 = arith.constant 0 : index
    %c0_207 = arith.constant 0 : index
    %403 = vector.load %arg22[%c1_205, %c0_206, %c0_207] : memref<2x1x64xf32, #tpu.memory_space<vmem>>, vector<1x1x64xf32>
    %404 = vector.shape_cast %403 : vector<1x1x64xf32> to vector<1x64xf32>
    %c1_208 = arith.constant 1 : index
    %c0_209 = arith.constant 0 : index
    %c0_210 = arith.constant 0 : index
    %405 = vector.load %arg23[%c1_208, %c0_209, %c0_210] : memref<2x1x64xf32, #tpu.memory_space<vmem>>, vector<1x1x64xf32>
    %406 = vector.shape_cast %405 : vector<1x1x64xf32> to vector<1x64xf32>
    %cst_211 = arith.constant dense<0.000000e+00> : vector<32xf32>
    %407 = vector.multi_reduction <add>, %402, %cst_211 [1] : vector<32x64xf32> to vector<32xf32>
    %408 = vector.shape_cast %407 : vector<32xf32> to vector<32x1xf32>
    %cst_212 = arith.constant 6.400000e+01 : f32
    %409 = vector.broadcast %cst_212 : f32 to vector<32x1xf32>
    %410 = arith.divf %408, %409 : vector<32x1xf32>
    %411 = vector.broadcast %410 : vector<32x1xf32> to vector<32x64xf32>
    %412 = arith.subf %402, %411 : vector<32x64xf32>
    %413 = arith.mulf %412, %412 : vector<32x64xf32>
    %cst_213 = arith.constant dense<0.000000e+00> : vector<32xf32>
    %414 = vector.multi_reduction <add>, %413, %cst_213 [1] : vector<32x64xf32> to vector<32xf32>
    %415 = vector.shape_cast %414 : vector<32xf32> to vector<32x1xf32>
    %cst_214 = arith.constant 6.400000e+01 : f32
    %416 = vector.broadcast %cst_214 : f32 to vector<32x1xf32>
    %417 = arith.divf %415, %416 : vector<32x1xf32>
    %cst_215 = arith.constant 9.99999974E-6 : f32
    %418 = vector.broadcast %cst_215 : f32 to vector<32x1xf32>
    %419 = arith.addf %417, %418 : vector<32x1xf32>
    %420 = math.rsqrt %419 : vector<32x1xf32>
    %421 = vector.broadcast %420 : vector<32x1xf32> to vector<32x64xf32>
    %422 = arith.mulf %412, %421 : vector<32x64xf32>
    %423 = vector.broadcast %404 : vector<1x64xf32> to vector<32x64xf32>
    %424 = arith.mulf %422, %423 : vector<32x64xf32>
    %425 = vector.broadcast %406 : vector<1x64xf32> to vector<32x64xf32>
    %426 = arith.addf %424, %425 : vector<32x64xf32>
    %c1_216 = arith.constant 1 : index
    %c0_217 = arith.constant 0 : index
    %c0_218 = arith.constant 0 : index
    %427 = vector.load %arg8[%c1_216, %c0_217, %c0_218] : memref<2x64x64xf32, #tpu.memory_space<vmem>>, vector<1x64x64xf32>
    %428 = vector.shape_cast %427 : vector<1x64x64xf32> to vector<64x64xf32>
    %cst_219 = arith.constant dense<0.000000e+00> : vector<32x64xf32>
    %429 = tpu.matmul %426, %428, %cst_219 {dimension_numbers = #tpu.dot_dimension_numbers<[1], [0], [0], [1], [0, 0, 1, 1], [], []>} : vector<32x64xf32>, vector<64x64xf32>, vector<32x64xf32> -> vector<32x64xf32>
    %c1_220 = arith.constant 1 : index
    %c0_221 = arith.constant 0 : index
    %c0_222 = arith.constant 0 : index
    %430 = vector.load %arg9[%c1_220, %c0_221, %c0_222] : memref<2x1x64xf32, #tpu.memory_space<vmem>>, vector<1x1x64xf32>
    %431 = vector.shape_cast %430 : vector<1x1x64xf32> to vector<1x64xf32>
    %432 = vector.broadcast %431 : vector<1x64xf32> to vector<32x64xf32>
    %433 = arith.addf %429, %432 : vector<32x64xf32>
    %434 = vector.extract_strided_slice %12 {offsets = [0, 64], sizes = [64, 64], strides = [1, 1]} : vector<64x128xf32> to vector<64x64xf32>
    %435 = vector.extract_strided_slice %17 {offsets = [0, 64], sizes = [64, 64], strides = [1, 1]} : vector<64x128xf32> to vector<64x64xf32>
    %c1_223 = arith.constant 1 : index
    %c0_224 = arith.constant 0 : index
    %c0_225 = arith.constant 0 : index
    %436 = vector.load %arg14[%c1_223, %c0_224, %c0_225] : memref<2x64x64xf32, #tpu.memory_space<vmem>>, vector<1x64x64xf32>
    %437 = vector.shape_cast %436 : vector<1x64x64xf32> to vector<64x64xf32>
    %c1_226 = arith.constant 1 : index
    %c0_227 = arith.constant 0 : index
    %c0_228 = arith.constant 0 : index
    %438 = vector.load %arg15[%c1_226, %c0_227, %c0_228] : memref<2x1x64xf32, #tpu.memory_space<vmem>>, vector<1x1x64xf32>
    %439 = vector.shape_cast %438 : vector<1x1x64xf32> to vector<1x64xf32>
    %440 = vector.extract_strided_slice %433 {offsets = [0, 0], sizes = [16, 32], strides = [1, 1]} : vector<32x64xf32> to vector<16x32xf32>
    %441 = vector.extract_strided_slice %434 {offsets = [0, 0], sizes = [32, 32], strides = [1, 1]} : vector<64x64xf32> to vector<32x32xf32>
    %442 = vector.extract_strided_slice %435 {offsets = [0, 0], sizes = [32, 32], strides = [1, 1]} : vector<64x64xf32> to vector<32x32xf32>
    %cst_229 = arith.constant dense<0.000000e+00> : vector<16x32xf32>
    %443 = tpu.matmul %440, %441, %cst_229 {dimension_numbers = #tpu.dot_dimension_numbers<[1], [1], [0], [0], [0, 0, 1, 0], [], []>} : vector<16x32xf32>, vector<32x32xf32>, vector<16x32xf32> -> vector<16x32xf32>
    %cst_230 = arith.constant 0.176776692 : f32
    %444 = vector.broadcast %cst_230 : f32 to vector<16x32xf32>
    %445 = arith.mulf %443, %444 : vector<16x32xf32>
    %cst_231 = arith.constant dense<0xFF800000> : vector<16xf32>
    %446 = vector.multi_reduction <maximumf>, %445, %cst_231 [1] : vector<16x32xf32> to vector<16xf32>
    %447 = vector.shape_cast %446 : vector<16xf32> to vector<16x1xf32>
    %448 = vector.broadcast %447 : vector<16x1xf32> to vector<16x32xf32>
    %449 = arith.subf %445, %448 : vector<16x32xf32>
    %450 = math.exp %449 : vector<16x32xf32>
    %cst_232 = arith.constant dense<0.000000e+00> : vector<16xf32>
    %451 = vector.multi_reduction <add>, %450, %cst_232 [1] : vector<16x32xf32> to vector<16xf32>
    %452 = vector.shape_cast %451 : vector<16xf32> to vector<16x1xf32>
    %453 = tpu.reciprocal %452 {approx = true} : vector<16x1xf32> -> vector<16x1xf32>
    %454 = vector.broadcast %453 : vector<16x1xf32> to vector<16x32xf32>
    %455 = arith.mulf %450, %454 : vector<16x32xf32>
    %cst_233 = arith.constant dense<0.000000e+00> : vector<16x32xf32>
    %456 = tpu.matmul %455, %442, %cst_233 {dimension_numbers = #tpu.dot_dimension_numbers<[1], [0], [0], [1], [0, 0, 1, 1], [], []>} : vector<16x32xf32>, vector<32x32xf32>, vector<16x32xf32> -> vector<16x32xf32>
    %c0_234 = arith.constant 0 : index
    %c0_235 = arith.constant 0 : index
    %457 = vector.load %arg29[%c0_234, %c0_235] : memref<32x64xf32, #tpu.memory_space<vmem>>, vector<16x32xf32>
    tpu.vector_store %arg29[%c0_234, %c0_235], %456 {strides = array<i32>} : memref<32x64xf32, #tpu.memory_space<vmem>>, vector<16x32xf32>,
    %458 = vector.extract_strided_slice %433 {offsets = [0, 32], sizes = [16, 32], strides = [1, 1]} : vector<32x64xf32> to vector<16x32xf32>
    %459 = vector.extract_strided_slice %434 {offsets = [0, 32], sizes = [32, 32], strides = [1, 1]} : vector<64x64xf32> to vector<32x32xf32>
    %460 = vector.extract_strided_slice %435 {offsets = [0, 32], sizes = [32, 32], strides = [1, 1]} : vector<64x64xf32> to vector<32x32xf32>
    %cst_236 = arith.constant dense<0.000000e+00> : vector<16x32xf32>
    %461 = tpu.matmul %458, %459, %cst_236 {dimension_numbers = #tpu.dot_dimension_numbers<[1], [1], [0], [0], [0, 0, 1, 0], [], []>} : vector<16x32xf32>, vector<32x32xf32>, vector<16x32xf32> -> vector<16x32xf32>
    %cst_237 = arith.constant 0.176776692 : f32
    %462 = vector.broadcast %cst_237 : f32 to vector<16x32xf32>
    %463 = arith.mulf %461, %462 : vector<16x32xf32>
    %cst_238 = arith.constant dense<0xFF800000> : vector<16xf32>
    %464 = vector.multi_reduction <maximumf>, %463, %cst_238 [1] : vector<16x32xf32> to vector<16xf32>
    %465 = vector.shape_cast %464 : vector<16xf32> to vector<16x1xf32>
    %466 = vector.broadcast %465 : vector<16x1xf32> to vector<16x32xf32>
    %467 = arith.subf %463, %466 : vector<16x32xf32>
    %468 = math.exp %467 : vector<16x32xf32>
    %cst_239 = arith.constant dense<0.000000e+00> : vector<16xf32>
    %469 = vector.multi_reduction <add>, %468, %cst_239 [1] : vector<16x32xf32> to vector<16xf32>
    %470 = vector.shape_cast %469 : vector<16xf32> to vector<16x1xf32>
    %471 = tpu.reciprocal %470 {approx = true} : vector<16x1xf32> -> vector<16x1xf32>
    %472 = vector.broadcast %471 : vector<16x1xf32> to vector<16x32xf32>
    %473 = arith.mulf %468, %472 : vector<16x32xf32>
    %cst_240 = arith.constant dense<0.000000e+00> : vector<16x32xf32>
    %474 = tpu.matmul %473, %460, %cst_240 {dimension_numbers = #tpu.dot_dimension_numbers<[1], [0], [0], [1], [0, 0, 1, 1], [], []>} : vector<16x32xf32>, vector<32x32xf32>, vector<16x32xf32> -> vector<16x32xf32>
    %c0_241 = arith.constant 0 : index
    %c32_242 = arith.constant 32 : index
    %475 = vector.load %arg29[%c0_241, %c32_242] : memref<32x64xf32, #tpu.memory_space<vmem>>, vector<16x32xf32>
    tpu.vector_store %arg29[%c0_241, %c32_242], %474 {strides = array<i32>} : memref<32x64xf32, #tpu.memory_space<vmem>>, vector<16x32xf32>,
    %476 = vector.extract_strided_slice %433 {offsets = [16, 0], sizes = [16, 32], strides = [1, 1]} : vector<32x64xf32> to vector<16x32xf32>
    %477 = vector.extract_strided_slice %434 {offsets = [32, 0], sizes = [32, 32], strides = [1, 1]} : vector<64x64xf32> to vector<32x32xf32>
    %478 = vector.extract_strided_slice %435 {offsets = [32, 0], sizes = [32, 32], strides = [1, 1]} : vector<64x64xf32> to vector<32x32xf32>
    %cst_243 = arith.constant dense<0.000000e+00> : vector<16x32xf32>
    %479 = tpu.matmul %476, %477, %cst_243 {dimension_numbers = #tpu.dot_dimension_numbers<[1], [1], [0], [0], [0, 0, 1, 0], [], []>} : vector<16x32xf32>, vector<32x32xf32>, vector<16x32xf32> -> vector<16x32xf32>
    %cst_244 = arith.constant 0.176776692 : f32
    %480 = vector.broadcast %cst_244 : f32 to vector<16x32xf32>
    %481 = arith.mulf %479, %480 : vector<16x32xf32>
    %cst_245 = arith.constant dense<0xFF800000> : vector<16xf32>
    %482 = vector.multi_reduction <maximumf>, %481, %cst_245 [1] : vector<16x32xf32> to vector<16xf32>
    %483 = vector.shape_cast %482 : vector<16xf32> to vector<16x1xf32>
    %484 = vector.broadcast %483 : vector<16x1xf32> to vector<16x32xf32>
    %485 = arith.subf %481, %484 : vector<16x32xf32>
    %486 = math.exp %485 : vector<16x32xf32>
    %cst_246 = arith.constant dense<0.000000e+00> : vector<16xf32>
    %487 = vector.multi_reduction <add>, %486, %cst_246 [1] : vector<16x32xf32> to vector<16xf32>
    %488 = vector.shape_cast %487 : vector<16xf32> to vector<16x1xf32>
    %489 = tpu.reciprocal %488 {approx = true} : vector<16x1xf32> -> vector<16x1xf32>
    %490 = vector.broadcast %489 : vector<16x1xf32> to vector<16x32xf32>
    %491 = arith.mulf %486, %490 : vector<16x32xf32>
    %cst_247 = arith.constant dense<0.000000e+00> : vector<16x32xf32>
    %492 = tpu.matmul %491, %478, %cst_247 {dimension_numbers = #tpu.dot_dimension_numbers<[1], [0], [0], [1], [0, 0, 1, 1], [], []>} : vector<16x32xf32>, vector<32x32xf32>, vector<16x32xf32> -> vector<16x32xf32>
    %c16_248 = arith.constant 16 : index
    %c0_249 = arith.constant 0 : index
    %493 = vector.load %arg29[%c16_248, %c0_249] : memref<32x64xf32, #tpu.memory_space<vmem>>, vector<16x32xf32>
    tpu.vector_store %arg29[%c16_248, %c0_249], %492 {strides = array<i32>} : memref<32x64xf32, #tpu.memory_space<vmem>>, vector<16x32xf32>,
    %494 = vector.extract_strided_slice %433 {offsets = [16, 32], sizes = [16, 32], strides = [1, 1]} : vector<32x64xf32> to vector<16x32xf32>
    %495 = vector.extract_strided_slice %434 {offsets = [32, 32], sizes = [32, 32], strides = [1, 1]} : vector<64x64xf32> to vector<32x32xf32>
    %496 = vector.extract_strided_slice %435 {offsets = [32, 32], sizes = [32, 32], strides = [1, 1]} : vector<64x64xf32> to vector<32x32xf32>
    %cst_250 = arith.constant dense<0.000000e+00> : vector<16x32xf32>
    %497 = tpu.matmul %494, %495, %cst_250 {dimension_numbers = #tpu.dot_dimension_numbers<[1], [1], [0], [0], [0, 0, 1, 0], [], []>} : vector<16x32xf32>, vector<32x32xf32>, vector<16x32xf32> -> vector<16x32xf32>
    %cst_251 = arith.constant 0.176776692 : f32
    %498 = vector.broadcast %cst_251 : f32 to vector<16x32xf32>
    %499 = arith.mulf %497, %498 : vector<16x32xf32>
    %cst_252 = arith.constant dense<0xFF800000> : vector<16xf32>
    %500 = vector.multi_reduction <maximumf>, %499, %cst_252 [1] : vector<16x32xf32> to vector<16xf32>
    %501 = vector.shape_cast %500 : vector<16xf32> to vector<16x1xf32>
    %502 = vector.broadcast %501 : vector<16x1xf32> to vector<16x32xf32>
    %503 = arith.subf %499, %502 : vector<16x32xf32>
    %504 = math.exp %503 : vector<16x32xf32>
    %cst_253 = arith.constant dense<0.000000e+00> : vector<16xf32>
    %505 = vector.multi_reduction <add>, %504, %cst_253 [1] : vector<16x32xf32> to vector<16xf32>
    %506 = vector.shape_cast %505 : vector<16xf32> to vector<16x1xf32>
    %507 = tpu.reciprocal %506 {approx = true} : vector<16x1xf32> -> vector<16x1xf32>
    %508 = vector.broadcast %507 : vector<16x1xf32> to vector<16x32xf32>
    %509 = arith.mulf %504, %508 : vector<16x32xf32>
    %cst_254 = arith.constant dense<0.000000e+00> : vector<16x32xf32>
    %510 = tpu.matmul %509, %496, %cst_254 {dimension_numbers = #tpu.dot_dimension_numbers<[1], [0], [0], [1], [0, 0, 1, 1], [], []>} : vector<16x32xf32>, vector<32x32xf32>, vector<16x32xf32> -> vector<16x32xf32>
    %c16_255 = arith.constant 16 : index
    %c32_256 = arith.constant 32 : index
    %511 = vector.load %arg29[%c16_255, %c32_256] : memref<32x64xf32, #tpu.memory_space<vmem>>, vector<16x32xf32>
    tpu.vector_store %arg29[%c16_255, %c32_256], %510 {strides = array<i32>} : memref<32x64xf32, #tpu.memory_space<vmem>>, vector<16x32xf32>,
    %c0_257 = arith.constant 0 : index
    %c0_258 = arith.constant 0 : index
    %512 = vector.load %arg29[%c0_257, %c0_258] : memref<32x64xf32, #tpu.memory_space<vmem>>, vector<32x64xf32>
    %cst_259 = arith.constant dense<0.000000e+00> : vector<32x64xf32>
    %513 = tpu.matmul %512, %437, %cst_259 {dimension_numbers = #tpu.dot_dimension_numbers<[1], [0], [0], [1], [0, 0, 1, 1], [], []>} : vector<32x64xf32>, vector<64x64xf32>, vector<32x64xf32> -> vector<32x64xf32>
    %514 = vector.broadcast %439 : vector<1x64xf32> to vector<32x64xf32>
    %515 = arith.addf %513, %514 : vector<32x64xf32>
    %516 = arith.addf %402, %515 : vector<32x64xf32>
    %c1_260 = arith.constant 1 : index
    %c0_261 = arith.constant 0 : index
    %c0_262 = arith.constant 0 : index
    %517 = vector.load %arg24[%c1_260, %c0_261, %c0_262] : memref<2x1x64xf32, #tpu.memory_space<vmem>>, vector<1x1x64xf32>
    %518 = vector.shape_cast %517 : vector<1x1x64xf32> to vector<1x64xf32>
    %c1_263 = arith.constant 1 : index
    %c0_264 = arith.constant 0 : index
    %c0_265 = arith.constant 0 : index
    %519 = vector.load %arg25[%c1_263, %c0_264, %c0_265] : memref<2x1x64xf32, #tpu.memory_space<vmem>>, vector<1x1x64xf32>
    %520 = vector.shape_cast %519 : vector<1x1x64xf32> to vector<1x64xf32>
    %cst_266 = arith.constant dense<0.000000e+00> : vector<32xf32>
    %521 = vector.multi_reduction <add>, %516, %cst_266 [1] : vector<32x64xf32> to vector<32xf32>
    %522 = vector.shape_cast %521 : vector<32xf32> to vector<32x1xf32>
    %cst_267 = arith.constant 6.400000e+01 : f32
    %523 = vector.broadcast %cst_267 : f32 to vector<32x1xf32>
    %524 = arith.divf %522, %523 : vector<32x1xf32>
    %525 = vector.broadcast %524 : vector<32x1xf32> to vector<32x64xf32>
    %526 = arith.subf %516, %525 : vector<32x64xf32>
    %527 = arith.mulf %526, %526 : vector<32x64xf32>
    %cst_268 = arith.constant dense<0.000000e+00> : vector<32xf32>
    %528 = vector.multi_reduction <add>, %527, %cst_268 [1] : vector<32x64xf32> to vector<32xf32>
    %529 = vector.shape_cast %528 : vector<32xf32> to vector<32x1xf32>
    %cst_269 = arith.constant 6.400000e+01 : f32
    %530 = vector.broadcast %cst_269 : f32 to vector<32x1xf32>
    %531 = arith.divf %529, %530 : vector<32x1xf32>
    %cst_270 = arith.constant 9.99999974E-6 : f32
    %532 = vector.broadcast %cst_270 : f32 to vector<32x1xf32>
    %533 = arith.addf %531, %532 : vector<32x1xf32>
    %534 = math.rsqrt %533 : vector<32x1xf32>
    %535 = vector.broadcast %534 : vector<32x1xf32> to vector<32x64xf32>
    %536 = arith.mulf %526, %535 : vector<32x64xf32>
    %537 = vector.broadcast %518 : vector<1x64xf32> to vector<32x64xf32>
    %538 = arith.mulf %536, %537 : vector<32x64xf32>
    %539 = vector.broadcast %520 : vector<1x64xf32> to vector<32x64xf32>
    %540 = arith.addf %538, %539 : vector<32x64xf32>
    %c1_271 = arith.constant 1 : index
    %c0_272 = arith.constant 0 : index
    %c0_273 = arith.constant 0 : index
    %541 = vector.load %arg16[%c1_271, %c0_272, %c0_273] : memref<2x64x128xf32, #tpu.memory_space<vmem>>, vector<1x64x128xf32>
    %542 = vector.shape_cast %541 : vector<1x64x128xf32> to vector<64x128xf32>
    %cst_274 = arith.constant dense<0.000000e+00> : vector<32x128xf32>
    %543 = tpu.matmul %540, %542, %cst_274 {dimension_numbers = #tpu.dot_dimension_numbers<[1], [0], [0], [1], [0, 0, 1, 1], [], []>} : vector<32x64xf32>, vector<64x128xf32>, vector<32x128xf32> -> vector<32x128xf32>
    %c1_275 = arith.constant 1 : index
    %c0_276 = arith.constant 0 : index
    %c0_277 = arith.constant 0 : index
    %544 = vector.load %arg17[%c1_275, %c0_276, %c0_277] : memref<2x1x128xf32, #tpu.memory_space<vmem>>, vector<1x1x128xf32>
    %545 = vector.shape_cast %544 : vector<1x1x128xf32> to vector<1x128xf32>
    %546 = vector.broadcast %545 : vector<1x128xf32> to vector<32x128xf32>
    %547 = arith.addf %543, %546 : vector<32x128xf32>
    %cst_278 = arith.constant 0.000000e+00 : f32
    %548 = vector.broadcast %cst_278 : f32 to vector<32x128xf32>
    %549 = arith.maximumf %547, %548 : vector<32x128xf32>
    %c1_279 = arith.constant 1 : index
    %c0_280 = arith.constant 0 : index
    %c0_281 = arith.constant 0 : index
    %550 = vector.load %arg18[%c1_279, %c0_280, %c0_281] : memref<2x128x64xf32, #tpu.memory_space<vmem>>, vector<1x128x64xf32>
    %551 = vector.shape_cast %550 : vector<1x128x64xf32> to vector<128x64xf32>
    %cst_282 = arith.constant dense<0.000000e+00> : vector<32x64xf32>
    %552 = tpu.matmul %549, %551, %cst_282 {dimension_numbers = #tpu.dot_dimension_numbers<[1], [0], [0], [1], [0, 0, 1, 1], [], []>} : vector<32x128xf32>, vector<128x64xf32>, vector<32x64xf32> -> vector<32x64xf32>
    %553 = arith.addf %516, %552 : vector<32x64xf32>
    %c1_283 = arith.constant 1 : index
    %c0_284 = arith.constant 0 : index
    %c0_285 = arith.constant 0 : index
    %554 = vector.load %arg19[%c1_283, %c0_284, %c0_285] : memref<2x1x64xf32, #tpu.memory_space<vmem>>, vector<1x1x64xf32>
    %555 = vector.shape_cast %554 : vector<1x1x64xf32> to vector<1x64xf32>
    %556 = vector.broadcast %555 : vector<1x64xf32> to vector<32x64xf32>
    %557 = arith.addf %553, %556 : vector<32x64xf32>
    %c0_286 = arith.constant 0 : index
    %c0_287 = arith.constant 0 : index
    %558 = vector.load %arg26[%c0_286, %c0_287] : memref<1x64xf32, #tpu.memory_space<vmem>>, vector<1x64xf32>
    %c0_288 = arith.constant 0 : index
    %c0_289 = arith.constant 0 : index
    %559 = vector.load %arg27[%c0_288, %c0_289] : memref<1x64xf32, #tpu.memory_space<vmem>>, vector<1x64xf32>
    %cst_290 = arith.constant dense<0.000000e+00> : vector<32xf32>
    %560 = vector.multi_reduction <add>, %557, %cst_290 [1] : vector<32x64xf32> to vector<32xf32>
    %561 = vector.shape_cast %560 : vector<32xf32> to vector<32x1xf32>
    %cst_291 = arith.constant 6.400000e+01 : f32
    %562 = vector.broadcast %cst_291 : f32 to vector<32x1xf32>
    %563 = arith.divf %561, %562 : vector<32x1xf32>
    %564 = vector.broadcast %563 : vector<32x1xf32> to vector<32x64xf32>
    %565 = arith.subf %557, %564 : vector<32x64xf32>
    %566 = arith.mulf %565, %565 : vector<32x64xf32>
    %cst_292 = arith.constant dense<0.000000e+00> : vector<32xf32>
    %567 = vector.multi_reduction <add>, %566, %cst_292 [1] : vector<32x64xf32> to vector<32xf32>
    %568 = vector.shape_cast %567 : vector<32xf32> to vector<32x1xf32>
    %cst_293 = arith.constant 6.400000e+01 : f32
    %569 = vector.broadcast %cst_293 : f32 to vector<32x1xf32>
    %570 = arith.divf %568, %569 : vector<32x1xf32>
    %cst_294 = arith.constant 9.99999974E-6 : f32
    %571 = vector.broadcast %cst_294 : f32 to vector<32x1xf32>
    %572 = arith.addf %570, %571 : vector<32x1xf32>
    %573 = math.rsqrt %572 : vector<32x1xf32>
    %574 = vector.broadcast %573 : vector<32x1xf32> to vector<32x64xf32>
    %575 = arith.mulf %565, %574 : vector<32x64xf32>
    %576 = vector.broadcast %558 : vector<1x64xf32> to vector<32x64xf32>
    %577 = arith.mulf %575, %576 : vector<32x64xf32>
    %578 = vector.broadcast %559 : vector<1x64xf32> to vector<32x64xf32>
    %579 = arith.addf %577, %578 : vector<32x64xf32>
    %c0_295 = arith.constant 0 : index
    %c0_296 = arith.constant 0 : index
    %580 = vector.load %arg28[%c0_295, %c0_296] : memref<32x64xf32, #tpu.memory_space<vmem>>, vector<32x64xf32>
    tpu.vector_store %arg28[%c0_295, %c0_296], %579 {strides = array<i32>} : memref<32x64xf32, #tpu.memory_space<vmem>>, vector<32x64xf32>,
    return
  }
}

</mosaic_0001>

<bundles_post_ra>
// kernel: _forward_jit.1
= control target key start
LH: loop header
LB: loop body
LE: loop exit
PB: predicated region body
PF: predicated region fallthrough
CT: control target
= control target key end

     0   :  { %vm141_vm0 = vcmask 523264   ;;  %v4086_v20 = vmov 64.0   ;;  %vm502_vm14 = vcmask 261120   ;;  %vm536_vm15 = vcmask 130048   ;;  %s5822_s0 = inlined_call_operand.vmem [shape: f32[32,64], index: 0, kind: input, shape index: {}]   ;;  %s5823_s1 = inlined_call_operand.vmem [shape: f32[32,64], index: 1, kind: input, shape index: {}]   ;;  %s5824_s20 = inlined_call_operand.vmem [shape: f32[2,1,64], index: 20, kind: input, shape index: {}]   ;;  %s5825_s21 = inlined_call_operand.vmem [shape: f32[2,1,64], index: 21, kind: input, shape index: {}]   ;;  %s5826_s4 = inlined_call_operand.vmem [shape: f32[2,64,192], index: 4, kind: input, shape index: {}]   ;;  %s5827_s12 = inlined_call_operand.vmem [shape: f32[64,128], index: 12, kind: input, shape index: {}]   ;;  %s5828_s5 = inlined_call_operand.vmem [shape: f32[2,1,192], index: 5, kind: input, shape index: {}]   ;;  %s5829_s10 = inlined_call_operand.vmem [shape: f32[64,128], index: 10, kind: input, shape index: {}]   ;;  %s5830_s2 = inlined_call_operand.vmem [shape: f32[64,64], index: 2, kind: input, shape index: {}]   ;;  %s5831_s3 = inlined_call_operand.vmem [shape: f32[64,64], index: 3, kind: input, shape index: {}]   ;;  %s5832_s11 = inlined_call_operand.vmem [shape: f32[1,128], index: 11, kind: input, shape index: {}]   ;;  %s5833_s6 = inlined_call_operand.vmem [shape: f32[2,64,64], index: 6, kind: input, shape index: {}]   ;;  %s5834_s13 = inlined_call_operand.vmem [shape: f32[1,128], index: 13, kind: input, shape index: {}]   ;;  %s5835_s8 = inlined_call_operand.vmem [shape: f32[2,64,64], index: 8, kind: input, shape index: {}]   ;;  %s5836_s7 = inlined_call_operand.vmem [shape: f32[2,1,64], index: 7, kind: input, shape index: {}]   ;;  %s5837_s22 = inlined_call_operand.vmem [shape: f32[2,1,64], index: 22, kind: input, shape index: {}]   ;;  %s5838_s23 = inlined_call_operand.vmem [shape: f32[2,1,64], index: 23, kind: input, shape index: {}]   ;;  %s5839_s9 = inlined_call_operand.vmem [shape: f32[2,1,64], index: 9, kind: input, shape index: {}]   ;;  %s5840_s14 = inlined_call_operand.vmem [shape: f32[2,64,64], index: 14, kind: input, shape index: {}]   ;;  %s5841_s15 = inlined_call_operand.vmem [shape: f32[2,1,64], index: 15, kind: input, shape index: {}]   ;;  %s5842_s24 = inlined_call_operand.vmem [shape: f32[2,1,64], index: 24, kind: input, shape index: {}]   ;;  %s5843_s25 = inlined_call_operand.vmem [shape: f32[2,1,64], index: 25, kind: input, shape index: {}]   ;;  %s5844_s16 = inlined_call_operand.vmem [shape: f32[2,64,128], index: 16, kind: input, shape index: {}]   ;;  %s5845_s17 = inlined_call_operand.vmem [shape: f32[2,1,128], index: 17, kind: input, shape index: {}]   ;;  %s5846_s18 = inlined_call_operand.vmem [shape: f32[2,128,64], index: 18, kind: input, shape index: {}]   ;;  %s5847_s19 = inlined_call_operand.vmem [shape: f32[2,1,64], index: 19, kind: input, shape index: {}]   ;;  %s5848_s26 = inlined_call_operand.vmem [shape: f32[1,64], index: 26, kind: input, shape index: {}]   ;;  %s5849_s27 = inlined_call_operand.vmem [shape: f32[1,64], index: 27, kind: input, shape index: {}]   ;;  %s5850_s28 = inlined_call_operand.vmem [shape: f32[32,64], index: 28, kind: output, shape index: {}]  }
   0x1   :  { %5870 = sst [smem:[#allocation3_spill]] %s5822_s0  ;;  %3900 = vrcp.f32 %v4086_v20 }
   0x2   :  { %5871 = sst [smem:[#allocation4_spill]] %s5823_s1 }
   0x3   :  { %5872 = sst [smem:[#allocation5_spill]] %s5824_s20 }
   0x4   :  { %5873 = sst [smem:[#allocation6_spill]] %s5825_s21 }
   0x5   :  { %5874 = sst [smem:[#allocation7_spill]] %s5826_s4  ;;  %s5901_s4 = smov 32  }
   0x6   :  { %5875 = sst [smem:[#allocation8_spill]] %s5827_s12 }
   0x7   :  { %5876 = sst [smem:[#allocation9_spill]] %s5828_s5  ;;  %v3901_v21 = vpop.eup %3900 }
   0x8   :  { %5877 = sst [smem:[#allocation10_spill]] %s5829_s10  ;;  %v299_v22 = vmul.f32 64.0, %v3901_v21  ;;  %vm303_vm1 = vweird.f32 %v3901_v21 }
   0x9   :  { %5878 = sst [smem:[#allocation11_spill]] %s5830_s2  ;;  %s5897_s2 = smov 96  }
   0xa   :  { %5879 = sst [smem:[#allocation12_spill]] %s5831_s3  ;;  %v300_v23 = vsub.f32 1.0, %v299_v22 }
   0xb   :  { %5880 = sst [smem:[#allocation13_spill]] %s5832_s11  ;;  %s5865_s11 = smov 32  }
   0xc   :  { %5881 = sst [smem:[#allocation14_spill]] %s5833_s6  ;;  %v301_v24 = vmul.f32 %v3901_v21, %v300_v23 }
   0xd   :  { %5882 = sst [smem:[#allocation15_spill]] %s5834_s13 }
   0xe   :  { %5883 = sst [smem:[#allocation16_spill]] %s5845_s17  ;;  %v302_v25 = vadd.f32 %v3901_v21, %v301_v24 }
   0xf   :  { %5884 = sst [smem:[#allocation17_spill]] %s5848_s26 }
  0x10   :  { %5885 = sst [smem:[#allocation18_spill]] %s5849_s27  ;;  %v4275_v26 = vsel %vm303_vm1, %v3901_v21, %v302_v25  ;;  %vm698_vm1 = vcmask 523520  }
  0x11   :  { %5886 = sst [smem:[#allocation19_spill]] %s5850_s28  ;;  %s5898_s28 = smov 64  }
  0x12   :  { %s5887_s12 = sld [smem:[#allocation4_spill]] }
  0x13   :  { %s5888_s17 = sld [smem:[#allocation3_spill]] }
  0x14   :  { %s5889_s30 = sld [smem:[#allocation7_spill]] }
  0x15   :  { %s5890_s21 = sld [smem:[#allocation5_spill]] }
  0x16   :  { %s5891_s29 = sld [smem:[#allocation6_spill]] }
  0x17   :  { %s5892_s13 = sld [smem:[#allocation8_spill]] }
  0x18   :  { %v89_v0 = vld [vmem:[%s5887_s12] sm:$0xff]  ;;  %v90_v2 = vld [vmem:[%s5887_s12 + $0x8] sm:$0xff]  ;;  %v91_v4 = vld [vmem:[%s5887_s12 + $0x10] sm:$0xff]  ;;  %s5894_s6 = sld [smem:[#allocation10_spill]] }
  0x19   :  { %v93_v1 = vld [vmem:[%s5888_s17] sm:$0xff]  ;;  %v97_v3 = vmul.f32 0.1, %v89_v0  ;;  %v95_v5 = vld [vmem:[%s5888_s17 + $0x10] sm:$0xff]  ;;  %v99_v6 = vmul.f32 0.1, %v91_v4 }
  0x1a   :  { %v92_v7 = vld [vmem:[%s5887_s12 + $0x18] sm:$0xff]  ;;  %v98_v9 = vmul.f32 0.1, %v90_v2  ;;  %v94_v10 = vld [vmem:[%s5888_s17 + $0x8] sm:$0xff]  ;;  %v409_v47 = vld [vmem:[%s5889_s30 + $0x70] sm:$0xff]  ;;  %s5863_s12 = smov 64  }
  0x1b   :  { %v4253_v8 = vadd.f32 %v97_v3, %v93_v1  ;;  %v4258_v11 = vadd.f32 %v99_v6, %v95_v5  ;;  %v100_v12 = vmul.f32 0.1, %v92_v7  ;;  %v96_v14 = vld [vmem:[%s5888_s17 + $0x18] sm:$0xff]  ;;  %437 = vmatpush.msra.mxu2 %v409_v47  ;;  %v407_v49 = vld [vmem:[%s5889_s30 + $0x60] sm:$0xff]  ;;  %v408_v50 = vld [vmem:[%s5889_s30 + $0x68] sm:$0xff]  ;;  %s5893_s17 = sld [smem:[#allocation9_spill]] }
  0x1c   :  { %v4267_v16 = vadd.f32 %v98_v9, %v94_v10  ;;  %v410_v48 = vld [vmem:[%s5889_s30 + $0x78] sm:$0xff]  ;;  %v405_v51 = vld [vmem:[%s5889_s30 + $0x50] sm:$0xff]  ;;  %v403_v53 = vld [vmem:[%s5889_s30 + $0x40] sm:$0xff]  ;;  %s5896_s5 = sld [smem:[#allocation12_spill]] }
  0x1d   :  { %v286_v13 = vsel %vm141_vm0, %v4253_v8, 0.0  ;;  %v292_v15 = vsel %vm141_vm0, %v4258_v11, 0.0  ;;  %v4269_v17 = vadd.f32 %v100_v12, %v96_v14  ;;  %466 = vmatpush.msra.mxu3 %v410_v48  ;;  %438 = vmatpush.msra.mxu2 %v407_v49  ;;  %v406_v52 = vld [vmem:[%s5889_s30 + $0x58] sm:$0xff]  ;;  %v404_v54 = vld [vmem:[%s5889_s30 + $0x48] sm:$0xff]  ;;  %v401_v55 = vld [vmem:[%s5889_s30 + $0x30] sm:$0xff]  ;;  %s5899_s10 = sld [smem:[#allocation13_spill]] }
  0x1e   :  { %287 = vadd.xlane.f32.xlu0 %v286_v13  ;;  %293 = vadd.xlane.f32.xlu2 %v292_v15  ;;  %v289_v18 = vsel %vm141_vm0, %v4267_v16, 0.0  ;;  %v402_v56 = vld [vmem:[%s5889_s30 + $0x38] sm:$0xff]  ;;  %v399_v57 = vld [vmem:[%s5889_s30 + $0x20] sm:$0xff]  ;;  %v400_v58 = vld [vmem:[%s5889_s30 + $0x28] sm:$0xff]  ;;  %s5900_s3 = sld [smem:[#allocation14_spill]] }
  0x1f   :  { %v295_v19 = vsel %vm141_vm0, %v4269_v17, 0.0  ;;  %467 = vmatpush.msra.mxu3 %v408_v50  ;;  %439 = vmatpush.msra.mxu2 %v405_v51  ;;  %v397_v59 = vld [vmem:[%s5889_s30 + $0x10] sm:$0xff]  ;;  %v398_v60 = vld [vmem:[%s5889_s30 + $0x18] sm:$0xff]  ;;  %v395_v61 = vld [vmem:[%s5889_s30] sm:$0xff]  ;;  %s5903_s1 = sld [smem:[#allocation16_spill]] }
  0x20   :  { %v396_v62 = vld [vmem:[%s5889_s30 + $0x8] sm:$0xff] }
  0x21   :  { %468 = vmatpush.msra.mxu3 %v406_v52  ;;  %440 = vmatpush.msra.mxu2 %v403_v53 }
  0x23   :  { %469 = vmatpush.msra.mxu3 %v404_v54  ;;  %441 = vmatpush.msra.mxu2 %v401_v55 }
  0x25   :  { %470 = vmatpush.msra.mxu3 %v402_v56  ;;  %442 = vmatpush.msra.mxu2 %v399_v57 }
  0x26   :  { %290 = vadd.xlane.f32.xlu0 %v289_v18  ;;  %296 = vadd.xlane.f32.xlu2 %v295_v19 }
  0x27   :  { %471 = vmatpush.msra.mxu3 %v400_v58  ;;  %443 = vmatpush.msra.mxu2 %v397_v59 }
  0x29   :  { %472 = vmatpush.msra.mxu3 %v398_v60  ;;  %444 = vmatpush.msra.mxu2 %v395_v61  ;;  %v213_v60 = vld [vmem:[%s5892_s13 + $0x30] sm:$0xff]  ;;  %v211_v61 = vld [vmem:[%s5892_s13 + $0x20] sm:$0xff] }
  0x2b   :  { %473 = vmatpush.msra.mxu3 %v396_v62  ;;  %v210_v62 = vld [vmem:[%s5892_s13 + $0x18] sm:$0xff] }
  0x91   :  { %v288_v27 = vpop.xlane.xlu0 %287  ;;  %v294_v29 = vpop.xlane.xlu2 %293 }
  0x92   :  { %v305_v28 = vmul.f32 %v4275_v26, %v288_v27  ;;  %v307_v30 = vmul.f32 %v4275_v26, %v294_v29 }
  0x94   :  { %v4280_v31 = vsub.f32 %v4253_v8, %v305_v28  ;;  %v4283_v32 = vsub.f32 %v4258_v11, %v307_v30  ;;  %v3874_v28 = vld [vmem:[%s5890_s21] ss:$0 sm:$0xff] }
  0x96   :  { %v313_v33 = vmul.f32 %v4280_v31, %v4280_v31  ;;  %v315_v34 = vmul.f32 %v4283_v32, %v4283_v32 }
  0x98   :  { %v317_v35 = vsel %vm141_vm0, %v313_v33, 0.0  ;;  %v323_v37 = vsel %vm141_vm0, %v315_v34, 0.0  ;;  %v3875_v34 = vld [vmem:[%s5891_s29] ss:$0 sm:$0xff] }
  0x99   :  { %318 = vadd.xlane.f32.xlu1 %v317_v35  ;;  %v291_v36 = vpop.xlane.xlu0 %290  ;;  %v297_v39 = vpop.xlane.xlu2 %296  ;;  %324 = vadd.xlane.f32.xlu0 %v323_v37 }
  0x9a   :  { %v306_v38 = vmul.f32 %v4275_v26, %v291_v36  ;;  %v308_v40 = vmul.f32 %v4275_v26, %v297_v39 }
  0x9c   :  { %v4294_v41 = vsub.f32 %v4267_v16, %v306_v38  ;;  %v4299_v43 = vsub.f32 %v4269_v17, %v308_v40 }
  0x9e   :  { %v314_v42 = vmul.f32 %v4294_v41, %v4294_v41  ;;  %v316_v45 = vmul.f32 %v4299_v43, %v4299_v43 }
  0xa0   :  { %v320_v44 = vsel %vm141_vm0, %v314_v42, 0.0  ;;  %v326_v46 = vsel %vm141_vm0, %v316_v45, 0.0 }
  0xa1   :  { %321 = vadd.xlane.f32.xlu1 %v320_v44 }
  0xa9   :  { %327 = vadd.xlane.f32.xlu1 %v326_v46 }
 0x10c   :  { %v319_v63 = vpop.xlane.xlu1 %318  ;;  %v325_v1 = vpop.xlane.xlu0 %324 }
 0x10d   :  { %v329_v0 = vmul.f32 %v319_v63, %v4275_v26  ;;  %v331_v2 = vmul.f32 %v325_v1, %v4275_v26  ;;  %v209_v63 = vld [vmem:[%s5892_s13 + $0x10] sm:$0xff]  ;;  %v207_v1 = vld [vmem:[%s5892_s13] sm:$0xff] }
 0x10f   :  { %v333_v3 = vadd.f32 1e-05, %v329_v0  ;;  %v335_v4 = vadd.f32 1e-05, %v331_v2  ;;  %v208_v0 = vld [vmem:[%s5892_s13 + $0x8] sm:$0xff] }
 0x110   :  { %v411_v2 = vld [vmem:[%s5893_s17] sm:$0x3] }
 0x111   :  { %3902 = vrsqrt.f32 %v333_v3  ;;  %vm343_vm3 = vweird.f32 %v333_v3  ;;  %vm363_vm5 = vweird.f32 %v335_v4 }
 0x112   :  { %3904 = vrsqrt.f32 %v335_v4 }
 0x114   :  { %v322_v5 = vpop.xlane.xlu1 %321 }
 0x115   :  { %v330_v6 = vmul.f32 %v322_v5, %v4275_v26 }
 0x117   :  { %v3903_v7 = vpop.eup %3902  ;;  %v334_v9 = vadd.f32 1e-05, %v330_v6 }
 0x118   :  { %v3905_v10 = vpop.eup %3904  ;;  %v338_v12 = vmul.f32 %v3903_v7, %v333_v3  ;;  %vm344_vm2 = vweird.f32 %v3903_v7  ;;  %v413_v3 = vperm.slane %v411_v2, 0 }
 0x119   :  { %3906 = vrsqrt.f32 %v334_v9  ;;  %v358_v13 = vmul.f32 %v3905_v10, %v335_v4  ;;  %vm345_vm4 = vmor %vm343_vm3, %vm344_vm2  ;;  %vm364_vm6 = vweird.f32 %v3905_v10  ;;  %vm353_vm7 = vweird.f32 %v334_v9 }
 0x11a   :  { %v339_v14 = vmul.f32 %v3903_v7, %v338_v12  ;;  %vm365_vm9 = vmor %vm363_vm5, %vm364_vm6 }
 0x11b   :  { %v359_v18 = vmul.f32 %v3905_v10, %v358_v13 }
 0x11c   :  { %v340_v15 = vmul.f32 0.5, %v339_v14  ;;  %v328_v19 = vpop.xlane.xlu1 %327 }
 0x11d   :  { %v332_v20 = vmul.f32 %v328_v19, %v4275_v26  ;;  %v360_v27 = vmul.f32 0.5, %v359_v18 }
 0x11e   :  { %v341_v21 = vsub.f32 1.5, %v340_v15 }
 0x11f   :  { %v3907_v22 = vpop.eup %3906  ;;  %v336_v23 = vadd.f32 1e-05, %v332_v20  ;;  %v361_v36 = vsub.f32 1.5, %v360_v27 }
 0x120   :  { %v342_v24 = vmul.f32 %v3903_v7, %v341_v21  ;;  %v348_v25 = vmul.f32 %v3907_v22, %v334_v9  ;;  %vm354_vm8 = vweird.f32 %v3907_v22  ;;  %v136_v21 = vld [vmem:[%s5894_s6 + $0x38] sm:$0xff] }
 0x121   :  { %3908 = vrsqrt.f32 %v336_v23  ;;  %v362_v44 = vmul.f32 %v3905_v10, %v361_v36  ;;  %vm355_vm10 = vmor %vm353_vm7, %vm354_vm8  ;;  %vm373_vm11 = vweird.f32 %v336_v23  ;;  %174 = vmatpush.msra.mxu0 %v136_v21  ;;  %v131_v36 = vld [vmem:[%s5894_s6 + $0x10] sm:$0xff] }
 0x122   :  { %v349_v29 = vmul.f32 %v3907_v22, %v348_v25  ;;  %v346_v30 = vsel %vm345_vm4, %v3903_v7, %v342_v24  ;;  %v414_v7 = vperm.slane %v411_v2, 1 }
 0x123   :  { %v377_v33 = vmul.f32 %v346_v30, %v4280_v31  ;;  %v366_v49 = vsel %vm365_vm9, %v3905_v10, %v362_v44  ;;  %v114_v44 = vld [vmem:[%s5896_s5 + $0x8] sm:$0xff] }
 0x124   :  { %v350_v35 = vmul.f32 0.5, %v349_v29  ;;  %v379_v53 = vmul.f32 %v366_v49, %v4283_v32  ;;  %v214_v32 = vld [vmem:[%s5892_s13 + $0x38] sm:$0xff] }
 0x125   :  { %v384_v37 = vmul.f32 %v3874_v28, %v377_v33  ;;  %251 = vmatpush.msra.mxu1 %v214_v32  ;;  %v133_v33 = vld [vmem:[%s5894_s6 + $0x20] sm:$0xff]  ;;  %v116_v49 = vld [vmem:[%s5896_s5 + $0x18] sm:$0xff] }
 0x126   :  { %v351_v38 = vsub.f32 1.5, %v350_v35  ;;  %v386_v55 = vmul.f32 %v3874_v28, %v379_v53  ;;  %v132_v35 = vld [vmem:[%s5894_s6 + $0x18] sm:$0xff] }
 0x127   :  { %v3909_v39 = vpop.eup %3908  ;;  %v391_v40 = vadd.f32 %v3875_v34, %v384_v37  ;;  %252 = vmatpush.msra.mxu1 %v213_v60  ;;  %v113_v37 = vld [vmem:[%s5896_s5] sm:$0xff]  ;;  %v120_v60 = vld [vmem:[%s5896_s5 + $0x38] sm:$0xff] }
 0x128   :  { %v352_v42 = vmul.f32 %v3907_v22, %v351_v38  ;;  %v368_v45 = vmul.f32 %v3909_v39, %v336_v23  ;;  %vm374_vm12 = vweird.f32 %v3909_v39  ;;  %v393_v57 = vadd.f32 %v3875_v34, %v386_v55  ;;  %v134_v23 = vld [vmem:[%s5894_s6 + $0x28] sm:$0xff] }
 0x129   :  { %3546 = vmatmul.msk.f32.vlgmr.msra.gmra.mxu2 %vm141_vm0, %v391_v40  ;;  %3550 = vmatmul.msk.f32.vlgmr.msra.gmra.mxu3 %vm141_vm0, %v391_v40  ;;  %vm375_vm13 = vmor %vm373_vm11, %vm374_vm12  ;;  %v129_v40 = vld [vmem:[%s5894_s6] sm:$0xff]  ;;  %v118_v55 = vld [vmem:[%s5896_s5 + $0x28] sm:$0xff] }
 0x12a   :  { %v369_v31 = vmul.f32 %v3909_v39, %v368_v45  ;;  %v356_v46 = vsel %vm355_vm10, %v3907_v22, %v352_v42  ;;  %v135_v22 = vld [vmem:[%s5894_s6 + $0x30] sm:$0xff] }
 0x12b   :  { %v378_v47 = vmul.f32 %v356_v46, %v4294_v41  ;;  %175 = vmatpush.msra.mxu0 %v135_v22  ;;  %v115_v46 = vld [vmem:[%s5896_s5 + $0x10] sm:$0xff] }
 0x12c   :  { %v370_v48 = vmul.f32 0.5, %v369_v31 }
 0x12d   :  { %v385_v50 = vmul.f32 %v3874_v28, %v378_v47  ;;  %176 = vmatpush.msra.mxu0 %v134_v23 }
 0x12e   :  { %v371_v51 = vsub.f32 1.5, %v370_v48 }
 0x12f   :  { %v392_v52 = vadd.f32 %v3875_v34, %v385_v50  ;;  %177 = vmatpush.msra.mxu0 %v133_v33 }
 0x130   :  { %v372_v54 = vmul.f32 %v3909_v39, %v371_v51 }
 0x131   :  { %3547 = vmatmul.msk.f32.gmra.mxu2 %vm141_vm0, %v392_v52  ;;  %3551 = vmatmul.msk.f32.gmra.mxu3 %vm141_vm0, %v392_v52  ;;  %v117_v52 = vld [vmem:[%s5896_s5 + $0x20] sm:$0xff] }
 0x132   :  { %v376_v56 = vsel %vm375_vm13, %v3909_v39, %v372_v54  ;;  %178 = vmatpush.msra.mxu0 %v132_v35  ;;  %v130_v39 = vld [vmem:[%s5894_s6 + $0x8] sm:$0xff] }
 0x133   :  { %v380_v41 = vmul.f32 %v376_v56, %v4299_v43  ;;  %v212_v43 = vld [vmem:[%s5892_s13 + $0x28] sm:$0xff]  ;;  %s5867_s13 = smov 96  }
 0x134   :  { %253 = vmatpush.msra.mxu1 %v212_v43  ;;  %179 = vmatpush.msra.mxu0 %v131_v36 }
 0x135   :  { %v387_v58 = vmul.f32 %v3874_v28, %v380_v41  ;;  %v119_v41 = vld [vmem:[%s5896_s5 + $0x30] sm:$0xff] }
 0x136   :  { %254 = vmatpush.msra.mxu1 %v211_v61  ;;  %180 = vmatpush.msra.mxu0 %v130_v39 }
 0x137   :  { %v394_v59 = vadd.f32 %v3875_v34, %v387_v58 }
 0x138   :  { %255 = vmatpush.msra.mxu1 %v210_v62  ;;  %181 = vmatpush.msra.mxu0 %v129_v40 }
 0x139   :  { %3548 = vmatmul.msk.f32.gmra.mxu2 %vm141_vm0, %v393_v57  ;;  %3552 = vmatmul.msk.f32.gmra.mxu3 %vm141_vm0, %v393_v57 }
 0x13a   :  { %256 = vmatpush.msra.mxu1 %v209_v63 }
 0x13c   :  { %257 = vmatpush.msra.mxu1 %v208_v0 }
 0x13e   :  { %258 = vmatpush.msra.mxu1 %v207_v1 }
 0x141   :  { %3549 = vmatmul.msk.f32.gmra.mxu2 %vm141_vm0, %v394_v59  ;;  %3553 = vmatmul.msk.f32.gmra.mxu3 %vm141_vm0, %v394_v59 }
 0x1ac   :  { %v446_v4 = vpop.f32.mrf.mxu2  ;;  %v475_v5 = vpop.f32.mrf.mxu3 }
 0x1ad   :  { %v4402_v6 = vadd.f32 %v446_v4, %v413_v3  ;;  %v4410_v14 = vadd.f32 %v475_v5, %v414_v7 }
 0x1af   :  { %498 = vrot.lane.b32.xlu0 %v4402_v6, %s5863_s12 }
 0x1b4   :  { %v449_v9 = vpop.f32.mrf.mxu2  ;;  %v478_v10 = vpop.f32.mrf.mxu3 }
 0x1b5   :  { %v4406_v12 = vadd.f32 %v449_v9, %v413_v3  ;;  %v4408_v13 = vadd.f32 %v478_v10, %v414_v7 }
 0x1b7   :  { %590 = vrot.lane.b32.xlu0 %v4402_v6, %s5867_s13  ;;  %579 = vmatpush.msrb.mxu3 %v4408_v13  ;;  %v3794_v15 = vpack.i.bf16 %v4410_v14, %v4408_v13  ;;  %v489_v13 = vld [vmem:[%s5900_s3 + $0x10] sm:$0xff] }
 0x1b8   :  { %596 = vrot.lane.b32.xlu1 %v4406_v12, %s5865_s11  ;;  %500 = vrot.lane.b32.xlu2 %v4406_v12, %s5863_s12  ;;  %s5895_s12 = sld [smem:[#allocation11_spill]] }
 0x1b9   :  { %580 = vmatpush.msrb.mxu3 %v4410_v14 }
 0x1bc   :  { %v452_v18 = vpop.f32.mrf.mxu2  ;;  %v481_v19 = vpop.f32.mrf.mxu3 }
 0x1bd   :  { %v4422_v20 = vadd.f32 %v452_v18, %v413_v3  ;;  %v4445_v30 = vadd.f32 %v481_v19, %v414_v7  ;;  %v4561_v18 = vld [vmem:[%s5899_s10] ss:$0 sm:$0xff]  ;;  %s5902_s10 = sld [smem:[#allocation15_spill]] }
 0x1be   :  { %v105_v24 = vld [vmem:[%s5895_s12] sm:$0xff]  ;;  %v106_v38 = vld [vmem:[%s5895_s12 + $0x8] sm:$0xff]  ;;  %v107_v45 = vld [vmem:[%s5895_s12 + $0x10] sm:$0xff] }
 0x1bf   :  { %797 = vrot.lane.b32.xlu0 %v4422_v20, %s5865_s11  ;;  %3538 = vmatmul.msk.f32.vlgmr.msra.gmra.mxu1 %vm141_vm0, %v105_v24  ;;  %v121_v42 = vadd.f32 %v113_v37, %v105_v24  ;;  %v122_v31 = vadd.f32 %v114_v44, %v106_v38  ;;  %v123_v47 = vadd.f32 %v115_v46, %v107_v45  ;;  %v108_v48 = vld [vmem:[%s5895_s12 + $0x18] sm:$0xff]  ;;  %v109_v51 = vld [vmem:[%s5895_s12 + $0x20] sm:$0xff]  ;;  %v110_v54 = vld [vmem:[%s5895_s12 + $0x28] sm:$0xff] }
 0x1c0   :  { %594 = vrot.lane.b32.xlu2 %v4402_v6, %s5865_s11  ;;  %v124_v50 = vadd.f32 %v116_v49, %v108_v48  ;;  %v125_v53 = vadd.f32 %v117_v52, %v109_v51  ;;  %v126_v56 = vadd.f32 %v118_v55, %v110_v54  ;;  %v111_v57 = vld [vmem:[%s5895_s12 + $0x30] sm:$0xff]  ;;  %v112_v32 = vld [vmem:[%s5895_s12 + $0x38] sm:$0xff] }
 0x1c1   :  { %3530 = vmatmul.msk.f32.vlgmr.msra.gmra.mxu0 %vm141_vm0, %v121_v42  ;;  %v127_v58 = vadd.f32 %v119_v41, %v111_v57  ;;  %v128_v43 = vadd.f32 %v120_v60, %v112_v32 }
 0x1c4   :  { %v455_v25 = vpop.f32.mrf.mxu2  ;;  %v484_v27 = vpop.f32.mrf.mxu3 }
 0x1c5   :  { %v4441_v28 = vadd.f32 %v455_v25, %v413_v3  ;;  %v4443_v29 = vadd.f32 %v484_v27, %v414_v7 }
 0x1c7   :  { %782 = vmatpush.msrb.mxu1 %v4443_v29  ;;  %799 = vrot.lane.b32.xlu1 %v4441_v28, %s5865_s11  ;;  %v3799_v34 = vpack.i.bf16 %v4445_v30, %v4443_v29 }
 0x1c8   :  { %592 = vrot.lane.b32.xlu2 %v4406_v12, %s5867_s13  ;;  %3539 = vmatmul.msk.f32.gmra.mxu1 %vm141_vm0, %v106_v38 }
 0x1c9   :  { %783 = vmatpush.msrb.mxu1 %v4445_v30  ;;  %3531 = vmatmul.msk.f32.gmra.mxu0 %vm141_vm0, %v122_v31 }
 0x1cf   :  { %795 = vrot.lane.b32.xlu1 %v4441_v28, %s5897_s2 }
 0x1d0   :  { %793 = vrot.lane.b32.xlu2 %v4422_v20, %s5897_s2  ;;  %3540 = vmatmul.msk.f32.gmra.mxu1 %vm141_vm0, %v107_v45 }
 0x1d1   :  { %3532 = vmatmul.msk.f32.gmra.mxu0 %vm141_vm0, %v123_v47 }
 0x1d8   :  { %705 = vrot.lane.b32.xlu2 %v4441_v28, %s5898_s28  ;;  %3541 = vmatmul.msk.f32.gmra.mxu1 %vm141_vm0, %v108_v48 }
 0x1d9   :  { %3533 = vmatmul.msk.f32.gmra.mxu0 %vm141_vm0, %v124_v50 }
 0x1e0   :  { %703 = vrot.lane.b32.xlu2 %v4422_v20, %s5898_s28  ;;  %3542 = vmatmul.msk.f32.gmra.mxu1 %vm141_vm0, %v109_v51 }
 0x1e1   :  { %3534 = vmatmul.msk.f32.gmra.mxu0 %vm141_vm0, %v125_v53 }
 0x1e8   :  { %3543 = vmatmul.msk.f32.gmra.mxu1 %vm141_vm0, %v110_v54 }
 0x1e9   :  { %3535 = vmatmul.msk.f32.gmra.mxu0 %vm141_vm0, %v126_v56 }
 0x1f0   :  { %3544 = vmatmul.msk.f32.gmra.mxu1 %vm141_vm0, %v111_v57 }
 0x1f1   :  { %3536 = vmatmul.msk.f32.gmra.mxu0 %vm141_vm0, %v127_v58 }
 0x1f8   :  { %3545 = vmatmul.msk.f32.gmra.mxu1 %vm141_vm0, %v112_v32 }
 0x1f9   :  { %3537 = vmatmul.msk.f32.gmra.mxu0 %vm141_vm0, %v128_v43 }
 0x212   :  { %v501_v59 = vpop.permute.xlu2 %500 }
 0x213   :  { %3554 = vmatpush.xpose.msk.msrb.mxu2 %vm502_vm14, %v501_v59 }
 0x21a   :  { %v595_v61 = vpop.permute.xlu2 %594 }
 0x221   :  { %v499_v62 = vpop.permute.xlu0 %498 }
 0x222   :  { %v593_v63 = vpop.permute.xlu2 %592  ;;  %3555 = vmatpush.xpose.msk.msrb.mxu2 %vm502_vm14, %v499_v62 }
 0x225   :  { %3556 = vmatmul.msk.f32.vlgmr.msrb.gmra.mxu2 %vm502_vm14, %v4402_v6 }
 0x229   :  { %v591_v3 = vpop.permute.xlu0 %590 }
 0x22a   :  { %v597_v0 = vpop.permute.xlu1 %596  ;;  %v794_v1 = vpop.permute.xlu2 %793 }
 0x22b   :  { %3560 = vmatpush.xpose.msk.msra.mxu2 %vm502_vm14, %v597_v0 }
 0x22d   :  { %3557 = vmatmul.msk.f32.gmra.mxu2 %vm502_vm14, %v4406_v12 }
 0x22f   :  { %3561 = vmatpush.xpose.msk.msra.mxu2 %vm502_vm14, %v595_v61 }
 0x231   :  { %v798_v6 = vpop.permute.xlu0 %797 }
 0x232   :  { %v706_v2 = vpop.permute.xlu2 %705 }
 0x233   :  { %3566 = vmatpush.xpose.msk.msrb.mxu0 %vm502_vm14, %v706_v2 }
 0x235   :  { %3562 = vmatmul.msk.f32.vlgmr.msra.gmra.mxu2 %vm502_vm14, %v591_v3 }
 0x239   :  { %v800_v4 = vpop.permute.xlu1 %799 }
 0x23a   :  { %v704_v5 = vpop.permute.xlu2 %703  ;;  %3572 = vmatpush.xpose.msk.msrb.mxu2 %vm502_vm14, %v800_v4 }
 0x23b   :  { %3567 = vmatpush.xpose.msk.msrb.mxu0 %vm502_vm14, %v704_v5  ;;  %v494_v5 = vld [vmem:[%s5900_s3 + $0x38] sm:$0xff] }
 0x23d   :  { %3563 = vmatmul.msk.f32.gmra.mxu2 %vm502_vm14, %v593_v63 }
 0x23e   :  { %3568 = vmatmul.msk.f32.vlgmr.msrb.gmra.mxu0 %vm502_vm14, %v4422_v20  ;;  %3573 = vmatpush.xpose.msk.msrb.mxu2 %vm502_vm14, %v798_v6  ;;  %v183_v9 = vpop.f32.mrf.mxu0  ;;  %v493_v6 = vld [vmem:[%s5900_s3 + $0x30] sm:$0xff] }
 0x23f   :  { %v4577_v23 = vadd.f32 %v4561_v18, %v183_v9  ;;  %930 = vmatpush.msra.mxu0 %v494_v5 }
 0x241   :  { %v796_v7 = vpop.permute.xlu1 %795  ;;  %931 = vmatpush.msra.mxu0 %v493_v6 }
 0x245   :  { %3574 = vmatmul.msk.f32.vlgmr.msrb.gmra.mxu2 %vm502_vm14, %v794_v1 }
 0x246   :  { %3569 = vmatmul.msk.f32.gmra.mxu0 %vm502_vm14, %v4441_v28  ;;  %v186_v10 = vpop.f32.mrf.mxu0 }
 0x247   :  { %v4572_v22 = vadd.f32 %v4561_v18, %v186_v10  ;;  %v492_v10 = vld [vmem:[%s5900_s3 + $0x28] sm:$0xff] }
 0x248   :  { %932 = vmatpush.msra.mxu0 %v492_v10 }
 0x24d   :  { %3575 = vmatmul.msk.f32.gmra.mxu2 %vm502_vm14, %v796_v7 }
 0x24e   :  { %v189_v12 = vpop.f32.mrf.mxu0 }
 0x24f   :  { %v4567_v21 = vadd.f32 %v4561_v18, %v189_v12  ;;  %v491_v12 = vld [vmem:[%s5900_s3 + $0x20] sm:$0xff] }
 0x250   :  { %933 = vmatpush.msra.mxu0 %v491_v12  ;;  %v260_v12 = vpop.f32.mrf.mxu1 }
 0x256   :  { %v192_v19 = vpop.f32.mrf.mxu0 }
 0x257   :  { %v4564_v20 = vadd.f32 %v4561_v18, %v192_v19 }
 0x259   :  { %3586 = vmatpush.xpose.msk.msra.mxu2 %vm502_vm14, %v4564_v20 }
 0x25d   :  { %3587 = vmatpush.xpose.msk.msra.mxu2 %vm502_vm14, %v4567_v21 }
 0x25e   :  { %v4587_v44 = vpop.f32.mrf.mxu0 }
 0x261   :  { %3588 = vmatpush.xpose.msk.msra.mxu2 %vm502_vm14, %v4572_v22 }
 0x265   :  { %3589 = vmatpush.xpose.msk.msra.mxu2 %vm502_vm14, %v4577_v23 }
 0x266   :  { %v4589_v47 = vpop.f32.mrf.mxu0 }
 0x26e   :  { %v201_v53 = vpop.f32.mrf.mxu0 }
 0x276   :  { %v204_v59 = vpop.f32.mrf.mxu0 }
 0x2a8   :  { %v528_v24 = vpop.f32.mrf.mxu2 }
 0x2a9   :  { %v534_v25 = vmul.f32 0.17677669, %v528_v24 }
 0x2ab   :  { %v537_v27 = vsel %vm536_vm15, %v534_v25, -inf }
 0x2ac   :  { %538 = vmax.xlane.f32.xlu0 %v537_v27  ;;  %v490_v27 = vld [vmem:[%s5900_s3 + $0x18] sm:$0xff] }
 0x2ad   :  { %934 = vmatpush.msra.mxu0 %v490_v27  ;;  %v263_v27 = vpop.f32.mrf.mxu1 }
 0x2af   :  { %935 = vmatpush.msra.mxu0 %v489_v13 }
 0x2b0   :  { %v531_v28 = vpop.f32.mrf.mxu2 }
 0x2b1   :  { %v535_v33 = vmul.f32 0.17677669, %v531_v28  ;;  %v4641_v28 = vadd.f32 %v4561_v18, %v204_v59 }
 0x2b3   :  { %v540_v35 = vsel %vm536_vm15, %v535_v33, -inf }
 0x2b4   :  { %541 = vmax.xlane.f32.xlu1 %v540_v35 }
 0x2b8   :  { %v623_v36 = vpop.f32.mrf.mxu2 }
 0x2b9   :  { %v629_v37 = vmul.f32 0.17677669, %v623_v36  ;;  %v4649_v36 = vadd.f32 %v4561_v18, %v201_v53 }
 0x2bb   :  { %v631_v38 = vsel %vm536_vm15, %v629_v37, -inf  ;;  %v732_v1 = vpop.f32.mrf.mxu0 }
 0x2bc   :  { %632 = vmax.xlane.f32.xlu2 %v631_v38  ;;  %v4614_v7 = vmul.f32 0.17677669, %v732_v1  ;;  %v4661_v38 = vadd.f32 %v4561_v18, %v4587_v44 }
 0x2be   :  { %v740_v19 = vsel %vm536_vm15, %v4614_v7, -inf }
 0x2c0   :  { %v626_v39 = vpop.f32.mrf.mxu2 }
 0x2c1   :  { %v630_v40 = vmul.f32 0.17677669, %v626_v39 }
 0x2c3   :  { %v634_v42 = vsel %vm536_vm15, %v630_v40, -inf }
 0x2c4   :  { %635 = vmax.xlane.f32.xlu0 %v634_v42 }
 0x2c8   :  { %v826_v43 = vpop.f32.mrf.mxu2 }
 0x2c9   :  { %v832_v63 = vmul.f32 0.17677669, %v826_v43 }
 0x2cb   :  { %v834_v2 = vsel %vm536_vm15, %v832_v63, -inf }
 0x2d0   :  { %v829_v4 = vpop.f32.mrf.mxu2 }
 0x2d1   :  { %v833_v9 = vmul.f32 0.17677669, %v829_v4 }
 0x2d3   :  { %v837_v24 = vsel %vm536_vm15, %v833_v9, -inf }
 0x31f   :  { %v539_v45 = vpop.xlane.xlu0 %538 }
 0x320   :  { %v543_v31 = vsub.f32 %v534_v25, %v539_v45  ;;  %v735_v25 = vpop.f32.mrf.mxu0 }
 0x321   :  { %v4635_v14 = vmul.f32 0.17677669, %v735_v25 }
 0x322   :  { %v545_v46 = vmul.f32 1.442695, %v543_v31 }
 0x323   :  { %v743_v35 = vsel %vm536_vm15, %v4635_v14, -inf }
 0x324   :  { %3910 = vpow2.f32 %v545_v46 }
 0x327   :  { %v542_v48 = vpop.xlane.xlu1 %541 }
 0x328   :  { %v544_v49 = vsub.f32 %v535_v33, %v542_v48  ;;  %v487_v33 = vld [vmem:[%s5900_s3] sm:$0xff] }
 0x32a   :  { %v4591_v50 = vpop.eup %3910  ;;  %v547_v51 = vmul.f32 1.442695, %v544_v49 }
 0x32b   :  { %v549_v52 = vsel %vm536_vm15, %v4591_v50, 0.0 }
 0x32c   :  { %3912 = vpow2.f32 %v547_v51  ;;  %550 = vadd.xlane.f32.xlu1 %v549_v52 }
 0x32f   :  { %v633_v54 = vpop.xlane.xlu2 %632 }
 0x330   :  { %v637_v55 = vsub.f32 %v629_v37, %v633_v54  ;;  %v4655_v37 = vadd.f32 %v4561_v18, %v4589_v47 }
 0x332   :  { %v4595_v56 = vpop.eup %3912  ;;  %v639_v57 = vmul.f32 1.442695, %v637_v55 }
 0x333   :  { %v552_v41 = vsel %vm536_vm15, %v4595_v56, 0.0 }
 0x334   :  { %3914 = vpow2.f32 %v639_v57  ;;  %553 = vadd.xlane.f32.xlu0 %v552_v41 }
 0x337   :  { %v636_v58 = vpop.xlane.xlu0 %635 }
 0x338   :  { %v638_v32 = vsub.f32 %v630_v40, %v636_v58 }
 0x33a   :  { %v4599_v60 = vpop.eup %3914  ;;  %v641_v61 = vmul.f32 1.442695, %v638_v32 }
 0x33b   :  { %v643_v62 = vsel %vm536_vm15, %v4599_v60, 0.0 }
 0x33c   :  { %3916 = vpow2.f32 %v641_v61  ;;  %644 = vadd.xlane.f32.xlu1 %v643_v62 }
 0x342   :  { %v4603_v0 = vpop.eup %3916 }
 0x343   :  { %v646_v3 = vsel %vm536_vm15, %v4603_v0, 0.0 }
 0x344   :  { %835 = vmax.xlane.f32.xlu1 %v834_v2  ;;  %647 = vadd.xlane.f32.xlu2 %v646_v3 }
 0x348   :  { %3795 = vrot.lane.b32.xlu0 %v3794_v15, %s5897_s2  ;;  %v488_v15 = vld [vmem:[%s5900_s3 + $0x8] sm:$0xff] }
 0x349   :  { %936 = vmatpush.msra.mxu0 %v488_v15 }
 0x34b   :  { %937 = vmatpush.msra.mxu0 %v487_v33 }
 0x34c   :  { %741 = vmax.xlane.f32.xlu1 %v740_v19  ;;  %838 = vmax.xlane.f32.xlu2 %v837_v24 }
 0x34d   :  { %3602 = vmatpush.xpose.msk.msrb.mxu0 %vm502_vm14, %v4641_v28 }
 0x351   :  { %3603 = vmatpush.xpose.msk.msrb.mxu0 %vm502_vm14, %v4649_v36 }
 0x354   :  { %744 = vmax.xlane.f32.xlu2 %v743_v35  ;;  %v266_v35 = vpop.f32.mrf.mxu1 }
 0x355   :  { %3604 = vmatpush.xpose.msk.msrb.mxu0 %vm502_vm14, %v4655_v37 }
 0x359   :  { %3605 = vmatpush.xpose.msk.msrb.mxu0 %vm502_vm14, %v4661_v38 }
 0x365   :  { %3800 = vrot.lane.b32.xlu1 %v3799_v34, %s5897_s2 }
 0x39f   :  { %v551_v39 = vpop.xlane.xlu1 %550 }
 0x3a0   :  { %3918 = vrcp.f32 %v551_v39 }
 0x3a6   :  { %v3919_v40 = vpop.eup %3918 }
 0x3a7   :  { %v554_v42 = vpop.xlane.xlu0 %553  ;;  %v557_v45 = vmul.f32 %v3919_v40, %v4591_v50 }
 0x3a8   :  { %3920 = vrcp.f32 %v554_v42  ;;  %v3879_v42 = vld [vmem:[%s5902_s10] ss:$0 sm:$0xff] }
 0x3a9   :  { %3558 = vmatmul.msk.f32.vlgmr.msrb.gmra.mxu3 %vm536_vm15, %v557_v45 }
 0x3ae   :  { %v3921_v18 = vpop.eup %3920 }
 0x3af   :  { %v645_v44 = vpop.xlane.xlu1 %644  ;;  %v558_v31 = vmul.f32 %v3921_v18, %v4595_v56 }
 0x3b0   :  { %3922 = vrcp.f32 %v645_v44  ;;  %v269_v44 = vpop.f32.mrf.mxu1 }
 0x3b1   :  { %3559 = vmatmul.msk.f32.gmra.mxu3 %vm536_vm15, %v558_v31  ;;  %v4695_v31 = vadd.f32 %v3879_v42, %v266_v35 }
 0x3b6   :  { %v3923_v48 = vpop.eup %3922 }
 0x3b7   :  { %v836_v46 = vpop.xlane.xlu1 %835  ;;  %v648_v47 = vpop.xlane.xlu2 %647  ;;  %v651_v51 = vmul.f32 %v3923_v48, %v4599_v60 }
 0x3b8   :  { %v840_v29 = vsub.f32 %v832_v63, %v836_v46  ;;  %v4697_v46 = vadd.f32 %v3879_v42, %v269_v44  ;;  %v272_v48 = vpop.f32.mrf.mxu1 }
 0x3ba   :  { %v842_v30 = vmul.f32 1.442695, %v840_v29  ;;  %v3796_v34 = vpop.permute.xlu0 %3795 }
 0x3bb   :  { %v3797_v49 = vunpack.i.l.bf16 %v3796_v34  ;;  %v3798_v50 = vunpack.i.h.bf16 %v3796_v34 }
 0x3bc   :  { %3924 = vpow2.f32 %v842_v30  ;;  %v4702_v30 = vadd.f32 %v3879_v42, %v260_v12 }
 0x3bd   :  { %3926 = vrcp.f32 %v648_v47  ;;  %681 = vmatpush.msra.mxu3 %v3797_v49  ;;  %v4699_v47 = vadd.f32 %v3879_v42, %v263_v27 }
 0x3bf   :  { %v839_v52 = vpop.xlane.xlu2 %838  ;;  %682 = vmatpush.msra.mxu3 %v3798_v50  ;;  %v742_v53 = vpop.xlane.xlu1 %741 }
 0x3c0   :  { %v841_v54 = vsub.f32 %v833_v9, %v839_v52  ;;  %3564 = vmatmul.msk.f32.vlgmr.msra.gmra.mxu3 %vm536_vm15, %v651_v51  ;;  %v746_v41 = vsub.f32 %v4614_v7, %v742_v53  ;;  %v275_v50 = vpop.f32.mrf.mxu1  ;;  %v1066_v52 = vld [vmem:[%s5835_s8 + $0x38] sm:$0xff]  ;;  %v1065_v53 = vld [vmem:[%s5835_s8 + $0x30] sm:$0xff] }
 0x3c1   :  { %1091 = vmatpush.msra.mxu1 %v1066_v52 }
 0x3c2   :  { %v3925_v55 = vpop.eup %3924  ;;  %v844_v56 = vmul.f32 1.442695, %v841_v54  ;;  %v748_v32 = vmul.f32 1.442695, %v746_v41  ;;  %v1062_v41 = vld [vmem:[%s5835_s8 + $0x18] sm:$0xff] }
 0x3c3   :  { %v3927_v57 = vpop.eup %3926  ;;  %v846_v58 = vsel %vm536_vm15, %v3925_v55, 0.0  ;;  %1092 = vmatpush.msra.mxu1 %v1065_v53 }
 0x3c4   :  { %847 = vadd.xlane.f32.xlu0 %v846_v58  ;;  %3928 = vpow2.f32 %v844_v56  ;;  %v652_v59 = vmul.f32 %v3927_v57, %v4603_v0  ;;  %v1063_v56 = vld [vmem:[%s5835_s8 + $0x20] sm:$0xff]  ;;  %v1061_v58 = vld [vmem:[%s5835_s8 + $0x10] sm:$0xff] }
 0x3c5   :  { %3930 = vpow2.f32 %v748_v32 }
 0x3c7   :  { %v745_v43 = vpop.xlane.xlu2 %744 }
 0x3c8   :  { %3565 = vmatmul.msk.f32.gmra.mxu3 %vm536_vm15, %v652_v59  ;;  %v747_v61 = vsub.f32 %v4635_v14, %v745_v43  ;;  %v278_v54 = vpop.f32.mrf.mxu1  ;;  %v1060_v59 = vld [vmem:[%s5835_s8 + $0x8] sm:$0xff] }
 0x3ca   :  { %v3929_v60 = vpop.eup %3928  ;;  %v750_v63 = vmul.f32 1.442695, %v747_v61  ;;  %v1059_v61 = vld [vmem:[%s5835_s8] sm:$0xff] }
 0x3cb   :  { %v849_v62 = vsel %vm536_vm15, %v3929_v60, 0.0  ;;  %v3931_v1 = vpop.eup %3930 }
 0x3cc   :  { %850 = vadd.xlane.f32.xlu2 %v849_v62  ;;  %3932 = vpow2.f32 %v750_v63  ;;  %v752_v2 = vsel %vm536_vm15, %v3931_v1, 0.0  ;;  %v4738_v62 = vadd.f32 %v3879_v42, %v278_v54 }
 0x3d0   :  { %v281_v32 = vpop.f32.mrf.mxu1 }
 0x3d2   :  { %v3933_v0 = vpop.eup %3932 }
 0x3d3   :  { %v755_v6 = vsel %vm536_vm15, %v3933_v0, 0.0 }
 0x3d4   :  { %753 = vadd.xlane.f32.xlu2 %v752_v2  ;;  %v273_v2 = vadd.f32 %v3879_v42, %v272_v48 }
 0x3d7   :  { %v3801_v3 = vpop.permute.xlu1 %3800 }
 0x3d8   :  { %v3802_v4 = vunpack.i.l.bf16 %v3801_v3  ;;  %v3803_v5 = vunpack.i.h.bf16 %v3801_v3 }
 0x3da   :  { %884 = vmatpush.msrb.mxu3 %v3802_v4 }
 0x3dc   :  { %885 = vmatpush.msrb.mxu3 %v3803_v5  ;;  %756 = vadd.xlane.f32.xlu2 %v755_v6 }
 0x3de   :  { %1204 = vmatpush.msra.mxu3 %v4697_v46 }
 0x3e0   :  { %1205 = vmatpush.msra.mxu3 %v4695_v31 }
 0x3e2   :  { %1206 = vmatpush.msra.mxu3 %v4699_v47 }
 0x3e4   :  { %1207 = vmatpush.msra.mxu3 %v4702_v30 }
 0x42c   :  { %v582_v7 = vpop.f32.mrf.mxu3 }
 0x42d   :  { %588 = vst.msk [vmem:[#allocation2] sm:$0xff] %vm502_vm14, %v582_v7  ;;  %v3880_v7 = vld [vmem:[%s5836_s7] ss:$0 sm:$0xff] }
 0x434   :  { %v585_v9 = vpop.f32.mrf.mxu3 }
 0x435   :  { %589 = vst.msk [vmem:[#allocation2 + $0x8] sm:$0xff] %vm502_vm14, %v585_v9 }
 0x437   :  { %v848_v10 = vpop.xlane.xlu0 %847 }
 0x438   :  { %3934 = vrcp.f32 %v848_v10 }
 0x43e   :  { %v3935_v19 = vpop.eup %3934 }
 0x43f   :  { %v854_v24 = vmul.f32 %v3935_v19, %v3925_v55  ;;  %v851_v25 = vpop.xlane.xlu2 %850  ;;  %v1064_v55 = vld [vmem:[%s5835_s8 + $0x28] sm:$0xff] }
 0x440   :  { %3936 = vrcp.f32 %v851_v25  ;;  %1093 = vmatpush.msra.mxu1 %v1064_v55 }
 0x441   :  { %3576 = vmatmul.msk.f32.vlgmr.msrb.gmra.mxu3 %vm536_vm15, %v854_v24 }
 0x442   :  { %1094 = vmatpush.msra.mxu1 %v1063_v56 }
 0x443   :  { %v684_v13 = vpop.f32.mrf.mxu3 }
 0x444   :  { %692 = vrot.lane.b32.xlu1 %v684_v13, %s5901_s4  ;;  %1095 = vmatpush.msra.mxu1 %v1062_v41 }
 0x446   :  { %v3937_v14 = vpop.eup %3936  ;;  %1096 = vmatpush.msra.mxu1 %v1061_v58 }
 0x447   :  { %v754_v15 = vpop.xlane.xlu2 %753  ;;  %v855_v33 = vmul.f32 %v3937_v14, %v3929_v60  ;;  %v4732_v60 = vadd.f32 %v3879_v42, %v281_v32 }
 0x448   :  { %3938 = vrcp.f32 %v754_v15  ;;  %1097 = vmatpush.msra.mxu1 %v1060_v59 }
 0x449   :  { %3577 = vmatmul.msk.f32.gmra.mxu3 %vm536_vm15, %v855_v33 }
 0x44a   :  { %1098 = vmatpush.msra.mxu1 %v1059_v61 }
 0x44b   :  { %v687_v39 = vpop.f32.mrf.mxu3 }
 0x44c   :  { %694 = vrot.lane.b32.xlu2 %v687_v39, %s5901_s4 }
 0x44e   :  { %v3939_v40 = vpop.eup %3938 }
 0x44f   :  { %v757_v45 = vpop.xlane.xlu2 %756  ;;  %v760_v18 = vmul.f32 %v3939_v40, %v3931_v1  ;;  %v276_v1 = vadd.f32 %v3879_v42, %v275_v50 }
 0x450   :  { %3940 = vrcp.f32 %v757_v45 }
 0x451   :  { %3570 = vmatmul.msk.f32.vlgmr.msrb.gmra.mxu1 %vm536_vm15, %v760_v18  ;;  %v4746_v5 = vpack.i.bf16 %v273_v2, %v276_v1 }
 0x452   :  { %1426 = vmatpush.msrb.mxu1 %v4732_v60 }
 0x454   :  { %1427 = vmatpush.msrb.mxu1 %v4738_v62 }
 0x456   :  { %v3941_v29 = vpop.eup %3940  ;;  %1428 = vmatpush.msrb.mxu1 %v276_v1 }
 0x457   :  { %v761_v34 = vmul.f32 %v3941_v29, %v3933_v0 }
 0x458   :  { %1429 = vmatpush.msrb.mxu1 %v273_v2 }
 0x459   :  { %3571 = vmatmul.msk.f32.gmra.mxu1 %vm536_vm15, %v761_v34 }
 0x4a6   :  { %v695_v49 = vpop.permute.xlu2 %694 }
 0x4a7   :  { %700 = vst.msk [vmem:[#allocation2 + $0x8] sm:$0xff] %vm698_vm1, %v695_v49 }
 0x4ae   :  { %v904_v63 = vld [vmem:[#allocation2 + $0x8] sm:$0xff] }
 0x4b6   :  { %v693_v51 = vpop.permute.xlu1 %692 }
 0x4b7   :  { %699 = vst.msk [vmem:[#allocation2] sm:$0xff] %vm698_vm1, %v693_v51 }
 0x4be   :  { %v903_v57 = vld [vmem:[#allocation2] sm:$0xff] }
 0x4bf   :  { %3578 = vmatmul.msk.f32.vlgmr.msra.gmra.mxu0 %vm141_vm0, %v903_v57 }
 0x4c4   :  { %v887_v43 = vpop.f32.mrf.mxu3 }
 0x4c5   :  { %895 = vrot.lane.b32.xlu1 %v887_v43, %s5901_s4 }
 0x4c7   :  { %3579 = vmatmul.msk.f32.gmra.mxu0 %vm141_vm0, %v904_v63 }
 0x4cc   :  { %v890_v3 = vpop.f32.mrf.mxu3 }
 0x4cd   :  { %897 = vrot.lane.b32.xlu0 %v890_v3, %s5901_s4 }
 0x4ce   :  { %v785_v4 = vpop.f32.mrf.mxu1 }
 0x4cf   :  { %791 = vst.msk [vmem:[#allocation2 + $0x10] sm:$0xff] %vm502_vm14, %v785_v4 }
 0x4d6   :  { %v788_v0 = vpop.f32.mrf.mxu1 }
 0x4d7   :  { %792 = vst.msk [vmem:[#allocation2 + $0x18] sm:$0xff] %vm502_vm14, %v788_v0 }
 0x537   :  { %v896_v6 = vpop.permute.xlu1 %895 }
 0x538   :  { %901 = vst.msk [vmem:[#allocation2 + $0x10] sm:$0xff] %vm698_vm1, %v896_v6 }
 0x53c   :  { %v939_v9 = vpop.f32.mrf.mxu0 }
 0x53d   :  { %v940_v10 = vadd.f32 %v3880_v7, %v939_v9 }
 0x53f   :  { %v4753_v12 = vadd.f32 %v940_v10, %v4253_v8  ;;  %v905_v19 = vld [vmem:[#allocation2 + $0x10] sm:$0xff]  ;;  %v898_v24 = vpop.permute.xlu0 %897 }
 0x540   :  { %3580 = vmatmul.msk.f32.gmra.mxu0 %vm141_vm0, %v905_v19  ;;  %902 = vst.msk [vmem:[#allocation2 + $0x18] sm:$0xff] %vm698_vm1, %v898_v24  ;;  %v4808_v19 = vld [vmem:[%s5837_s22] ss:$0 sm:$0xff] }
 0x541   :  { %v957_v25 = vsel %vm141_vm0, %v4753_v12, 0.0 }
 0x542   :  { %958 = vadd.xlane.f32.xlu1 %v957_v25 }
 0x544   :  { %v942_v27 = vpop.f32.mrf.mxu0 }
 0x545   :  { %v943_v13 = vadd.f32 %v3880_v7, %v942_v27 }
 0x547   :  { %v4760_v14 = vadd.f32 %v943_v13, %v4267_v16  ;;  %v906_v15 = vld [vmem:[#allocation2 + $0x18] sm:$0xff] }
 0x548   :  { %3581 = vmatmul.msk.f32.gmra.mxu0 %vm141_vm0, %v906_v15 }
 0x549   :  { %v960_v8 = vsel %vm141_vm0, %v4760_v14, 0.0 }
 0x54a   :  { %961 = vadd.xlane.f32.xlu2 %v960_v8 }
 0x5b5   :  { %v959_v33 = vpop.xlane.xlu1 %958 }
 0x5b6   :  { %v969_v35 = vmul.f32 %v959_v33, %v4275_v26 }
 0x5b8   :  { %v973_v39 = vsub.f32 %v4753_v12, %v969_v35  ;;  %v4817_v35 = vld [vmem:[%s5838_s23] ss:$0 sm:$0xff] }
 0x5ba   :  { %v977_v40 = vmul.f32 %v973_v39, %v973_v39 }
 0x5bc   :  { %v981_v42 = vsel %vm141_vm0, %v977_v40, 0.0 }
 0x5bd   :  { %v962_v45 = vpop.xlane.xlu2 %961  ;;  %v945_v18 = vpop.f32.mrf.mxu0  ;;  %982 = vadd.xlane.f32.xlu0 %v981_v42 }
 0x5be   :  { %v970_v16 = vmul.f32 %v962_v45, %v4275_v26  ;;  %v946_v34 = vadd.f32 %v3880_v7, %v945_v18 }
 0x5c0   :  { %v4770_v44 = vsub.f32 %v4760_v14, %v970_v16  ;;  %v4776_v51 = vadd.f32 %v946_v34, %v4258_v11 }
 0x5c2   :  { %v978_v29 = vmul.f32 %v4770_v44, %v4770_v44  ;;  %v963_v54 = vsel %vm141_vm0, %v4776_v51, 0.0 }
 0x5c4   :  { %v984_v48 = vsel %vm141_vm0, %v978_v29, 0.0 }
 0x5c5   :  { %985 = vadd.xlane.f32.xlu1 %v984_v48  ;;  %v948_v49 = vpop.f32.mrf.mxu0 }
 0x5c6   :  { %v949_v50 = vadd.f32 %v3880_v7, %v948_v49 }
 0x5c8   :  { %v4779_v52 = vadd.f32 %v949_v50, %v4269_v17 }
 0x5ca   :  { %v966_v53 = vsel %vm141_vm0, %v4779_v52, 0.0 }
 0x5cb   :  { %967 = vadd.xlane.f32.xlu2 %v966_v53 }
 0x5cd   :  { %964 = vadd.xlane.f32.xlu1 %v963_v54 }
 0x5e3   :  { %1227 = vrot.lane.b32.xlu2 %v4564_v20, %s5897_s2 }
 0x5eb   :  { %1221 = vrot.lane.b32.xlu2 %v4577_v23, %s5897_s2 }
 0x5f3   :  { %1449 = vrot.lane.b32.xlu2 %v4641_v28, %s5897_s2 }
 0x5fb   :  { %1443 = vrot.lane.b32.xlu2 %v4661_v38, %s5897_s2 }
 0x630   :  { %v983_v11 = vpop.xlane.xlu0 %982 }
 0x631   :  { %v993_v17 = vmul.f32 %v983_v11, %v4275_v26 }
 0x633   :  { %v997_v55 = vadd.f32 1e-05, %v993_v17 }
 0x635   :  { %3942 = vrsqrt.f32 %v997_v55  ;;  %vm1007_vm3 = vweird.f32 %v997_v55 }
 0x638   :  { %v986_v56 = vpop.xlane.xlu1 %985 }
 0x639   :  { %v994_v57 = vmul.f32 %v986_v56, %v4275_v26 }
 0x63b   :  { %v3943_v41 = vpop.eup %3942  ;;  %v998_v58 = vadd.f32 1e-05, %v994_v57 }
 0x63c   :  { %v1002_v59 = vmul.f32 %v3943_v41, %v997_v55  ;;  %vm1008_vm2 = vweird.f32 %v3943_v41 }
 0x63d   :  { %3944 = vrsqrt.f32 %v998_v58  ;;  %vm1009_vm4 = vmor %vm1007_vm3, %vm1008_vm2  ;;  %vm1017_vm6 = vweird.f32 %v998_v58 }
 0x63e   :  { %v1003_v32 = vmul.f32 %v3943_v41, %v1002_v59  ;;  %v968_v43 = vpop.xlane.xlu2 %967 }
 0x63f   :  { %v972_v63 = vmul.f32 %v968_v43, %v4275_v26 }
 0x640   :  { %v1004_v61 = vmul.f32 0.5, %v1003_v32  ;;  %v965_v1 = vpop.xlane.xlu1 %964 }
 0x641   :  { %v971_v2 = vmul.f32 %v965_v1, %v4275_v26  ;;  %v4798_v4 = vsub.f32 %v4779_v52, %v972_v63 }
 0x642   :  { %v1005_v3 = vsub.f32 1.5, %v1004_v61 }
 0x643   :  { %v3945_v0 = vpop.eup %3944  ;;  %v4801_v6 = vsub.f32 %v4776_v51, %v971_v2  ;;  %v980_v10 = vmul.f32 %v4798_v4, %v4798_v4 }
 0x644   :  { %v1006_v7 = vmul.f32 %v3943_v41, %v1005_v3  ;;  %v1012_v9 = vmul.f32 %v3945_v0, %v998_v58  ;;  %vm1018_vm5 = vweird.f32 %v3945_v0 }
 0x645   :  { %v979_v24 = vmul.f32 %v4801_v6, %v4801_v6  ;;  %v990_v13 = vsel %vm141_vm0, %v980_v10, 0.0  ;;  %vm1019_vm7 = vmor %vm1017_vm6, %vm1018_vm5 }
 0x646   :  { %v1010_v25 = vsel %vm1009_vm4, %v3943_v41, %v1006_v7  ;;  %v1013_v27 = vmul.f32 %v3945_v0, %v1012_v9  ;;  %991 = vadd.xlane.f32.xlu0 %v990_v13  ;;  %v1228_v8 = vpop.permute.xlu2 %1227  ;;  %v3883_v41 = vld [vmem:[%s5839_s9] ss:$0 sm:$0xff] }
 0x647   :  { %v1041_v15 = vmul.f32 %v1010_v25, %v973_v39  ;;  %v987_v33 = vsel %vm141_vm0, %v979_v24, 0.0  ;;  %3594 = vmatpush.xpose.msk.msrb.mxu2 %vm502_vm14, %v1228_v8 }
 0x648   :  { %v1014_v40 = vmul.f32 0.5, %v1013_v27  ;;  %988 = vadd.xlane.f32.xlu1 %v987_v33 }
 0x649   :  { %v1048_v42 = vmul.f32 %v4808_v19, %v1041_v15 }
 0x64a   :  { %v1015_v45 = vsub.f32 1.5, %v1014_v40 }
 0x64b   :  { %v1055_v18 = vadd.f32 %v4817_v35, %v1048_v42 }
 0x64c   :  { %v1016_v39 = vmul.f32 %v3945_v0, %v1015_v45 }
 0x64d   :  { %3582 = vmatmul.msk.f32.vlgmr.msra.gmra.mxu1 %vm141_vm0, %v1055_v18 }
 0x64e   :  { %v1020_v16 = vsel %vm1019_vm7, %v3945_v0, %v1016_v39  ;;  %v1222_v9 = vpop.permute.xlu2 %1221 }
 0x64f   :  { %v1042_v29 = vmul.f32 %v1020_v16, %v4770_v44 }
 0x651   :  { %v1049_v34 = vmul.f32 %v4808_v19, %v1042_v29 }
 0x653   :  { %v1056_v48 = vadd.f32 %v4817_v35, %v1049_v34 }
 0x655   :  { %3583 = vmatmul.msk.f32.gmra.mxu1 %vm141_vm0, %v1056_v48 }
 0x656   :  { %v1450_v42 = vpop.permute.xlu2 %1449 }
 0x65a   :  { %1223 = vrot.lane.b32.xlu0 %v4572_v22, %s5897_s2 }
 0x65e   :  { %v1444_v34 = vpop.permute.xlu2 %1443 }
 0x661   :  { %1225 = vrot.lane.b32.xlu1 %v4567_v21, %s5897_s2 }
 0x6b9   :  { %v992_v49 = vpop.xlane.xlu0 %991 }
 0x6ba   :  { %v996_v50 = vmul.f32 %v992_v49, %v4275_v26 }
 0x6bb   :  { %v989_v53 = vpop.xlane.xlu1 %988 }
 0x6bc   :  { %v995_v54 = vmul.f32 %v989_v53, %v4275_v26  ;;  %v1000_v11 = vadd.f32 1e-05, %v996_v50 }
 0x6be   :  { %v999_v44 = vadd.f32 1e-05, %v995_v54  ;;  %3946 = vrsqrt.f32 %v1000_v11  ;;  %vm1037_vm12 = vweird.f32 %v1000_v11 }
 0x6c0   :  { %3948 = vrsqrt.f32 %v999_v44  ;;  %vm1027_vm10 = vweird.f32 %v999_v44 }
 0x6c4   :  { %v3947_v17 = vpop.eup %3946 }
 0x6c5   :  { %v1032_v56 = vmul.f32 %v3947_v17, %v1000_v11  ;;  %vm1038_vm9 = vweird.f32 %v3947_v17 }
 0x6c6   :  { %v3949_v55 = vpop.eup %3948  ;;  %vm1039_vm13 = vmor %vm1037_vm12, %vm1038_vm9 }
 0x6c7   :  { %v1022_v57 = vmul.f32 %v3949_v55, %v999_v44  ;;  %v1033_v58 = vmul.f32 %v3947_v17, %v1032_v56  ;;  %vm1028_vm8 = vweird.f32 %v3949_v55 }
 0x6c8   :  { %vm1029_vm11 = vmor %vm1027_vm10, %vm1028_vm8 }
 0x6c9   :  { %v1023_v59 = vmul.f32 %v3949_v55, %v1022_v57  ;;  %v1034_v32 = vmul.f32 0.5, %v1033_v58 }
 0x6ca   :  { %v1100_v43 = vpop.f32.mrf.mxu1 }
 0x6cb   :  { %v1024_v61 = vmul.f32 0.5, %v1023_v59  ;;  %v1101_v63 = vadd.f32 %v3883_v41, %v1100_v43  ;;  %v1035_v1 = vsub.f32 1.5, %v1034_v32 }
 0x6cc   :  { %v1224_v40 = vpop.permute.xlu0 %1223 }
 0x6cd   :  { %v1025_v2 = vsub.f32 1.5, %v1024_v61  ;;  %1217 = vrot.lane.b32.xlu0 %v1101_v63, %s5897_s2  ;;  %3590 = vmatmul.msk.f32.vlgmr.msra.gmra.mxu2 %vm502_vm14, %v1101_v63  ;;  %v1036_v3 = vmul.f32 %v3947_v17, %v1035_v1 }
 0x6cf   :  { %v1026_v0 = vmul.f32 %v3949_v55, %v1025_v2  ;;  %v1040_v13 = vsel %vm1039_vm13, %v3947_v17, %v1036_v3  ;;  %v4874_v3 = vpack.i.bf16 %v4695_v31, %v4697_v46  ;;  %v4885_v31 = vpack.i.bf16 %v4702_v30, %v4699_v47 }
 0x6d0   :  { %v1044_v33 = vmul.f32 %v1040_v13, %v4798_v4 }
 0x6d1   :  { %v1030_v7 = vsel %vm1029_vm11, %v3949_v55, %v1026_v0 }
 0x6d2   :  { %v1103_v10 = vpop.f32.mrf.mxu1  ;;  %v1043_v24 = vmul.f32 %v1030_v7, %v4801_v6  ;;  %v1051_v6 = vmul.f32 %v4808_v19, %v1044_v33 }
 0x6d3   :  { %v1104_v25 = vadd.f32 %v3883_v41, %v1103_v10  ;;  %v1226_v27 = vpop.permute.xlu1 %1225 }
 0x6d4   :  { %3595 = vmatpush.xpose.msk.msrb.mxu2 %vm502_vm14, %v1226_v27  ;;  %v1050_v15 = vmul.f32 %v4808_v19, %v1043_v24  ;;  %v1058_v45 = vadd.f32 %v4817_v35, %v1051_v6 }
 0x6d5   :  { %1219 = vrot.lane.b32.xlu1 %v1104_v25, %s5897_s2  ;;  %1447 = vrot.lane.b32.xlu0 %v4649_v36, %s5897_s2 }
 0x6d6   :  { %3591 = vmatmul.msk.f32.gmra.mxu2 %vm502_vm14, %v1104_v25  ;;  %v1057_v8 = vadd.f32 %v4817_v35, %v1050_v15 }
 0x6d8   :  { %3584 = vmatmul.msk.f32.gmra.mxu1 %vm141_vm0, %v1057_v8  ;;  %3596 = vmatpush.xpose.msk.msrb.mxu2 %vm502_vm14, %v1224_v40 }
 0x6dc   :  { %3597 = vmatpush.xpose.msk.msrb.mxu2 %vm502_vm14, %v1222_v9 }
 0x6dd   :  { %1445 = vrot.lane.b32.xlu1 %v4655_v37, %s5897_s2 }
 0x6e0   :  { %3610 = vmatpush.xpose.msk.msra.mxu2 %vm502_vm14, %v1450_v42  ;;  %3585 = vmatmul.msk.f32.gmra.mxu1 %vm141_vm0, %v1058_v45 }
 0x73f   :  { %v1218_v4 = vpop.permute.xlu0 %1217 }
 0x740   :  { %3598 = vmatmul.msk.f32.vlgmr.msrb.gmra.mxu2 %vm502_vm14, %v1218_v4 }
 0x747   :  { %v1220_v18 = vpop.permute.xlu1 %1219  ;;  %v1448_v39 = vpop.permute.xlu0 %1447 }
 0x748   :  { %3599 = vmatmul.msk.f32.gmra.mxu2 %vm502_vm14, %v1220_v18 }
 0x749   :  { %3611 = vmatpush.xpose.msk.msra.mxu2 %vm502_vm14, %v1448_v39 }
 0x74f   :  { %v1446_v19 = vpop.permute.xlu1 %1445 }
 0x750   :  { %v1156_v16 = vpop.f32.mrf.mxu2  ;;  %3612 = vmatpush.xpose.msk.msra.mxu2 %vm502_vm14, %v1446_v19 }
 0x751   :  { %v1162_v29 = vmul.f32 0.17677669, %v1156_v16 }
 0x753   :  { %v1164_v48 = vsel %vm502_vm14, %v1162_v29, -inf }
 0x754   :  { %1165 = vmax.xlane.f32.xlu2 %v1164_v48  ;;  %3613 = vmatpush.xpose.msk.msra.mxu2 %vm502_vm14, %v1444_v34 }
 0x755   :  { %v1106_v35 = vpop.f32.mrf.mxu1 }
 0x756   :  { %v1107_v49 = vadd.f32 %v3883_v41, %v1106_v35 }
 0x758   :  { %3606 = vmatmul.msk.f32.vlgmr.msrb.gmra.mxu0 %vm502_vm14, %v1107_v49  ;;  %1439 = vrot.lane.b32.xlu0 %v1107_v49, %s5897_s2 }
 0x759   :  { %v1159_v54 = vpop.f32.mrf.mxu2 }
 0x75a   :  { %v1163_v11 = vmul.f32 0.17677669, %v1159_v54 }
 0x75c   :  { %v1167_v44 = vsel %vm502_vm14, %v1163_v11, -inf }
 0x75d   :  { %v1109_v50 = vpop.f32.mrf.mxu1 }
 0x75e   :  { %v1110_v53 = vadd.f32 %v3883_v41, %v1109_v50 }
 0x760   :  { %1441 = vrot.lane.b32.xlu1 %v1110_v53, %s5897_s2  ;;  %3607 = vmatmul.msk.f32.gmra.mxu0 %vm502_vm14, %v1110_v53 }
 0x782   :  { %1168 = vmax.xlane.f32.xlu0 %v1167_v44 }
 0x7c3   :  { %v1258_v17 = vpop.f32.mrf.mxu2 }
 0x7c4   :  { %v1264_v55 = vmul.f32 0.17677669, %v1258_v17 }
 0x7c6   :  { %v1266_v56 = vsel %vm502_vm14, %v1264_v55, -inf }
 0x7c7   :  { %v1166_v57 = vpop.xlane.xlu2 %1165  ;;  %1267 = vmax.xlane.f32.xlu1 %v1266_v56 }
 0x7c8   :  { %v1170_v58 = vsub.f32 %v1162_v29, %v1166_v57 }
 0x7ca   :  { %v1172_v59 = vmul.f32 1.442695, %v1170_v58  ;;  %v1440_v32 = vpop.permute.xlu0 %1439 }
 0x7cb   :  { %v1261_v43 = vpop.f32.mrf.mxu2  ;;  %3614 = vmatmul.msk.f32.vlgmr.msra.gmra.mxu2 %vm502_vm14, %v1440_v32 }
 0x7cc   :  { %3950 = vpow2.f32 %v1172_v59  ;;  %v1265_v41 = vmul.f32 0.17677669, %v1261_v43 }
 0x7ce   :  { %v1269_v61 = vsel %vm502_vm14, %v1265_v41, -inf }
 0x7cf   :  { %1270 = vmax.xlane.f32.xlu2 %v1269_v61 }
 0x7d2   :  { %v3951_v63 = vpop.eup %3950  ;;  %v1442_v1 = vpop.permute.xlu1 %1441 }
 0x7d3   :  { %3615 = vmatmul.msk.f32.gmra.mxu2 %vm502_vm14, %v1442_v1  ;;  %v1176_v2 = vsel %vm502_vm14, %v3951_v63, 0.0 }
 0x7d4   :  { %1177 = vadd.xlane.f32.xlu0 %v1176_v2 }
 0x7d5   :  { %v1378_v25 = vpop.f32.mrf.mxu0 }
 0x7d6   :  { %v4879_v27 = vmul.f32 0.17677669, %v1378_v25 }
 0x7d8   :  { %v1386_v13 = vsel %vm502_vm14, %v4879_v27, -inf }
 0x7dd   :  { %v1381_v8 = vpop.f32.mrf.mxu0 }
 0x7de   :  { %v1385_v40 = vmul.f32 0.17677669, %v1381_v8 }
 0x7e0   :  { %v1389_v45 = vsel %vm502_vm14, %v1385_v40, -inf }
 0x7e8   :  { %3805 = vrot.lane.b32.xlu0 %v4874_v3, %s5897_s2 }
 0x7f5   :  { %v1169_v0 = vpop.xlane.xlu0 %1168 }
 0x7f6   :  { %v1171_v7 = vsub.f32 %v1163_v11, %v1169_v0 }
 0x7f8   :  { %v1174_v9 = vmul.f32 1.442695, %v1171_v7 }
 0x7fa   :  { %3952 = vpow2.f32 %v1174_v9 }
 0x800   :  { %v3953_v10 = vpop.eup %3952 }
 0x801   :  { %v1179_v24 = vsel %vm502_vm14, %v3953_v10, 0.0 }
 0x802   :  { %1180 = vadd.xlane.f32.xlu1 %v1179_v24 }
 0x812   :  { %1387 = vmax.xlane.f32.xlu0 %v1386_v13 }
 0x81b   :  { %3810 = vrot.lane.b32.xlu1 %v4885_v31, %s5897_s2 }
 0x83a   :  { %v1268_v46 = vpop.xlane.xlu1 %1267 }
 0x83b   :  { %v1272_v15 = vsub.f32 %v1264_v55, %v1268_v46  ;;  %v4897_v55 = vpack.i.bf16 %v4738_v62, %v4732_v60 }
 0x83d   :  { %v1274_v33 = vmul.f32 1.442695, %v1272_v15 }
 0x83f   :  { %3954 = vpow2.f32 %v1274_v33 }
 0x842   :  { %v1271_v6 = vpop.xlane.xlu2 %1270 }
 0x843   :  { %v1273_v42 = vsub.f32 %v1265_v41, %v1271_v6 }
 0x845   :  { %v3955_v4 = vpop.eup %3954  ;;  %v1276_v18 = vmul.f32 1.442695, %v1273_v42  ;;  %1390 = vmax.xlane.f32.xlu1 %v1389_v45 }
 0x846   :  { %v1278_v39 = vsel %vm502_vm14, %v3955_v4, 0.0 }
 0x847   :  { %3956 = vpow2.f32 %v1276_v18  ;;  %1279 = vadd.xlane.f32.xlu2 %v1278_v39  ;;  %v1178_v47 = vpop.xlane.xlu0 %1177 }
 0x848   :  { %3958 = vrcp.f32 %v1178_v47 }
 0x84d   :  { %v3957_v30 = vpop.eup %3956 }
 0x84e   :  { %v3959_v19 = vpop.eup %3958  ;;  %v1480_v16 = vpop.f32.mrf.mxu2  ;;  %v1281_v29 = vsel %vm502_vm14, %v3957_v30, 0.0 }
 0x84f   :  { %v1184_v34 = vmul.f32 %v3959_v19, %v3951_v63  ;;  %1282 = vadd.xlane.f32.xlu2 %v1281_v29  ;;  %v1486_v48 = vmul.f32 0.17677669, %v1480_v16 }
 0x851   :  { %3592 = vmatmul.msk.f32.vlgmr.msra.gmra.mxu3 %vm502_vm14, %v1184_v34  ;;  %v1488_v35 = vsel %vm502_vm14, %v1486_v48, -inf }
 0x856   :  { %v1483_v49 = vpop.f32.mrf.mxu2 }
 0x857   :  { %1489 = vmax.xlane.f32.xlu2 %v1488_v35  ;;  %v1487_v50 = vmul.f32 0.17677669, %v1483_v49 }
 0x859   :  { %v1491_v44 = vsel %vm502_vm14, %v1487_v50, -inf }
 0x85a   :  { %v3806_v53 = vpop.permute.xlu0 %3805 }
 0x85b   :  { %v3807_v54 = vunpack.i.l.bf16 %v3806_v53  ;;  %v3808_v11 = vunpack.i.h.bf16 %v3806_v53 }
 0x85d   :  { %1322 = vmatpush.msrb.mxu3 %v3807_v54 }
 0x85f   :  { %1492 = vmax.xlane.f32.xlu2 %v1491_v44  ;;  %1323 = vmatpush.msrb.mxu3 %v3808_v11 }
 0x875   :  { %v1181_v17 = vpop.xlane.xlu1 %1180 }
 0x876   :  { %3960 = vrcp.f32 %v1181_v17 }
 0x877   :  { %3815 = vrot.lane.b32.xlu2 %v4897_v55, %s5897_s2 }
 0x87c   :  { %v3961_v56 = vpop.eup %3960 }
 0x87d   :  { %v1185_v57 = vmul.f32 %v3961_v56, %v3953_v10  ;;  %v1119_v56 = vld [vmem:[%s5840_s14 + $0x38] sm:$0xff] }
 0x87e   :  { %1592 = vmatpush.msra.mxu0 %v1119_v56  ;;  %3782 = vmatpush.msra.mxu1 %v1119_v56 }
 0x87f   :  { %3593 = vmatmul.msk.f32.gmra.mxu3 %vm502_vm14, %v1185_v57  ;;  %v1118_v57 = vld [vmem:[%s5840_s14 + $0x30] sm:$0xff] }
 0x880   :  { %1593 = vmatpush.msra.mxu0 %v1118_v57  ;;  %3783 = vmatpush.msra.mxu1 %v1118_v57 }
 0x885   :  { %v1388_v47 = vpop.xlane.xlu0 %1387 }
 0x88d   :  { %v3811_v58 = vpop.permute.xlu1 %3810 }
 0x88e   :  { %v3812_v59 = vunpack.i.l.bf16 %v3811_v58  ;;  %v3813_v32 = vunpack.i.h.bf16 %v3811_v58  ;;  %v1117_v58 = vld [vmem:[%s5840_s14 + $0x28] sm:$0xff] }
 0x88f   :  { %1594 = vmatpush.msra.mxu0 %v1117_v58  ;;  %3784 = vmatpush.msra.mxu1 %v1117_v58 }
 0x890   :  { %1324 = vmatpush.msrb.mxu3 %v3812_v59  ;;  %v1116_v59 = vld [vmem:[%s5840_s14 + $0x20] sm:$0xff] }
 0x891   :  { %1595 = vmatpush.msra.mxu0 %v1116_v59  ;;  %3785 = vmatpush.msra.mxu1 %v1116_v59 }
 0x892   :  { %1325 = vmatpush.msrb.mxu3 %v3813_v32 }
 0x8b8   :  { %v1391_v43 = vpop.xlane.xlu1 %1390 }
 0x8b9   :  { %v1393_v41 = vsub.f32 %v1385_v40, %v1391_v43 }
 0x8ba   :  { %v1280_v61 = vpop.xlane.xlu2 %1279 }
 0x8bb   :  { %v1396_v63 = vmul.f32 1.442695, %v1393_v41  ;;  %3962 = vrcp.f32 %v1280_v61 }
 0x8bd   :  { %3964 = vpow2.f32 %v1396_v63 }
 0x8c1   :  { %v3963_v60 = vpop.eup %3962 }
 0x8c2   :  { %v1286_v62 = vmul.f32 %v3963_v60, %v3955_v4  ;;  %v1283_v1 = vpop.xlane.xlu2 %1282 }
 0x8c3   :  { %v4902_v2 = vpop.eup %3964  ;;  %3966 = vrcp.f32 %v1283_v1  ;;  %v1114_v1 = vld [vmem:[%s5840_s14 + $0x10] sm:$0xff] }
 0x8c4   :  { %3600 = vmatmul.msk.f32.vlgmr.msrb.gmra.mxu3 %vm502_vm14, %v1286_v62  ;;  %v1401_v0 = vsel %vm502_vm14, %v4902_v2, 0.0  ;;  %v1115_v62 = vld [vmem:[%s5840_s14 + $0x18] sm:$0xff] }
 0x8c5   :  { %1402 = vadd.xlane.f32.xlu1 %v1401_v0  ;;  %1596 = vmatpush.msra.mxu0 %v1115_v62  ;;  %v1113_v0 = vld [vmem:[%s5840_s14 + $0x8] sm:$0xff] }
 0x8c6   :  { %3786 = vmatpush.msra.mxu1 %v1115_v62 }
 0x8c7   :  { %1597 = vmatpush.msra.mxu0 %v1114_v1 }
 0x8c8   :  { %3787 = vmatpush.msra.mxu1 %v1114_v1 }
 0x8c9   :  { %v3967_v7 = vpop.eup %3966  ;;  %1598 = vmatpush.msra.mxu0 %v1113_v0 }
 0x8ca   :  { %v1490_v9 = vpop.xlane.xlu2 %1489  ;;  %v1287_v10 = vmul.f32 %v3967_v7, %v3957_v30  ;;  %v1392_v30 = vsub.f32 %v4879_v27, %v1388_v47  ;;  %3788 = vmatpush.msra.mxu1 %v1113_v0 }
 0x8cb   :  { %v1494_v24 = vsub.f32 %v1486_v48, %v1490_v9 }
 0x8cc   :  { %3601 = vmatmul.msk.f32.gmra.mxu3 %vm502_vm14, %v1287_v10  ;;  %v1394_v19 = vmul.f32 1.442695, %v1392_v30 }
 0x8cd   :  { %v1496_v25 = vmul.f32 1.442695, %v1494_v24 }
 0x8cf   :  { %3968 = vpow2.f32 %v1496_v25 }
 0x8d2   :  { %v1493_v13 = vpop.xlane.xlu2 %1492 }
 0x8d3   :  { %v1495_v46 = vsub.f32 %v1487_v50, %v1493_v13 }
 0x8d4   :  { %v1209_v15 = vpop.f32.mrf.mxu3 }
 0x8d5   :  { %v3969_v8 = vpop.eup %3968  ;;  %v1498_v33 = vmul.f32 1.442695, %v1495_v46  ;;  %1215 = vst.msk [vmem:[#allocation2] sm:$0xff] %vm502_vm14, %v1209_v15 }
 0x8d6   :  { %v1500_v40 = vsel %vm502_vm14, %v3969_v8, 0.0 }
 0x8d7   :  { %3970 = vpow2.f32 %v1498_v33  ;;  %1501 = vadd.xlane.f32.xlu2 %v1500_v40 }
 0x8d8   :  { %3972 = vpow2.f32 %v1394_v19 }
 0x8da   :  { %v3816_v6 = vpop.permute.xlu2 %3815 }
 0x8db   :  { %v3817_v42 = vunpack.i.l.bf16 %v3816_v6  ;;  %v3818_v4 = vunpack.i.h.bf16 %v3816_v6 }
 0x8dd   :  { %v3971_v45 = vpop.eup %3970  ;;  %1544 = vmatpush.msra.mxu3 %v3817_v42 }
 0x8de   :  { %v1503_v18 = vsel %vm502_vm14, %v3971_v45, 0.0  ;;  %v3973_v16 = vpop.eup %3972 }
 0x8df   :  { %1504 = vadd.xlane.f32.xlu0 %v1503_v18  ;;  %1545 = vmatpush.msra.mxu3 %v3818_v4  ;;  %v1398_v29 = vsel %vm502_vm14, %v3973_v16, 0.0 }
 0x8ef   :  { %3820 = vrot.lane.b32.xlu2 %v4746_v5, %s5897_s2 }
 0x902   :  { %v1212_v39 = vpop.f32.mrf.mxu3 }
 0x903   :  { %1216 = vst.msk [vmem:[#allocation2 + $0x8] sm:$0xff] %vm502_vm14, %v1212_v39 }
 0x918   :  { %1399 = vadd.xlane.f32.xlu2 %v1398_v29 }
 0x938   :  { %v1403_v43 = vpop.xlane.xlu1 %1402 }
 0x947   :  { %v1327_v34 = vpop.f32.mrf.mxu3 }
 0x948   :  { %1335 = vrot.lane.b32.xlu0 %v1327_v34, %s5901_s4 }
 0x94a   :  { %v1502_v48 = vpop.xlane.xlu2 %1501 }
 0x94b   :  { %3974 = vrcp.f32 %v1502_v48 }
 0x94f   :  { %v1330_v35 = vpop.f32.mrf.mxu3 }
 0x950   :  { %1337 = vrot.lane.b32.xlu1 %v1330_v35, %s5901_s4 }
 0x951   :  { %v3975_v53 = vpop.eup %3974 }
 0x952   :  { %v3821_v49 = vpop.permute.xlu2 %3820  ;;  %v1505_v50 = vpop.xlane.xlu0 %1504  ;;  %v1508_v27 = vmul.f32 %v3975_v53, %v3969_v8  ;;  %v3884_v8 = vld [vmem:[%s5841_s15] ss:$0 sm:$0xff] }
 0x953   :  { %v3822_v54 = vunpack.i.l.bf16 %v3821_v49  ;;  %v3823_v11 = vunpack.i.h.bf16 %v3821_v49  ;;  %3976 = vrcp.f32 %v1505_v50 }
 0x955   :  { %1546 = vmatpush.msra.mxu3 %v3822_v54 }
 0x957   :  { %1547 = vmatpush.msra.mxu3 %v3823_v11 }
 0x958   :  { %3616 = vmatmul.msk.f32.vlgmr.msra.gmra.mxu3 %vm502_vm14, %v1508_v27 }
 0x959   :  { %v3977_v44 = vpop.eup %3976 }
 0x95a   :  { %v1509_v17 = vmul.f32 %v3977_v44, %v3971_v45 }
 0x960   :  { %3617 = vmatmul.msk.f32.gmra.mxu3 %vm502_vm14, %v1509_v17 }
 0x98b   :  { %v1400_v32 = vpop.xlane.xlu2 %1399 }
 0x98c   :  { %3978 = vrcp.f32 %v1400_v32  ;;  %v1728_v32 = vld [vmem:[%s5844_s16 + $0x38] sm:$0xff] }
 0x98d   :  { %3980 = vrcp.f32 %v1403_v43  ;;  %1753 = vmatpush.msrb.mxu2 %v1728_v32  ;;  %v1726_v43 = vld [vmem:[%s5844_s16 + $0x28] sm:$0xff]  ;;  %v1792_v32 = vld [vmem:[%s5846_s18 + $0x70] sm:$0xff] }
 0x992   :  { %v3979_v41 = vpop.eup %3978 }
 0x993   :  { %v1406_v61 = vmul.f32 %v3979_v41, %v3973_v16  ;;  %v3981_v63 = vpop.eup %3980  ;;  %v1724_v41 = vld [vmem:[%s5844_s16 + $0x18] sm:$0xff] }
 0x994   :  { %v1407_v60 = vmul.f32 %v3981_v63, %v4902_v2  ;;  %v1112_v2 = vld [vmem:[%s5840_s14] sm:$0xff]  ;;  %v1722_v63 = vld [vmem:[%s5844_s16 + $0x8] sm:$0xff] }
 0x995   :  { %3608 = vmatmul.msk.f32.vlgmr.msrb.gmra.mxu1 %vm502_vm14, %v1406_v61  ;;  %1599 = vmatpush.msra.mxu0 %v1112_v2  ;;  %v1723_v61 = vld [vmem:[%s5844_s16 + $0x10] sm:$0xff] }
 0x996   :  { %3789 = vmatpush.msra.mxu1 %v1112_v2 }
 0x99d   :  { %3609 = vmatmul.msk.f32.gmra.mxu1 %vm502_vm14, %v1407_v60  ;;  %v1721_v60 = vld [vmem:[%s5844_s16] sm:$0xff] }
 0x9ba   :  { %v1336_v7 = vpop.permute.xlu0 %1335 }
 0x9bb   :  { %1341 = vst.msk [vmem:[#allocation2] sm:$0xff] %vm698_vm1, %v1336_v7 }
 0x9c2   :  { %v1338_v9 = vpop.permute.xlu1 %1337  ;;  %v1565_v10 = vld [vmem:[#allocation2] sm:$0xff] }
 0x9c3   :  { %1342 = vst.msk [vmem:[#allocation2 + $0x8] sm:$0xff] %vm698_vm1, %v1338_v9  ;;  %3618 = vmatmul.msk.f32.vlgmr.msra.gmra.mxu0 %vm141_vm0, %v1565_v10 }
 0x9ca   :  { %v1566_v24 = vld [vmem:[#allocation2 + $0x8] sm:$0xff] }
 0x9cb   :  { %3619 = vmatmul.msk.f32.gmra.mxu0 %vm141_vm0, %v1566_v24 }
 0x9db   :  { %v1549_v25 = vpop.f32.mrf.mxu3 }
 0x9dc   :  { %1557 = vrot.lane.b32.xlu0 %v1549_v25, %s5901_s4 }
 0x9e3   :  { %v1552_v13 = vpop.f32.mrf.mxu3 }
 0x9e4   :  { %1559 = vrot.lane.b32.xlu0 %v1552_v13, %s5901_s4 }
 0xa12   :  { %v1431_v46 = vpop.f32.mrf.mxu1 }
 0xa13   :  { %1437 = vst.msk [vmem:[#allocation2 + $0x10] sm:$0xff] %vm502_vm14, %v1431_v46 }
 0xa1a   :  { %v1434_v15 = vpop.f32.mrf.mxu1 }
 0xa1b   :  { %1438 = vst.msk [vmem:[#allocation2 + $0x18] sm:$0xff] %vm502_vm14, %v1434_v15 }
 0xa40   :  { %v1601_v33 = vpop.f32.mrf.mxu0 }
 0xa41   :  { %v1602_v40 = vadd.f32 %v3884_v8, %v1601_v33 }
 0xa43   :  { %v4959_v6 = vadd.f32 %v1602_v40, %v4753_v12  ;;  %v5021_v40 = vld [vmem:[%s5842_s24] ss:$0 sm:$0xff] }
 0xa45   :  { %v1619_v42 = vsel %vm141_vm0, %v4959_v6, 0.0 }
 0xa46   :  { %1620 = vadd.xlane.f32.xlu1 %v1619_v42 }
 0xa48   :  { %v1604_v45 = vpop.f32.mrf.mxu0 }
 0xa49   :  { %v1605_v4 = vadd.f32 %v3884_v8, %v1604_v45 }
 0xa4b   :  { %v4964_v18 = vadd.f32 %v1605_v4, %v4760_v14 }
 0xa4d   :  { %v1622_v39 = vsel %vm141_vm0, %v4964_v18, 0.0 }
 0xa4e   :  { %v1558_v47 = vpop.permute.xlu0 %1557  ;;  %1623 = vadd.xlane.f32.xlu0 %v1622_v39  ;;  %v5026_v39 = vld [vmem:[%s5843_s25] ss:$0 sm:$0xff] }
 0xa4f   :  { %1563 = vst.msk [vmem:[#allocation2 + $0x10] sm:$0xff] %vm698_vm1, %v1558_v47 }
 0xa56   :  { %v1560_v30 = vpop.permute.xlu0 %1559  ;;  %v1567_v19 = vld [vmem:[#allocation2 + $0x10] sm:$0xff] }
 0xa57   :  { %1564 = vst.msk [vmem:[#allocation2 + $0x18] sm:$0xff] %vm698_vm1, %v1560_v30  ;;  %3620 = vmatmul.msk.f32.gmra.mxu0 %vm141_vm0, %v1567_v19 }
 0xa5e   :  { %v1568_v12 = vld [vmem:[#allocation2 + $0x18] sm:$0xff] }
 0xa5f   :  { %3621 = vmatmul.msk.f32.vlgmr.msra.gmra.mxu1 %vm141_vm0, %v1568_v12 }
 0xab9   :  { %v1621_v16 = vpop.xlane.xlu1 %1620 }
 0xaba   :  { %v1631_v14 = vmul.f32 %v1621_v16, %v4275_v26 }
 0xabc   :  { %v1635_v29 = vsub.f32 %v4959_v6, %v1631_v14 }
 0xabe   :  { %v1639_v34 = vmul.f32 %v1635_v29, %v1635_v29 }
 0xac0   :  { %v1643_v48 = vsel %vm141_vm0, %v1639_v34, 0.0 }
 0xac1   :  { %1644 = vadd.xlane.f32.xlu2 %v1643_v48  ;;  %v1624_v35 = vpop.xlane.xlu0 %1623 }
 0xac2   :  { %v1632_v49 = vmul.f32 %v1624_v35, %v4275_v26 }
 0xac4   :  { %v4977_v50 = vsub.f32 %v4964_v18, %v1632_v49 }
 0xac6   :  { %v1640_v53 = vmul.f32 %v4977_v50, %v4977_v50 }
 0xac8   :  { %v1646_v54 = vsel %vm141_vm0, %v1640_v53, 0.0 }
 0xac9   :  { %1647 = vadd.xlane.f32.xlu2 %v1646_v54 }
 0xad4   :  { %v1607_v11 = vpop.f32.mrf.mxu0 }
 0xad5   :  { %v1608_v27 = vadd.f32 %v3884_v8, %v1607_v11 }
 0xad7   :  { %v4983_v44 = vadd.f32 %v1608_v27, %v4776_v51  ;;  %v1727_v51 = vld [vmem:[%s5844_s16 + $0x30] sm:$0xff] }
 0xad8   :  { %1754 = vmatpush.msrb.mxu2 %v1727_v51  ;;  %v1791_v51 = vld [vmem:[%s5846_s18 + $0x68] sm:$0xff] }
 0xad9   :  { %v1625_v17 = vsel %vm141_vm0, %v4983_v44, 0.0 }
 0xada   :  { %1626 = vadd.xlane.f32.xlu2 %v1625_v17  ;;  %1755 = vmatpush.msrb.mxu2 %v1726_v43  ;;  %v1790_v43 = vld [vmem:[%s5846_s18 + $0x60] sm:$0xff] }
 0xadc   :  { %v1610_v56 = vpop.f32.mrf.mxu1 }
 0xadd   :  { %v1611_v57 = vadd.f32 %v3884_v8, %v1610_v56 }
 0xadf   :  { %v4988_v58 = vadd.f32 %v1611_v57, %v4779_v52  ;;  %v1725_v52 = vld [vmem:[%s5844_s16 + $0x20] sm:$0xff] }
 0xae0   :  { %1756 = vmatpush.msrb.mxu2 %v1725_v52  ;;  %v1789_v52 = vld [vmem:[%s5846_s18 + $0x58] sm:$0xff] }
 0xae1   :  { %v1628_v59 = vsel %vm141_vm0, %v4988_v58, 0.0 }
 0xae2   :  { %1629 = vadd.xlane.f32.xlu2 %v1628_v59  ;;  %1757 = vmatpush.msrb.mxu2 %v1724_v41  ;;  %v1793_v59 = vld [vmem:[%s5846_s18 + $0x78] sm:$0xff]  ;;  %v1788_v41 = vld [vmem:[%s5846_s18 + $0x50] sm:$0xff] }
 0xae4   :  { %1758 = vmatpush.msrb.mxu2 %v1723_v61  ;;  %v1787_v61 = vld [vmem:[%s5846_s18 + $0x48] sm:$0xff] }
 0xae6   :  { %1759 = vmatpush.msrb.mxu2 %v1722_v63  ;;  %v1786_v63 = vld [vmem:[%s5846_s18 + $0x40] sm:$0xff] }
 0xae8   :  { %1760 = vmatpush.msrb.mxu2 %v1721_v60  ;;  %v1785_v60 = vld [vmem:[%s5846_s18 + $0x38] sm:$0xff] }
 0xaea   :  { %1794 = vmatpush.msra.mxu2 %v1793_v59 }
 0xaec   :  { %1795 = vmatpush.msra.mxu2 %v1792_v32 }
 0xaee   :  { %1796 = vmatpush.msra.mxu2 %v1791_v51 }
 0xaf0   :  { %1797 = vmatpush.msra.mxu2 %v1790_v43 }
 0xaf2   :  { %1798 = vmatpush.msra.mxu2 %v1789_v52 }
 0xaf4   :  { %1799 = vmatpush.msra.mxu2 %v1788_v41 }
 0xaf6   :  { %1800 = vmatpush.msra.mxu2 %v1787_v61 }
 0xaf8   :  { %1801 = vmatpush.msra.mxu2 %v1786_v63 }
 0xafa   :  { %1802 = vmatpush.msra.mxu2 %v1785_v60 }
 0xb34   :  { %v1645_v62 = vpop.xlane.xlu2 %1644 }
 0xb35   :  { %v1655_v1 = vmul.f32 %v1645_v62, %v4275_v26  ;;  %v1784_v62 = vld [vmem:[%s5846_s18 + $0x30] sm:$0xff] }
 0xb36   :  { %1803 = vmatpush.msra.mxu2 %v1784_v62 }
 0xb37   :  { %v1659_v0 = vadd.f32 1e-05, %v1655_v1 }
 0xb39   :  { %3982 = vrsqrt.f32 %v1659_v0  ;;  %vm1669_vm3 = vweird.f32 %v1659_v0 }
 0xb3c   :  { %v1648_v2 = vpop.xlane.xlu2 %1647 }
 0xb3d   :  { %v1656_v7 = vmul.f32 %v1648_v2, %v4275_v26 }
 0xb3f   :  { %v3983_v9 = vpop.eup %3982  ;;  %v1660_v10 = vadd.f32 1e-05, %v1656_v7  ;;  %v1782_v7 = vld [vmem:[%s5846_s18 + $0x20] sm:$0xff] }
 0xb40   :  { %v1664_v24 = vmul.f32 %v3983_v9, %v1659_v0  ;;  %vm1670_vm2 = vweird.f32 %v3983_v9  ;;  %v1783_v0 = vld [vmem:[%s5846_s18 + $0x28] sm:$0xff] }
 0xb41   :  { %3984 = vrsqrt.f32 %v1660_v10  ;;  %vm1671_vm4 = vmor %vm1669_vm3, %vm1670_vm2  ;;  %vm1679_vm6 = vweird.f32 %v1660_v10  ;;  %1804 = vmatpush.msra.mxu2 %v1783_v0 }
 0xb42   :  { %v1665_v25 = vmul.f32 %v3983_v9, %v1664_v24  ;;  %v1780_v24 = vld [vmem:[%s5846_s18 + $0x10] sm:$0xff] }
 0xb43   :  { %1805 = vmatpush.msra.mxu2 %v1782_v7 }
 0xb44   :  { %v1666_v13 = vmul.f32 0.5, %v1665_v25 }
 0xb46   :  { %v1667_v46 = vsub.f32 1.5, %v1666_v13  ;;  %v1779_v13 = vld [vmem:[%s5846_s18 + $0x8] sm:$0xff] }
 0xb47   :  { %v3985_v15 = vpop.eup %3984 }
 0xb48   :  { %v1668_v8 = vmul.f32 %v3983_v9, %v1667_v46  ;;  %v1674_v33 = vmul.f32 %v3985_v15, %v1660_v10  ;;  %vm1680_vm5 = vweird.f32 %v3985_v15  ;;  %v1781_v10 = vld [vmem:[%s5846_s18 + $0x18] sm:$0xff] }
 0xb49   :  { %vm1681_vm7 = vmor %vm1679_vm6, %vm1680_vm5  ;;  %1806 = vmatpush.msra.mxu2 %v1781_v10 }
 0xb4a   :  { %v1672_v42 = vsel %vm1671_vm4, %v3983_v9, %v1668_v8  ;;  %v1675_v45 = vmul.f32 %v3985_v15, %v1674_v33 }
 0xb4b   :  { %v1703_v4 = vmul.f32 %v1672_v42, %v1635_v29  ;;  %1807 = vmatpush.msra.mxu2 %v1780_v24 }
 0xb4c   :  { %v1676_v47 = vmul.f32 0.5, %v1675_v45 }
 0xb4d   :  { %v1710_v30 = vmul.f32 %v5021_v40, %v1703_v4  ;;  %v1627_v19 = vpop.xlane.xlu2 %1626  ;;  %1808 = vmatpush.msra.mxu2 %v1779_v13 }
 0xb4e   :  { %v1677_v12 = vsub.f32 1.5, %v1676_v47  ;;  %v1633_v16 = vmul.f32 %v1627_v19, %v4275_v26 }
 0xb4f   :  { %v1717_v14 = vadd.f32 %v5026_v39, %v1710_v30 }
 0xb50   :  { %v1678_v34 = vmul.f32 %v3985_v15, %v1677_v12  ;;  %v5032_v48 = vsub.f32 %v4983_v44, %v1633_v16 }
 0xb51   :  { %3622 = vmatmul.msk.f32.vlgmr.msrb.gmra.mxu2 %vm141_vm0, %v1717_v14 }
 0xb52   :  { %v1682_v29 = vsel %vm1681_vm7, %v3985_v15, %v1678_v34  ;;  %v1641_v35 = vmul.f32 %v5032_v48, %v5032_v48  ;;  %v1778_v15 = vld [vmem:[%s5846_s18] sm:$0xff] }
 0xb53   :  { %v1704_v49 = vmul.f32 %v1682_v29, %v4977_v50  ;;  %1809 = vmatpush.msra.mxu2 %v1778_v15 }
 0xb54   :  { %v1649_v53 = vsel %vm141_vm0, %v1641_v35, 0.0 }
 0xb55   :  { %1650 = vadd.xlane.f32.xlu2 %v1649_v53  ;;  %v1630_v54 = vpop.xlane.xlu2 %1629  ;;  %v1711_v11 = vmul.f32 %v5021_v40, %v1704_v49 }
 0xb56   :  { %v1634_v27 = vmul.f32 %v1630_v54, %v4275_v26 }
 0xb57   :  { %v1718_v17 = vadd.f32 %v5026_v39, %v1711_v11 }
 0xb58   :  { %v5043_v56 = vsub.f32 %v4988_v58, %v1634_v27 }
 0xb59   :  { %3623 = vmatmul.msk.f32.gmra.mxu2 %vm141_vm0, %v1718_v17 }
 0xb5a   :  { %v1642_v57 = vmul.f32 %v5043_v56, %v5043_v56 }
 0xb5c   :  { %v1652_v50 = vsel %vm141_vm0, %v1642_v57, 0.0 }
 0xb5d   :  { %1653 = vadd.xlane.f32.xlu1 %v1652_v50 }
 0xbc8   :  { %v1651_v1 = vpop.xlane.xlu2 %1650 }
 0xbc9   :  { %v1657_v2 = vmul.f32 %v1651_v1, %v4275_v26 }
 0xbcb   :  { %v1661_v9 = vadd.f32 1e-05, %v1657_v2 }
 0xbcd   :  { %3986 = vrsqrt.f32 %v1661_v9  ;;  %vm1689_vm9 = vweird.f32 %v1661_v9 }
 0xbd0   :  { %v1654_v25 = vpop.xlane.xlu1 %1653 }
 0xbd1   :  { %v1658_v46 = vmul.f32 %v1654_v25, %v4275_v26 }
 0xbd3   :  { %v3987_v8 = vpop.eup %3986  ;;  %v1662_v33 = vadd.f32 1e-05, %v1658_v46 }
 0xbd4   :  { %v1684_v42 = vmul.f32 %v3987_v8, %v1661_v9  ;;  %vm1690_vm8 = vweird.f32 %v3987_v8  ;;  %v1762_v57 = vpop.f32.mrf.mxu2 }
 0xbd5   :  { %3988 = vrsqrt.f32 %v1662_v33  ;;  %vm1691_vm10 = vmor %vm1689_vm9, %vm1690_vm8  ;;  %vm1699_vm12 = vweird.f32 %v1662_v33 }
 0xbd6   :  { %v1685_v45 = vmul.f32 %v3987_v8, %v1684_v42 }
 0xbd8   :  { %v1686_v4 = vmul.f32 0.5, %v1685_v45 }
 0xbda   :  { %v1687_v47 = vsub.f32 1.5, %v1686_v4 }
 0xbdb   :  { %v3989_v30 = vpop.eup %3988 }
 0xbdc   :  { %v1688_v19 = vmul.f32 %v3987_v8, %v1687_v47  ;;  %v1694_v12 = vmul.f32 %v3989_v30, %v1662_v33  ;;  %vm1700_vm11 = vweird.f32 %v3989_v30  ;;  %v1765_v51 = vpop.f32.mrf.mxu2 }
 0xbdd   :  { %vm1701_vm13 = vmor %vm1699_vm12, %vm1700_vm11 }
 0xbde   :  { %v1692_v16 = vsel %vm1691_vm10, %v3987_v8, %v1688_v19  ;;  %v1695_v14 = vmul.f32 %v3989_v30, %v1694_v12 }
 0xbdf   :  { %v1705_v34 = vmul.f32 %v1692_v16, %v5032_v48  ;;  %v3887_v48 = vld [vmem:[%s5903_s1] ss:$0 sm:$0xff] }
 0xbe0   :  { %v1696_v29 = vmul.f32 0.5, %v1695_v14  ;;  %v1763_v59 = vadd.f32 %v3887_v48, %v1762_v57  ;;  %v1766_v43 = vadd.f32 %v3887_v48, %v1765_v51  ;;  %v3632_v57 = vld [vmem:[%s5889_s30 + $0xa0] sm:$0xff]  ;;  %v3629_v51 = vld [vmem:[%s5889_s30 + $0x88] sm:$0xff] }
 0xbe1   :  { %v1712_v35 = vmul.f32 %v5021_v40, %v1705_v34  ;;  %v3643_v34 = vld [vmem:[%s5889_s30 + $0xf8] sm:$0xff] }
 0xbe2   :  { %v1697_v49 = vsub.f32 1.5, %v1696_v29  ;;  %v1774_v32 = vmax.f32 %v1763_v59, 0.0  ;;  %v1775_v52 = vmax.f32 %v1766_v43, 0.0  ;;  %2014 = vmatpush.msrb.mxu0 %v3643_v34  ;;  %v3640_v29 = vld [vmem:[%s5889_s30 + $0xe0] sm:$0xff]  ;;  %v3631_v59 = vld [vmem:[%s5889_s30 + $0x98] sm:$0xff] }
 0xbe3   :  { %v1719_v53 = vadd.f32 %v5026_v39, %v1712_v35  ;;  %v3641_v35 = vld [vmem:[%s5889_s30 + $0xe8] sm:$0xff] }
 0xbe4   :  { %v1698_v54 = vmul.f32 %v3989_v30, %v1697_v49  ;;  %2015 = vmatpush.msrb.mxu0 %v3641_v35  ;;  %v3638_v49 = vld [vmem:[%s5889_s30 + $0xd0] sm:$0xff] }
 0xbe5   :  { %3624 = vmatmul.msk.f32.gmra.mxu2 %vm141_vm0, %v1719_v53  ;;  %v3639_v53 = vld [vmem:[%s5889_s30 + $0xd8] sm:$0xff] }
 0xbe6   :  { %v1702_v11 = vsel %vm1701_vm13, %v3989_v30, %v1698_v54  ;;  %2016 = vmatpush.msrb.mxu0 %v3639_v53  ;;  %v3636_v54 = vld [vmem:[%s5889_s30 + $0xc0] sm:$0xff] }
 0xbe7   :  { %v1706_v27 = vmul.f32 %v1702_v11, %v5043_v56  ;;  %v3637_v11 = vld [vmem:[%s5889_s30 + $0xc8] sm:$0xff] }
 0xbe8   :  { %2017 = vmatpush.msrb.mxu0 %v3637_v11 }
 0xbe9   :  { %v1713_v17 = vmul.f32 %v5021_v40, %v1706_v27  ;;  %v3634_v27 = vld [vmem:[%s5889_s30 + $0xb0] sm:$0xff] }
 0xbeb   :  { %v1720_v50 = vadd.f32 %v5026_v39, %v1713_v17  ;;  %v3888_v39 = vld [vmem:[%s5847_s19] ss:$0 sm:$0xff]  ;;  %v3635_v17 = vld [vmem:[%s5889_s30 + $0xb8] sm:$0xff] }
 0xbec   :  { %2018 = vmatpush.msrb.mxu0 %v3635_v17 }
 0xbed   :  { %3625 = vmatmul.msk.f32.gmra.mxu2 %vm141_vm0, %v1720_v50  ;;  %v3630_v50 = vld [vmem:[%s5889_s30 + $0x90] sm:$0xff] }
 0xbf5   :  { %1810 = vmatmul.f32.vlgmr.msra.gmra.mxu2 %v1774_v32  ;;  %v3628_v32 = vld [vmem:[%s5889_s30 + $0x80] sm:$0xff] }
 0xbfd   :  { %1813 = vmatmul.f32.gmra.mxu2 %v1775_v52 }
 0xc68   :  { %v1768_v41 = vpop.f32.mrf.mxu2 }
 0xc69   :  { %v1769_v56 = vadd.f32 %v3887_v48, %v1768_v41 }
 0xc6b   :  { %v1776_v61 = vmax.f32 %v1769_v56, 0.0 }
 0xc6d   :  { %1816 = vmatmul.f32.gmra.mxu2 %v1776_v61 }
 0xc70   :  { %v1771_v40 = vpop.f32.mrf.mxu2 }
 0xc71   :  { %v1772_v63 = vadd.f32 %v3887_v48, %v1771_v40  ;;  %v3633_v48 = vld [vmem:[%s5889_s30 + $0xa8] sm:$0xff] }
 0xc72   :  { %2019 = vmatpush.msrb.mxu0 %v3633_v48 }
 0xc73   :  { %v1777_v60 = vmax.f32 %v1772_v63, 0.0 }
 0xc74   :  { %2020 = vmatpush.msrb.mxu0 %v3631_v59 }
 0xc75   :  { %1819 = vmatmul.f32.gmra.mxu2 %v1777_v60 }
 0xc76   :  { %2021 = vmatpush.msrb.mxu0 %v3629_v51 }
 0xc78   :  { %v1811_v62 = vpop.f32.mrf.mxu2 }
 0xc79   :  { %v1823_v1 = vadd.f32 %v1811_v62, %v4959_v6 }
 0xc7b   :  { %v5114_v0 = vadd.f32 %v3888_v39, %v1823_v1 }
 0xc7d   :  { %v1839_v2 = vsel %vm141_vm0, %v5114_v0, 0.0 }
 0xc7e   :  { %1840 = vadd.xlane.f32.xlu0 %v1839_v2 }
 0xc80   :  { %v1814_v7 = vpop.f32.mrf.mxu2 }
 0xc81   :  { %v1824_v9 = vadd.f32 %v1814_v7, %v4964_v18 }
 0xc83   :  { %v5119_v10 = vadd.f32 %v3888_v39, %v1824_v9 }
 0xc85   :  { %v1842_v24 = vsel %vm141_vm0, %v5119_v10, 0.0 }
 0xc86   :  { %1843 = vadd.xlane.f32.xlu2 %v1842_v24 }
 0xcf0   :  { %v1817_v25 = vpop.f32.mrf.mxu2 }
 0xcf1   :  { %v1825_v13 = vadd.f32 %v1817_v25, %v4983_v44  ;;  %v1841_v46 = vpop.xlane.xlu0 %1840 }
 0xcf2   :  { %v1851_v6 = vmul.f32 %v1841_v46, %v4275_v26 }
 0xcf3   :  { %v5125_v15 = vadd.f32 %v3888_v39, %v1825_v13 }
 0xcf4   :  { %v5128_v8 = vsub.f32 %v5114_v0, %v1851_v6 }
 0xcf5   :  { %v1845_v18 = vsel %vm141_vm0, %v5125_v15, 0.0 }
 0xcf6   :  { %1846 = vadd.xlane.f32.xlu2 %v1845_v18  ;;  %v1859_v33 = vmul.f32 %v5128_v8, %v5128_v8 }
 0xcf8   :  { %v1820_v42 = vpop.f32.mrf.mxu2  ;;  %v1863_v45 = vsel %vm141_vm0, %v1859_v33, 0.0 }
 0xcf9   :  { %v1826_v44 = vadd.f32 %v1820_v42, %v4988_v58  ;;  %1864 = vadd.xlane.f32.xlu1 %v1863_v45  ;;  %v1844_v4 = vpop.xlane.xlu2 %1843  ;;  %v3642_v58 = vld [vmem:[%s5889_s30 + $0xf0] sm:$0xff] }
 0xcfa   :  { %v1852_v47 = vmul.f32 %v1844_v4, %v4275_v26  ;;  %1985 = vmatpush.msrb.mxu3 %v3642_v58  ;;  %v3876_v4 = vld [vmem:[%s5890_s21 + $0x1] ss:$0 sm:$0xff] }
 0xcfb   :  { %v5137_v30 = vadd.f32 %v3888_v39, %v1826_v44 }
 0xcfc   :  { %v5140_v19 = vsub.f32 %v5119_v10, %v1852_v47  ;;  %1986 = vmatpush.msrb.mxu3 %v3640_v29 }
 0xcfd   :  { %v1848_v14 = vsel %vm141_vm0, %v5137_v30, 0.0 }
 0xcfe   :  { %v1860_v12 = vmul.f32 %v5140_v19, %v5140_v19  ;;  %1987 = vmatpush.msrb.mxu3 %v3638_v49 }
 0xd00   :  { %v1866_v16 = vsel %vm141_vm0, %v1860_v12, 0.0  ;;  %1988 = vmatpush.msrb.mxu3 %v3636_v54 }
 0xd01   :  { %1867 = vadd.xlane.f32.xlu0 %v1866_v16  ;;  %1849 = vadd.xlane.f32.xlu1 %v1848_v14  ;;  %v3877_v16 = vld [vmem:[%s5891_s29 + $0x1] ss:$0 sm:$0xff] }
 0xd02   :  { %1989 = vmatpush.msrb.mxu3 %v3634_v27 }
 0xd04   :  { %1990 = vmatpush.msrb.mxu3 %v3632_v57 }
 0xd06   :  { %1991 = vmatpush.msrb.mxu3 %v3630_v50 }
 0xd08   :  { %1992 = vmatpush.msrb.mxu3 %v3628_v32 }
 0xd69   :  { %v1847_v43 = vpop.xlane.xlu2 %1846 }
 0xd6a   :  { %v1853_v52 = vmul.f32 %v1847_v43, %v4275_v26 }
 0xd6c   :  { %v5197_v41 = vsub.f32 %v5125_v15, %v1853_v52  ;;  %v1865_v56 = vpop.xlane.xlu1 %1864 }
 0xd6d   :  { %v1875_v61 = vmul.f32 %v1865_v56, %v4275_v26 }
 0xd6e   :  { %v1861_v40 = vmul.f32 %v5197_v41, %v5197_v41 }
 0xd6f   :  { %v1879_v63 = vadd.f32 1e-05, %v1875_v61 }
 0xd70   :  { %v1869_v60 = vsel %vm141_vm0, %v1861_v40, 0.0 }
 0xd71   :  { %3990 = vrsqrt.f32 %v1879_v63  ;;  %1870 = vadd.xlane.f32.xlu0 %v1869_v60  ;;  %vm1889_vm3 = vweird.f32 %v1879_v63 }
 0xd74   :  { %v1868_v39 = vpop.xlane.xlu0 %1867  ;;  %v1850_v62 = vpop.xlane.xlu1 %1849 }
 0xd75   :  { %v1876_v1 = vmul.f32 %v1868_v39, %v4275_v26  ;;  %v1854_v2 = vmul.f32 %v1850_v62, %v4275_v26 }
 0xd77   :  { %v3991_v7 = vpop.eup %3990  ;;  %v1880_v9 = vadd.f32 1e-05, %v1876_v1  ;;  %v5206_v24 = vsub.f32 %v5137_v30, %v1854_v2 }
 0xd78   :  { %v1884_v25 = vmul.f32 %v3991_v7, %v1879_v63  ;;  %vm1890_vm2 = vweird.f32 %v3991_v7 }
 0xd79   :  { %3992 = vrsqrt.f32 %v1880_v9  ;;  %v1862_v13 = vmul.f32 %v5206_v24, %v5206_v24  ;;  %vm1891_vm4 = vmor %vm1889_vm3, %vm1890_vm2  ;;  %vm1899_vm6 = vweird.f32 %v1880_v9 }
 0xd7a   :  { %v1885_v46 = vmul.f32 %v3991_v7, %v1884_v25 }
 0xd7b   :  { %v1872_v6 = vsel %vm141_vm0, %v1862_v13, 0.0 }
 0xd7c   :  { %v1886_v18 = vmul.f32 0.5, %v1885_v46  ;;  %1873 = vadd.xlane.f32.xlu0 %v1872_v6 }
 0xd7e   :  { %v1887_v33 = vsub.f32 1.5, %v1886_v18 }
 0xd7f   :  { %v3993_v42 = vpop.eup %3992 }
 0xd80   :  { %v1888_v45 = vmul.f32 %v3991_v7, %v1887_v33  ;;  %v1894_v44 = vmul.f32 %v3993_v42, %v1880_v9  ;;  %vm1900_vm5 = vweird.f32 %v3993_v42 }
 0xd81   :  { %vm1901_vm7 = vmor %vm1899_vm6, %vm1900_vm5 }
 0xd82   :  { %v1892_v47 = vsel %vm1891_vm4, %v3991_v7, %v1888_v45  ;;  %v1895_v12 = vmul.f32 %v3993_v42, %v1894_v44 }
 0xd83   :  { %v1923_v14 = vmul.f32 %v1892_v47, %v5128_v8 }
 0xd84   :  { %v1896_v58 = vmul.f32 0.5, %v1895_v12 }
 0xd85   :  { %v1930_v34 = vmul.f32 %v3876_v4, %v1923_v14 }
 0xd86   :  { %v1897_v29 = vsub.f32 1.5, %v1896_v58 }
 0xd87   :  { %v1937_v35 = vadd.f32 %v3877_v16, %v1930_v34 }
 0xd88   :  { %v1898_v49 = vmul.f32 %v3993_v42, %v1897_v29 }
 0xd89   :  { %3645 = vmatmul.msk.f32.vlgmr.msrb.gmra.mxu3 %vm141_vm0, %v1937_v35  ;;  %3649 = vmatmul.msk.f32.vlgmr.msrb.gmra.mxu0 %vm141_vm0, %v1937_v35 }
 0xd8a   :  { %v1902_v53 = vsel %vm1901_vm7, %v3993_v42, %v1898_v49 }
 0xd8b   :  { %v1924_v54 = vmul.f32 %v1902_v53, %v5140_v19 }
 0xd8d   :  { %v1931_v11 = vmul.f32 %v3876_v4, %v1924_v54 }
 0xd8f   :  { %v1938_v27 = vadd.f32 %v3877_v16, %v1931_v11 }
 0xd91   :  { %3646 = vmatmul.msk.f32.gmra.mxu3 %vm141_vm0, %v1938_v27  ;;  %3650 = vmatmul.msk.f32.gmra.mxu0 %vm141_vm0, %v1938_v27 }
 0xde4   :  { %v1871_v8 = vpop.xlane.xlu0 %1870 }
 0xde5   :  { %v1877_v17 = vmul.f32 %v1871_v8, %v4275_v26 }
 0xde7   :  { %v1881_v57 = vadd.f32 1e-05, %v1877_v17 }
 0xde9   :  { %3994 = vrsqrt.f32 %v1881_v57  ;;  %vm1909_vm9 = vweird.f32 %v1881_v57 }
 0xdef   :  { %v3995_v48 = vpop.eup %3994  ;;  %v1874_v50 = vpop.xlane.xlu0 %1873 }
 0xdf0   :  { %v1904_v59 = vmul.f32 %v3995_v48, %v1881_v57  ;;  %v1878_v32 = vmul.f32 %v1874_v50, %v4275_v26  ;;  %vm1910_vm8 = vweird.f32 %v3995_v48 }
 0xdf1   :  { %vm1911_vm10 = vmor %vm1909_vm9, %vm1910_vm8 }
 0xdf2   :  { %v1905_v51 = vmul.f32 %v3995_v48, %v1904_v59  ;;  %v1882_v43 = vadd.f32 1e-05, %v1878_v32 }
 0xdf4   :  { %v1906_v52 = vmul.f32 0.5, %v1905_v51  ;;  %3996 = vrsqrt.f32 %v1882_v43  ;;  %vm1919_vm12 = vweird.f32 %v1882_v43 }
 0xdf6   :  { %v1907_v19 = vsub.f32 1.5, %v1906_v52 }
 0xdf8   :  { %v1908_v56 = vmul.f32 %v3995_v48, %v1907_v19 }
 0xdfa   :  { %v3997_v61 = vpop.eup %3996  ;;  %v1912_v40 = vsel %vm1911_vm10, %v3995_v48, %v1908_v56 }
 0xdfb   :  { %v1914_v63 = vmul.f32 %v3997_v61, %v1882_v43  ;;  %v1925_v60 = vmul.f32 %v1912_v40, %v5197_v41  ;;  %vm1920_vm11 = vweird.f32 %v3997_v61  ;;  %v3644_v41 = vld [vmem:[%s5893_s17 + $0x2] sm:$0x3] }
 0xdfc   :  { %vm1921_vm13 = vmor %vm1919_vm12, %vm1920_vm11  ;;  %v1961_v18 = vperm.slane %v3644_v41, 0  ;;  %v1962_v42 = vperm.slane %v3644_v41, 1 }
 0xdfd   :  { %v1915_v39 = vmul.f32 %v3997_v61, %v1914_v63  ;;  %v1932_v62 = vmul.f32 %v3876_v4, %v1925_v60 }
 0xdff   :  { %v1916_v1 = vmul.f32 0.5, %v1915_v39  ;;  %v1939_v2 = vadd.f32 %v3877_v16, %v1932_v62 }
 0xe01   :  { %v1917_v7 = vsub.f32 1.5, %v1916_v1  ;;  %3647 = vmatmul.msk.f32.gmra.mxu3 %vm141_vm0, %v1939_v2  ;;  %3651 = vmatmul.msk.f32.gmra.mxu0 %vm141_vm0, %v1939_v2 }
 0xe03   :  { %v1918_v9 = vmul.f32 %v3997_v61, %v1917_v7 }
 0xe05   :  { %v1922_v25 = vsel %vm1921_vm13, %v3997_v61, %v1918_v9 }
 0xe06   :  { %v2023_v13 = vpop.f32.mrf.mxu0  ;;  %v1926_v46 = vmul.f32 %v1922_v25, %v5206_v24 }
 0xe07   :  { %v5234_v12 = vadd.f32 %v2023_v13, %v1962_v42 }
 0xe08   :  { %v1933_v6 = vmul.f32 %v3876_v4, %v1926_v46 }
 0xe0a   :  { %v1940_v33 = vadd.f32 %v3877_v16, %v1933_v6 }
 0xe0c   :  { %v1994_v45 = vpop.f32.mrf.mxu3  ;;  %3648 = vmatmul.msk.f32.gmra.mxu3 %vm141_vm0, %v1940_v33  ;;  %3652 = vmatmul.msk.f32.gmra.mxu0 %vm141_vm0, %v1940_v33 }
 0xe0d   :  { %v1995_v44 = vadd.f32 %v1994_v45, %v1961_v18 }
 0xe0e   :  { %v2026_v47 = vpop.f32.mrf.mxu0 }
 0xe0f   :  { %v5236_v14 = vadd.f32 %v2026_v47, %v1962_v42  ;;  %2048 = vrot.lane.b32.xlu1 %v1995_v44, %s5898_s28 }
 0xe11   :  { %v3824_v24 = vpack.i.bf16 %v5234_v12, %v5236_v14  ;;  %2127 = vmatpush.msra.mxu3 %v5236_v14 }
 0xe13   :  { %2128 = vmatpush.msra.mxu3 %v5234_v12 }
 0xe14   :  { %v1997_v4 = vpop.f32.mrf.mxu3 }
 0xe15   :  { %v1998_v16 = vadd.f32 %v1997_v4, %v1961_v18 }
 0xe17   :  { %2050 = vrot.lane.b32.xlu2 %v1998_v16, %s5898_s28  ;;  %2142 = vrot.lane.b32.xlu1 %v1995_v44, %s5901_s4 }
 0xe1f   :  { %2144 = vrot.lane.b32.xlu2 %v1998_v16, %s5901_s4 }
 0xe27   :  { %2140 = vrot.lane.b32.xlu2 %v1998_v16, %s5897_s2 }
 0xe71   :  { %v2051_v58 = vpop.permute.xlu2 %2050 }
 0xe72   :  { %3662 = vmatpush.xpose.msk.msrb.mxu1 %vm502_vm14, %v2051_v58 }
 0xe79   :  { %v2145_v35 = vpop.permute.xlu2 %2144 }
 0xe7e   :  { %v2029_v34 = vpop.f32.mrf.mxu0 }
 0xe7f   :  { %v5255_v27 = vadd.f32 %v2029_v34, %v1962_v42 }
 0xe81   :  { %v2049_v29 = vpop.permute.xlu1 %2048  ;;  %v2141_v50 = vpop.permute.xlu2 %2140 }
 0xe82   :  { %3663 = vmatpush.xpose.msk.msrb.mxu1 %vm502_vm14, %v2049_v29 }
 0xe84   :  { %v2000_v49 = vpop.f32.mrf.mxu3 }
 0xe85   :  { %v5250_v53 = vadd.f32 %v2000_v49, %v1961_v18  ;;  %3664 = vmatmul.msk.f32.vlgmr.msrb.gmra.mxu1 %vm502_vm14, %v1995_v44 }
 0xe86   :  { %3668 = vmatpush.xpose.msk.msra.mxu1 %vm502_vm14, %v2145_v35 }
 0xe87   :  { %2344 = vrot.lane.b32.xlu2 %v5250_v53, %s5901_s4 }
 0xe89   :  { %v2032_v54 = vpop.f32.mrf.mxu0  ;;  %v2143_v11 = vpop.permute.xlu1 %2142 }
 0xe8a   :  { %v5257_v8 = vadd.f32 %v2032_v54, %v1962_v42  ;;  %3669 = vmatpush.xpose.msk.msra.mxu1 %vm502_vm14, %v2143_v11 }
 0xe8c   :  { %v3829_v17 = vpack.i.bf16 %v5255_v27, %v5257_v8  ;;  %2329 = vmatpush.msra.mxu0 %v5257_v8 }
 0xe8d   :  { %3665 = vmatmul.msk.f32.gmra.mxu1 %vm502_vm14, %v1998_v16 }
 0xe8e   :  { %2330 = vmatpush.msra.mxu0 %v5255_v27 }
 0xe8f   :  { %v2003_v57 = vpop.f32.mrf.mxu3 }
 0xe90   :  { %v2004_v48 = vadd.f32 %v2003_v57, %v1961_v18 }
 0xe92   :  { %2342 = vrot.lane.b32.xlu2 %v2004_v48, %s5897_s2  ;;  %2346 = vrot.lane.b32.xlu1 %v2004_v48, %s5901_s4 }
 0xe9a   :  { %2252 = vrot.lane.b32.xlu2 %v2004_v48, %s5898_s28  ;;  %2340 = vrot.lane.b32.xlu1 %v5250_v53, %s5897_s2 }
 0xea2   :  { %2250 = vrot.lane.b32.xlu2 %v5250_v53, %s5898_s28 }
 0xee1   :  { %v2345_v59 = vpop.permute.xlu2 %2344 }
 0xeec   :  { %v2343_v32 = vpop.permute.xlu2 %2342 }
 0xef4   :  { %v2253_v51 = vpop.permute.xlu2 %2252 }
 0xef5   :  { %3674 = vmatpush.xpose.msk.msrb.mxu3 %vm502_vm14, %v2253_v51 }
 0xefc   :  { %v2251_v43 = vpop.permute.xlu2 %2250 }
 0xefd   :  { %3675 = vmatpush.xpose.msk.msrb.mxu3 %vm502_vm14, %v2251_v43 }
 0xf02   :  { %v2077_v52 = vpop.f32.mrf.mxu1 }
 0xf03   :  { %v2083_v19 = vmul.f32 0.17677669, %v2077_v52 }
 0xf04   :  { %v2347_v56 = vpop.permute.xlu1 %2346 }
 0xf05   :  { %3680 = vmatpush.xpose.msk.msrb.mxu1 %vm502_vm14, %v2347_v56  ;;  %v2085_v61 = vsel %vm536_vm15, %v2083_v19, -inf }
 0xf06   :  { %2086 = vmax.xlane.f32.xlu0 %v2085_v61 }
 0xf09   :  { %3681 = vmatpush.xpose.msk.msrb.mxu1 %vm502_vm14, %v2345_v59 }
 0xf0a   :  { %v2080_v40 = vpop.f32.mrf.mxu1 }
 0xf0b   :  { %v2084_v63 = vmul.f32 0.17677669, %v2080_v40 }
 0xf0c   :  { %v2341_v18 = vpop.permute.xlu1 %2340 }
 0xf0d   :  { %v2088_v60 = vsel %vm536_vm15, %v2084_v63, -inf }
 0xf0e   :  { %2089 = vmax.xlane.f32.xlu0 %v2088_v60 }
 0xf22   :  { %2138 = vrot.lane.b32.xlu0 %v1995_v44, %s5897_s2 }
 0xf79   :  { %v2087_v39 = vpop.xlane.xlu0 %2086 }
 0xf7a   :  { %v2091_v62 = vsub.f32 %v2083_v19, %v2087_v39 }
 0xf7c   :  { %v2093_v1 = vmul.f32 1.442695, %v2091_v62 }
 0xf7e   :  { %3998 = vpow2.f32 %v2093_v1 }
 0xf81   :  { %v2090_v2 = vpop.xlane.xlu0 %2089 }
 0xf82   :  { %v2092_v7 = vsub.f32 %v2084_v63, %v2090_v2 }
 0xf84   :  { %v3999_v9 = vpop.eup %3998  ;;  %v2095_v25 = vmul.f32 1.442695, %v2092_v7 }
 0xf85   :  { %v2097_v13 = vsel %vm536_vm15, %v3999_v9, 0.0 }
 0xf86   :  { %4000 = vpow2.f32 %v2095_v25  ;;  %2098 = vadd.xlane.f32.xlu0 %v2097_v13 }
 0xf8c   :  { %v4001_v46 = vpop.eup %4000 }
 0xf8d   :  { %v2100_v41 = vsel %vm536_vm15, %v4001_v46, 0.0 }
 0xf8e   :  { %2101 = vadd.xlane.f32.xlu1 %v2100_v41 }
 0xf94   :  { %v2139_v6 = vpop.permute.xlu0 %2138 }
 0xf95   :  { %3670 = vmatmul.msk.f32.vlgmr.msra.gmra.mxu1 %vm502_vm14, %v2139_v6 }
 0xf9d   :  { %3671 = vmatmul.msk.f32.gmra.mxu1 %vm502_vm14, %v2141_v50 }
 0xfa5   :  { %3682 = vmatmul.msk.f32.vlgmr.msrb.gmra.mxu1 %vm502_vm14, %v2341_v18 }
 0xfad   :  { %3683 = vmatmul.msk.f32.gmra.mxu1 %vm502_vm14, %v2343_v32 }
 0xff9   :  { %v2099_v33 = vpop.xlane.xlu0 %2098 }
 0xffa   :  { %4002 = vrcp.f32 %v2099_v33 }
0x1000   :  { %v4003_v42 = vpop.eup %4002 }
0x1001   :  { %v2105_v45 = vmul.f32 %v4003_v42, %v3999_v9  ;;  %v2102_v44 = vpop.xlane.xlu1 %2101 }
0x1002   :  { %4004 = vrcp.f32 %v2102_v44 }
0x1003   :  { %3666 = vmatmul.msk.f32.vlgmr.msra.gmra.mxu3 %vm536_vm15, %v2105_v45 }
0x1008   :  { %v4005_v47 = vpop.eup %4004 }
0x1009   :  { %v2106_v4 = vmul.f32 %v4005_v47, %v4001_v46 }
0x100b   :  { %3667 = vmatmul.msk.f32.gmra.mxu3 %vm536_vm15, %v2106_v4 }
0x1012   :  { %v2171_v16 = vpop.f32.mrf.mxu1 }
0x1013   :  { %v2177_v58 = vmul.f32 0.17677669, %v2171_v16  ;;  %3676 = vmatmul.msk.f32.vlgmr.msrb.gmra.mxu3 %vm502_vm14, %v5250_v53 }
0x1015   :  { %v2179_v34 = vsel %vm536_vm15, %v2177_v58, -inf }
0x1016   :  { %2180 = vmax.xlane.f32.xlu2 %v2179_v34 }
0x101a   :  { %v2174_v29 = vpop.f32.mrf.mxu1 }
0x101b   :  { %v2178_v35 = vmul.f32 0.17677669, %v2174_v29  ;;  %3677 = vmatmul.msk.f32.gmra.mxu3 %vm502_vm14, %v2004_v48 }
0x101d   :  { %v2182_v49 = vsel %vm536_vm15, %v2178_v35, -inf }
0x101e   :  { %2183 = vmax.xlane.f32.xlu0 %v2182_v49 }
0x1022   :  { %v2373_v54 = vpop.f32.mrf.mxu1 }
0x1023   :  { %v2379_v11 = vmul.f32 0.17677669, %v2373_v54 }
0x1025   :  { %v2381_v57 = vsel %vm536_vm15, %v2379_v11, -inf }
0x1026   :  { %2382 = vmax.xlane.f32.xlu1 %v2381_v57 }
0x102a   :  { %v2376_v50 = vpop.f32.mrf.mxu1 }
0x102b   :  { %v2380_v59 = vmul.f32 0.17677669, %v2376_v50 }
0x102d   :  { %v2384_v32 = vsel %vm536_vm15, %v2380_v59, -inf }
0x102e   :  { %2385 = vmax.xlane.f32.xlu0 %v2384_v32 }
0x1042   :  { %3825 = vrot.lane.b32.xlu0 %v3824_v24, %s5897_s2 }
0x1086   :  { %v2130_v53 = vpop.f32.mrf.mxu3 }
0x1087   :  { %2136 = vst.msk [vmem:[#allocation2] sm:$0xff] %vm502_vm14, %v2130_v53 }
0x1089   :  { %v2181_v48 = vpop.xlane.xlu2 %2180 }
0x108a   :  { %v2185_v51 = vsub.f32 %v2177_v58, %v2181_v48 }
0x108c   :  { %v2187_v43 = vmul.f32 1.442695, %v2185_v51 }
0x108e   :  { %4006 = vpow2.f32 %v2187_v43  ;;  %v2133_v52 = vpop.f32.mrf.mxu3 }
0x108f   :  { %2137 = vst.msk [vmem:[#allocation2 + $0x8] sm:$0xff] %vm502_vm14, %v2133_v52 }
0x1091   :  { %v2184_v19 = vpop.xlane.xlu0 %2183 }
0x1092   :  { %v2186_v56 = vsub.f32 %v2178_v35, %v2184_v19 }
0x1094   :  { %v4007_v61 = vpop.eup %4006  ;;  %v2189_v40 = vmul.f32 1.442695, %v2186_v56 }
0x1095   :  { %v2191_v63 = vsel %vm536_vm15, %v4007_v61, 0.0 }
0x1096   :  { %4008 = vpow2.f32 %v2189_v40  ;;  %2192 = vadd.xlane.f32.xlu1 %v2191_v63  ;;  %v2279_v12 = vpop.f32.mrf.mxu3 }
0x1097   :  { %v2285_v14 = vmul.f32 0.17677669, %v2279_v12 }
0x1099   :  { %v2383_v24 = vpop.xlane.xlu1 %2382  ;;  %v2287_v60 = vsel %vm536_vm15, %v2285_v14, -inf }
0x109a   :  { %v2387_v39 = vsub.f32 %v2379_v11, %v2383_v24  ;;  %2288 = vmax.xlane.f32.xlu2 %v2287_v60 }
0x109c   :  { %v4009_v62 = vpop.eup %4008  ;;  %v2389_v1 = vmul.f32 1.442695, %v2387_v39 }
0x109d   :  { %v2194_v2 = vsel %vm536_vm15, %v4009_v62, 0.0 }
0x109e   :  { %4010 = vpow2.f32 %v2389_v1  ;;  %2195 = vadd.xlane.f32.xlu1 %v2194_v2  ;;  %v2282_v7 = vpop.f32.mrf.mxu3  ;;  %v3660_v2 = vld [vmem:[%s5900_s3 + $0x78] sm:$0xff] }
0x109f   :  { %v2286_v9 = vmul.f32 0.17677669, %v2282_v7  ;;  %v3659_v7 = vld [vmem:[%s5900_s3 + $0x70] sm:$0xff]  ;;  %2477 = vmatpush.msra.mxu3 %v3660_v2 }
0x10a1   :  { %v2386_v25 = vpop.xlane.xlu0 %2385  ;;  %v2290_v6 = vsel %vm536_vm15, %v2286_v9, -inf  ;;  %2478 = vmatpush.msra.mxu3 %v3659_v7 }
0x10a2   :  { %v2388_v13 = vsub.f32 %v2380_v59, %v2386_v25  ;;  %v3657_v25 = vld [vmem:[%s5900_s3 + $0x60] sm:$0xff] }
0x10a4   :  { %v4011_v46 = vpop.eup %4010  ;;  %v2391_v41 = vmul.f32 1.442695, %v2388_v13 }
0x10a5   :  { %v2393_v18 = vsel %vm536_vm15, %v4011_v46, 0.0 }
0x10a6   :  { %4012 = vpow2.f32 %v2391_v41  ;;  %2291 = vmax.xlane.f32.xlu1 %v2290_v6  ;;  %2394 = vadd.xlane.f32.xlu2 %v2393_v18  ;;  %v3656_v41 = vld [vmem:[%s5900_s3 + $0x58] sm:$0xff]  ;;  %v3655_v6 = vld [vmem:[%s5900_s3 + $0x50] sm:$0xff]  ;;  %v3654_v18 = vld [vmem:[%s5900_s3 + $0x48] sm:$0xff] }
0x10ac   :  { %v4013_v33 = vpop.eup %4012 }
0x10ad   :  { %v2396_v42 = vsel %vm536_vm15, %v4013_v33, 0.0 }
0x10ae   :  { %2397 = vadd.xlane.f32.xlu2 %v2396_v42 }
0x10b4   :  { %v3826_v45 = vpop.permute.xlu0 %3825 }
0x10b5   :  { %v3827_v44 = vunpack.i.l.bf16 %v3826_v45  ;;  %v3828_v47 = vunpack.i.h.bf16 %v3826_v45 }
0x10b7   :  { %2229 = vmatpush.msrb.mxu2 %v3827_v44 }
0x10b9   :  { %2230 = vmatpush.msrb.mxu2 %v3828_v47 }
0x10bf   :  { %3830 = vrot.lane.b32.xlu1 %v3829_v17, %s5897_s2 }
0x1109   :  { %v2193_v4 = vpop.xlane.xlu1 %2192 }
0x110a   :  { %4014 = vrcp.f32 %v2193_v4 }
0x110d   :  { %v2289_v16 = vpop.xlane.xlu2 %2288 }
0x110e   :  { %v2293_v58 = vsub.f32 %v2285_v14, %v2289_v16 }
0x1110   :  { %v4015_v34 = vpop.eup %4014  ;;  %v2295_v29 = vmul.f32 1.442695, %v2293_v58 }
0x1111   :  { %v2199_v35 = vmul.f32 %v4015_v34, %v4007_v61  ;;  %v2196_v49 = vpop.xlane.xlu1 %2195 }
0x1112   :  { %4016 = vpow2.f32 %v2295_v29 }
0x1113   :  { %4018 = vrcp.f32 %v2196_v49  ;;  %3672 = vmatmul.msk.f32.vlgmr.msrb.gmra.mxu2 %vm536_vm15, %v2199_v35  ;;  %v3889_v49 = vld [vmem:[%s5836_s7 + $0x1] ss:$0 sm:$0xff]  ;;  %s5905_s7 = sld [smem:[#allocation18_spill]] }
0x1118   :  { %v4017_v54 = vpop.eup %4016 }
0x1119   :  { %v4019_v11 = vpop.eup %4018  ;;  %v2292_v57 = vpop.xlane.xlu1 %2291  ;;  %v2299_v50 = vsel %vm536_vm15, %v4017_v54, 0.0 }
0x111a   :  { %v2294_v59 = vsub.f32 %v2286_v9, %v2292_v57  ;;  %2300 = vadd.xlane.f32.xlu0 %v2299_v50  ;;  %v2200_v27 = vmul.f32 %v4019_v11, %v4009_v62  ;;  %v2395_v53 = vpop.xlane.xlu2 %2394  ;;  %v3658_v9 = vld [vmem:[%s5900_s3 + $0x68] sm:$0xff] }
0x111b   :  { %2479 = vmatpush.msra.mxu3 %v3658_v9 }
0x111c   :  { %v2297_v8 = vmul.f32 1.442695, %v2294_v59  ;;  %3673 = vmatmul.msk.f32.gmra.mxu2 %vm536_vm15, %v2200_v27 }
0x111d   :  { %2480 = vmatpush.msra.mxu3 %v3657_v25 }
0x111e   :  { %4020 = vpow2.f32 %v2297_v8 }
0x111f   :  { %4022 = vrcp.f32 %v2395_v53  ;;  %2481 = vmatpush.msra.mxu3 %v3656_v41  ;;  %v3698_v41 = vld [vmem:[%s5835_s8 + $0x70] sm:$0xff] }
0x1121   :  { %2482 = vmatpush.msra.mxu3 %v3655_v6  ;;  %v3697_v6 = vld [vmem:[%s5835_s8 + $0x68] sm:$0xff] }
0x1122   :  { %v2398_v48 = vpop.xlane.xlu2 %2397 }
0x1123   :  { %4024 = vrcp.f32 %v2398_v48  ;;  %2483 = vmatpush.msra.mxu3 %v3654_v18  ;;  %v3695_v18 = vld [vmem:[%s5835_s8 + $0x58] sm:$0xff] }
0x1124   :  { %v4021_v17 = vpop.eup %4020 }
0x1125   :  { %v2302_v32 = vsel %vm536_vm15, %v4021_v17, 0.0  ;;  %v4023_v43 = vpop.eup %4022 }
0x1126   :  { %2303 = vadd.xlane.f32.xlu2 %v2302_v32  ;;  %v2401_v56 = vmul.f32 %v4023_v43, %v4011_v46 }
0x1129   :  { %v4025_v61 = vpop.eup %4024 }
0x112a   :  { %v2402_v40 = vmul.f32 %v4025_v61, %v4013_v33  ;;  %v3653_v33 = vld [vmem:[%s5900_s3 + $0x40] sm:$0xff] }
0x112b   :  { %2484 = vmatpush.msra.mxu3 %v3653_v33  ;;  %v3693_v33 = vld [vmem:[%s5835_s8 + $0x48] sm:$0xff] }
0x1131   :  { %v3831_v51 = vpop.permute.xlu1 %3830 }
0x1132   :  { %v3832_v52 = vunpack.i.l.bf16 %v3831_v51  ;;  %v3833_v19 = vunpack.i.h.bf16 %v3831_v51 }
0x1134   :  { %2431 = vmatpush.msra.mxu2 %v3832_v52 }
0x1136   :  { %2432 = vmatpush.msra.mxu2 %v3833_v19 }
0x1137   :  { %3684 = vmatmul.msk.f32.vlgmr.msra.gmra.mxu2 %vm536_vm15, %v2401_v56 }
0x113f   :  { %3685 = vmatmul.msk.f32.gmra.mxu2 %vm536_vm15, %v2402_v40 }
0x118d   :  { %v2301_v63 = vpop.xlane.xlu0 %2300 }
0x118e   :  { %4026 = vrcp.f32 %v2301_v63 }
0x1194   :  { %v4027_v12 = vpop.eup %4026 }
0x1195   :  { %v2307_v14 = vmul.f32 %v4027_v12, %v4017_v54 }
0x1196   :  { %v2232_v24 = vpop.f32.mrf.mxu2 }
0x1197   :  { %3678 = vmatmul.msk.f32.vlgmr.msra.gmra.mxu0 %vm536_vm15, %v2307_v14  ;;  %2240 = vrot.lane.b32.xlu2 %v2232_v24, %s5901_s4 }
0x1199   :  { %v2304_v60 = vpop.xlane.xlu2 %2303 }
0x119a   :  { %4028 = vrcp.f32 %v2304_v60 }
0x119f   :  { %v2235_v39 = vpop.f32.mrf.mxu2 }
0x11a0   :  { %v4029_v62 = vpop.eup %4028  ;;  %2242 = vrot.lane.b32.xlu1 %v2235_v39, %s5901_s4 }
0x11a1   :  { %v2308_v1 = vmul.f32 %v4029_v62, %v4021_v17 }
0x11a3   :  { %3679 = vmatmul.msk.f32.gmra.mxu0 %vm536_vm15, %v2308_v1 }
0x11ba   :  { %v2434_v13 = vpop.f32.mrf.mxu2 }
0x11bb   :  { %2442 = vrot.lane.b32.xlu1 %v2434_v13, %s5901_s4 }
0x11c2   :  { %v2437_v46 = vpop.f32.mrf.mxu2 }
0x11c3   :  { %2444 = vrot.lane.b32.xlu1 %v2437_v46, %s5901_s4  ;;  %v3699_v46 = vld [vmem:[%s5835_s8 + $0x78] sm:$0xff] }
0x11c4   :  { %2642 = vmatpush.msrb.mxu0 %v3699_v46 }
0x11c6   :  { %2643 = vmatpush.msrb.mxu0 %v3698_v41 }
0x11c8   :  { %2644 = vmatpush.msrb.mxu0 %v3697_v6 }
0x11f1   :  { %v2241_v42 = vpop.permute.xlu2 %2240 }
0x11f2   :  { %2246 = vst.msk [vmem:[#allocation2] sm:$0xff] %vm698_vm1, %v2241_v42 }
0x11f9   :  { %v2450_v45 = vld [vmem:[#allocation2] sm:$0xff] }
0x11fa   :  { %3686 = vmatmul.msk.f32.vlgmr.msra.gmra.mxu3 %vm141_vm0, %v2450_v45 }
0x1212   :  { %v2243_v44 = vpop.permute.xlu1 %2242 }
0x1213   :  { %2247 = vst.msk [vmem:[#allocation2 + $0x8] sm:$0xff] %vm698_vm1, %v2243_v44 }
0x1214   :  { %v2332_v47 = vpop.f32.mrf.mxu0 }
0x1215   :  { %2338 = vst.msk [vmem:[#allocation2 + $0x10] sm:$0xff] %vm502_vm14, %v2332_v47 }
0x121a   :  { %v2451_v4 = vld [vmem:[#allocation2 + $0x8] sm:$0xff] }
0x121b   :  { %3687 = vmatmul.msk.f32.gmra.mxu3 %vm141_vm0, %v2451_v4 }
0x1220   :  { %v2335_v16 = vpop.f32.mrf.mxu0 }
0x1221   :  { %2339 = vst.msk [vmem:[#allocation2 + $0x18] sm:$0xff] %vm502_vm14, %v2335_v16 }
0x122d   :  { %v2443_v58 = vpop.permute.xlu1 %2442 }
0x122e   :  { %2448 = vst.msk [vmem:[#allocation2 + $0x10] sm:$0xff] %vm698_vm1, %v2443_v58 }
0x1235   :  { %v2445_v34 = vpop.permute.xlu1 %2444  ;;  %v2452_v29 = vld [vmem:[#allocation2 + $0x10] sm:$0xff] }
0x1236   :  { %2449 = vst.msk [vmem:[#allocation2 + $0x18] sm:$0xff] %vm698_vm1, %v2445_v34  ;;  %3688 = vmatmul.msk.f32.gmra.mxu3 %vm141_vm0, %v2452_v29 }
0x123d   :  { %v2453_v35 = vld [vmem:[#allocation2 + $0x18] sm:$0xff] }
0x123e   :  { %3689 = vmatmul.msk.f32.gmra.mxu3 %vm141_vm0, %v2453_v35  ;;  %v5461_v35 = vld [vmem:[%s5837_s22 + $0x1] ss:$0 sm:$0xff]  ;;  %s5906_s22 = sld [smem:[#allocation19_spill]] }
0x127d   :  { %v2486_v54 = vpop.f32.mrf.mxu3 }
0x127e   :  { %v2487_v11 = vadd.f32 %v3889_v49, %v2486_v54 }
0x1280   :  { %v5360_v57 = vadd.f32 %v2487_v11, %v5114_v0 }
0x1282   :  { %v2506_v50 = vsel %vm141_vm0, %v5360_v57, 0.0 }
0x1283   :  { %2507 = vadd.xlane.f32.xlu2 %v2506_v50 }
0x129e   :  { %v2489_v59 = vpop.f32.mrf.mxu3 }
0x129f   :  { %v2490_v27 = vadd.f32 %v3889_v49, %v2489_v59 }
0x12a1   :  { %v5365_v8 = vadd.f32 %v2490_v27, %v5119_v10 }
0x12a3   :  { %v2509_v17 = vsel %vm141_vm0, %v5365_v8, 0.0 }
0x12a4   :  { %2510 = vadd.xlane.f32.xlu0 %v2509_v17 }
0x12b9   :  { %v2492_v32 = vpop.f32.mrf.mxu3 }
0x12ba   :  { %v2493_v53 = vadd.f32 %v3889_v49, %v2492_v32 }
0x12bc   :  { %v5370_v48 = vadd.f32 %v2493_v53, %v5125_v15 }
0x12be   :  { %v2512_v0 = vsel %vm141_vm0, %v5370_v48, 0.0 }
0x12bf   :  { %2513 = vadd.xlane.f32.xlu1 %v2512_v0 }
0x12c1   :  { %v2495_v51 = vpop.f32.mrf.mxu3 }
0x12c2   :  { %v2496_v43 = vadd.f32 %v3889_v49, %v2495_v51 }
0x12c4   :  { %v5375_v52 = vadd.f32 %v2496_v43, %v5137_v30 }
0x12c6   :  { %v2515_v10 = vsel %vm141_vm0, %v5375_v52, 0.0 }
0x12c7   :  { %2516 = vadd.xlane.f32.xlu0 %v2515_v10 }
0x12d8   :  { %2678 = vrot.lane.b32.xlu1 %v4567_v21, %s5898_s28 }
0x12e0   :  { %2794 = vrot.lane.b32.xlu1 %v4567_v21, %s5901_s4 }
0x12f6   :  { %v2508_v15 = vpop.xlane.xlu2 %2507 }
0x12f7   :  { %v2518_v19 = vmul.f32 %v2508_v15, %v4275_v26 }
0x12f9   :  { %v5385_v56 = vsub.f32 %v5360_v57, %v2518_v19 }
0x12fb   :  { %v2526_v30 = vmul.f32 %v5385_v56, %v5385_v56 }
0x12fd   :  { %v2530_v61 = vsel %vm141_vm0, %v2526_v30, 0.0 }
0x12fe   :  { %2531 = vadd.xlane.f32.xlu0 %v2530_v61 }
0x1317   :  { %v2511_v40 = vpop.xlane.xlu0 %2510 }
0x1318   :  { %v2519_v63 = vmul.f32 %v2511_v40, %v4275_v26 }
0x131a   :  { %v5392_v12 = vsub.f32 %v5365_v8, %v2519_v63 }
0x131c   :  { %v2527_v21 = vmul.f32 %v5392_v12, %v5392_v12 }
0x131e   :  { %v2533_v14 = vsel %vm141_vm0, %v2527_v21, 0.0 }
0x131f   :  { %2534 = vadd.xlane.f32.xlu0 %v2533_v14 }
0x1332   :  { %v2514_v24 = vpop.xlane.xlu1 %2513 }
0x1333   :  { %v2520_v60 = vmul.f32 %v2514_v24, %v4275_v26 }
0x1335   :  { %v5399_v39 = vsub.f32 %v5370_v48, %v2520_v60 }
0x1337   :  { %v2528_v62 = vmul.f32 %v5399_v39, %v5399_v39 }
0x1339   :  { %v2536_v1 = vsel %vm141_vm0, %v2528_v62, 0.0 }
0x133a   :  { %v2517_v2 = vpop.xlane.xlu0 %2516  ;;  %2537 = vadd.xlane.f32.xlu0 %v2536_v1 }
0x133b   :  { %v2521_v7 = vmul.f32 %v2517_v2, %v4275_v26 }
0x133d   :  { %v5406_v9 = vsub.f32 %v5375_v52, %v2521_v7 }
0x133f   :  { %v2529_v25 = vmul.f32 %v5406_v9, %v5406_v9 }
0x1341   :  { %v2539_v13 = vsel %vm141_vm0, %v2529_v25, 0.0 }
0x1342   :  { %2540 = vadd.xlane.f32.xlu2 %v2539_v13 }
0x134a   :  { %v2679_v6 = vpop.permute.xlu1 %2678 }
0x134e   :  { %2680 = vrot.lane.b32.xlu0 %v4564_v20, %s5898_s28 }
0x1356   :  { %2674 = vrot.lane.b32.xlu0 %v4577_v23, %s5898_s28 }
0x135a   :  { %2676 = vrot.lane.b32.xlu2 %v4572_v22, %s5898_s28 }
0x135e   :  { %2796 = vrot.lane.b32.xlu0 %v4564_v20, %s5901_s4  ;;  %v3696_v20 = vld [vmem:[%s5835_s8 + $0x60] sm:$0xff] }
0x135f   :  { %2645 = vmatpush.msrb.mxu0 %v3696_v20 }
0x1361   :  { %2646 = vmatpush.msrb.mxu0 %v3695_v18 }
0x1362   :  { %2792 = vrot.lane.b32.xlu2 %v4572_v22, %s5901_s4  ;;  %v3694_v22 = vld [vmem:[%s5835_s8 + $0x50] sm:$0xff] }
0x1363   :  { %2647 = vmatpush.msrb.mxu0 %v3694_v22 }
0x1365   :  { %2648 = vmatpush.msrb.mxu0 %v3693_v33 }
0x1366   :  { %2790 = vrot.lane.b32.xlu0 %v4577_v23, %s5901_s4  ;;  %v3692_v23 = vld [vmem:[%s5835_s8 + $0x40] sm:$0xff] }
0x1367   :  { %2649 = vmatpush.msrb.mxu0 %v3692_v23 }
0x136a   :  { %3030 = vrot.lane.b32.xlu2 %v4641_v28, %s5901_s4 }
0x136e   :  { %3028 = vrot.lane.b32.xlu0 %v4649_v36, %s5901_s4 }
0x1371   :  { %v2532_v42 = vpop.xlane.xlu0 %2531 }
0x1372   :  { %v2542_v45 = vmul.f32 %v2532_v42, %v4275_v26  ;;  %3026 = vrot.lane.b32.xlu2 %v4655_v37, %s5901_s4 }
0x1374   :  { %v2546_v44 = vadd.f32 1e-05, %v2542_v45 }
0x1376   :  { %4030 = vrsqrt.f32 %v2546_v44  ;;  %3024 = vrot.lane.b32.xlu0 %v4661_v38, %s5901_s4  ;;  %vm2556_vm2 = vweird.f32 %v2546_v44 }
0x137c   :  { %v4031_v47 = vpop.eup %4030 }
0x137d   :  { %v2551_v4 = vmul.f32 %v4031_v47, %v2546_v44  ;;  %vm2557_vm15 = vweird.f32 %v4031_v47 }
0x137e   :  { %2914 = vrot.lane.b32.xlu0 %v4641_v28, %s5898_s28  ;;  %vm2558_vm3 = vmor %vm2556_vm2, %vm2557_vm15  ;;  %v5468_v28 = vld [vmem:[%s5838_s23 + $0x1] ss:$0 sm:$0xff] }
0x137f   :  { %v2552_v16 = vmul.f32 %v4031_v47, %v2551_v4 }
0x1381   :  { %v2553_v58 = vmul.f32 0.5, %v2552_v16 }
0x1383   :  { %v2554_v34 = vsub.f32 1.5, %v2553_v58 }
0x1385   :  { %v2555_v29 = vmul.f32 %v4031_v47, %v2554_v34  ;;  %v2795_v34 = vpop.permute.xlu1 %2794 }
0x1386   :  { %2908 = vrot.lane.b32.xlu0 %v4661_v38, %s5898_s28 }
0x1387   :  { %v2559_v49 = vsel %vm2558_vm3, %v4031_v47, %v2555_v29 }
0x1388   :  { %v2590_v54 = vmul.f32 %v2559_v49, %v5385_v56 }
0x138a   :  { %v2597_v11 = vmul.f32 %v5461_v35, %v2590_v54 }
0x138c   :  { %v2604_v50 = vadd.f32 %v5468_v28, %v2597_v11 }
0x138e   :  { %3701 = vmatmul.msk.f32.vlgmr.msrb.gmra.mxu0 %vm141_vm0, %v2604_v50 }
0x1392   :  { %v2535_v59 = vpop.xlane.xlu0 %2534 }
0x1393   :  { %v2543_v27 = vmul.f32 %v2535_v59, %v4275_v26 }
0x1395   :  { %v2547_v17 = vadd.f32 1e-05, %v2543_v27 }
0x1397   :  { %4032 = vrsqrt.f32 %v2547_v17  ;;  %vm2566_vm5 = vweird.f32 %v2547_v17 }
0x139d   :  { %v4033_v38 = vpop.eup %4032 }
0x139e   :  { %v2561_v32 = vmul.f32 %v4033_v38, %v2547_v17  ;;  %vm2567_vm4 = vweird.f32 %v4033_v38 }
0x139f   :  { %vm2568_vm6 = vmor %vm2566_vm5, %vm2567_vm4 }
0x13a0   :  { %v2562_v53 = vmul.f32 %v4033_v38, %v2561_v32 }
0x13a2   :  { %v2563_v0 = vmul.f32 0.5, %v2562_v53 }
0x13a4   :  { %v2564_v51 = vsub.f32 1.5, %v2563_v0 }
0x13a6   :  { %v2565_v43 = vmul.f32 %v4033_v38, %v2564_v51 }
0x13a8   :  { %v2569_v10 = vsel %vm2568_vm6, %v4033_v38, %v2565_v43 }
0x13a9   :  { %v2591_v15 = vmul.f32 %v2569_v10, %v5392_v12 }
0x13ab   :  { %v2598_v19 = vmul.f32 %v5461_v35, %v2591_v15 }
0x13ad   :  { %v2538_v56 = vpop.xlane.xlu0 %2537  ;;  %v2605_v30 = vadd.f32 %v5468_v28, %v2598_v19 }
0x13ae   :  { %v2544_v61 = vmul.f32 %v2538_v56, %v4275_v26 }
0x13af   :  { %3702 = vmatmul.msk.f32.gmra.mxu0 %vm141_vm0, %v2605_v30 }
0x13b0   :  { %v2548_v40 = vadd.f32 1e-05, %v2544_v61 }
0x13b2   :  { %4034 = vrsqrt.f32 %v2548_v40  ;;  %vm2576_vm8 = vweird.f32 %v2548_v40 }
0x13b5   :  { %v2541_v63 = vpop.xlane.xlu2 %2540 }
0x13b6   :  { %v2545_v21 = vmul.f32 %v2541_v63, %v4275_v26 }
0x13b8   :  { %v4035_v14 = vpop.eup %4034  ;;  %v2549_v24 = vadd.f32 1e-05, %v2545_v21 }
0x13b9   :  { %v2571_v60 = vmul.f32 %v4035_v14, %v2548_v40  ;;  %vm2577_vm7 = vweird.f32 %v4035_v14 }
0x13ba   :  { %4036 = vrsqrt.f32 %v2549_v24  ;;  %vm2578_vm9 = vmor %vm2576_vm8, %vm2577_vm7  ;;  %vm2586_vm11 = vweird.f32 %v2549_v24 }
0x13bb   :  { %v2572_v62 = vmul.f32 %v4035_v14, %v2571_v60 }
0x13bd   :  { %v2573_v12 = vmul.f32 0.5, %v2572_v62  ;;  %v2677_v23 = vpop.permute.xlu2 %2676 }
0x13bf   :  { %v2574_v1 = vsub.f32 1.5, %v2573_v12 }
0x13c0   :  { %v4037_v2 = vpop.eup %4036  ;;  %v2681_v7 = vpop.permute.xlu0 %2680 }
0x13c1   :  { %v2575_v25 = vmul.f32 %v4035_v14, %v2574_v1  ;;  %v2581_v13 = vmul.f32 %v4037_v2, %v2549_v24  ;;  %3714 = vmatpush.xpose.msk.msra.mxu1 %vm502_vm14, %v2681_v7  ;;  %vm2587_vm10 = vweird.f32 %v4037_v2 }
0x13c2   :  { %vm2588_vm12 = vmor %vm2586_vm11, %vm2587_vm10 }
0x13c3   :  { %v2579_v46 = vsel %vm2578_vm9, %v4035_v14, %v2575_v25  ;;  %v2582_v41 = vmul.f32 %v4037_v2, %v2581_v13 }
0x13c4   :  { %v2592_v20 = vmul.f32 %v2579_v46, %v5399_v39 }
0x13c5   :  { %v2583_v18 = vmul.f32 0.5, %v2582_v41  ;;  %3715 = vmatpush.xpose.msk.msra.mxu1 %vm502_vm14, %v2679_v6  ;;  %v2793_v29 = vpop.permute.xlu2 %2792 }
0x13c6   :  { %v2599_v22 = vmul.f32 %v5461_v35, %v2592_v20 }
0x13c7   :  { %v2584_v33 = vsub.f32 1.5, %v2583_v18 }
0x13c8   :  { %v2675_v42 = vpop.permute.xlu0 %2674  ;;  %v2606_v45 = vadd.f32 %v5468_v28, %v2599_v22 }
0x13c9   :  { %v2585_v44 = vmul.f32 %v4037_v2, %v2584_v33  ;;  %3716 = vmatpush.xpose.msk.msra.mxu1 %vm502_vm14, %v2677_v23 }
0x13ca   :  { %3703 = vmatmul.msk.f32.gmra.mxu0 %vm141_vm0, %v2606_v45 }
0x13cb   :  { %v2589_v47 = vsel %vm2588_vm12, %v4037_v2, %v2585_v44 }
0x13cc   :  { %v2593_v39 = vmul.f32 %v2589_v47, %v5406_v9 }
0x13cd   :  { %3717 = vmatpush.xpose.msk.msra.mxu1 %vm502_vm14, %v2675_v42  ;;  %v3031_v50 = vpop.permute.xlu2 %3030 }
0x13ce   :  { %v2600_v4 = vmul.f32 %v5461_v35, %v2593_v39  ;;  %v3892_v35 = vld [vmem:[%s5839_s9 + $0x1] ss:$0 sm:$0xff] }
0x13d0   :  { %v2797_v16 = vpop.permute.xlu0 %2796  ;;  %v2607_v58 = vadd.f32 %v5468_v28, %v2600_v4 }
0x13d1   :  { %3722 = vmatpush.xpose.msk.msrb.mxu1 %vm502_vm14, %v2797_v16 }
0x13d2   :  { %3704 = vmatmul.msk.f32.gmra.mxu0 %vm141_vm0, %v2607_v58 }
0x13d5   :  { %3723 = vmatpush.xpose.msk.msrb.mxu1 %vm502_vm14, %v2795_v34  ;;  %v3027_v27 = vpop.permute.xlu2 %3026 }
0x13d8   :  { %v2791_v49 = vpop.permute.xlu0 %2790 }
0x13d9   :  { %3724 = vmatpush.xpose.msk.msrb.mxu1 %vm502_vm14, %v2793_v29 }
0x13dd   :  { %3725 = vmatpush.xpose.msk.msrb.mxu1 %vm502_vm14, %v2791_v49 }
0x13e0   :  { %v3029_v9 = vpop.permute.xlu0 %3028 }
0x13e8   :  { %v3025_v54 = vpop.permute.xlu0 %3024 }
0x13f0   :  { %v2915_v11 = vpop.permute.xlu0 %2914 }
0x13f1   :  { %3730 = vmatpush.xpose.msk.msrb.mxu3 %vm502_vm14, %v2915_v11 }
0x13f8   :  { %v2909_v14 = vpop.permute.xlu0 %2908 }
0x140b   :  { %v2651_v28 = vpop.f32.mrf.mxu0 }
0x140c   :  { %v2652_v59 = vadd.f32 %v3892_v35, %v2651_v28 }
0x140e   :  { %2786 = vrot.lane.b32.xlu1 %v2652_v59, %s5897_s2  ;;  %3718 = vmatmul.msk.f32.vlgmr.msra.gmra.mxu1 %vm502_vm14, %v2652_v59 }
0x140f   :  { %3738 = vmatpush.xpose.msk.msra.mxu1 %vm502_vm14, %v3031_v50 }
0x1413   :  { %3739 = vmatpush.xpose.msk.msra.mxu1 %vm502_vm14, %v3029_v9 }
0x1417   :  { %3740 = vmatpush.xpose.msk.msra.mxu1 %vm502_vm14, %v3027_v27 }
0x141b   :  { %3741 = vmatpush.xpose.msk.msra.mxu1 %vm502_vm14, %v3025_v54 }
0x142c   :  { %v2654_v17 = vpop.f32.mrf.mxu0 }
0x142d   :  { %v2655_v38 = vadd.f32 %v3892_v35, %v2654_v17 }
0x142f   :  { %2788 = vrot.lane.b32.xlu1 %v2655_v38, %s5897_s2  ;;  %3719 = vmatmul.msk.f32.gmra.mxu1 %vm502_vm14, %v2655_v38 }
0x1447   :  { %v2657_v32 = vpop.f32.mrf.mxu0 }
0x1448   :  { %v2658_v53 = vadd.f32 %v3892_v35, %v2657_v32 }
0x144a   :  { %3020 = vrot.lane.b32.xlu1 %v2658_v53, %s5897_s2 }
0x144f   :  { %v2660_v0 = vpop.f32.mrf.mxu0 }
0x1450   :  { %v2661_v51 = vadd.f32 %v3892_v35, %v2660_v0 }
0x1452   :  { %3022 = vrot.lane.b32.xlu2 %v2661_v51, %s5897_s2  ;;  %2912 = vrot.lane.b32.xlu1 %v4649_v36, %s5898_s28 }
0x145a   :  { %2910 = vrot.lane.b32.xlu2 %v4655_v37, %s5898_s28 }
0x1480   :  { %v2787_v43 = vpop.permute.xlu1 %2786 }
0x1481   :  { %3726 = vmatmul.msk.f32.vlgmr.msrb.gmra.mxu1 %vm502_vm14, %v2787_v43 }
0x148b   :  { %v2713_v10 = vpop.f32.mrf.mxu1 }
0x148c   :  { %v2719_v15 = vmul.f32 0.17677669, %v2713_v10 }
0x148e   :  { %v2721_v19 = vsel %vm502_vm14, %v2719_v15, -inf }
0x148f   :  { %2722 = vmax.xlane.f32.xlu1 %v2721_v19 }
0x14a1   :  { %v2789_v56 = vpop.permute.xlu1 %2788 }
0x14a2   :  { %3727 = vmatmul.msk.f32.gmra.mxu1 %vm502_vm14, %v2789_v56 }
0x14a8   :  { %3835 = vrot.lane.b32.xlu1 %v4874_v3, %s5898_s28 }
0x14ac   :  { %v2716_v30 = vpop.f32.mrf.mxu1  ;;  %v3023_v40 = vpop.permute.xlu2 %3022 }
0x14ad   :  { %v2720_v61 = vmul.f32 0.17677669, %v2716_v30 }
0x14af   :  { %v2724_v36 = vsel %vm502_vm14, %v2720_v61, -inf }
0x14b0   :  { %2725 = vmax.xlane.f32.xlu2 %v2724_v36 }
0x14b4   :  { %v2911_v21 = vpop.permute.xlu2 %2910 }
0x14bc   :  { %v3021_v37 = vpop.permute.xlu1 %3020 }
0x14bd   :  { %3742 = vmatmul.msk.f32.vlgmr.msra.gmra.mxu1 %vm502_vm14, %v3021_v37 }
0x14c4   :  { %v2913_v63 = vpop.permute.xlu1 %2912 }
0x14c5   :  { %3731 = vmatpush.xpose.msk.msrb.mxu3 %vm502_vm14, %v2913_v63  ;;  %3743 = vmatmul.msk.f32.gmra.mxu1 %vm502_vm14, %v3023_v40 }
0x14c9   :  { %3732 = vmatpush.xpose.msk.msrb.mxu3 %vm502_vm14, %v2911_v21 }
0x14cd   :  { %3733 = vmatpush.xpose.msk.msrb.mxu3 %vm502_vm14, %v2909_v14 }
0x14d0   :  { %3734 = vmatmul.msk.f32.vlgmr.msrb.gmra.mxu3 %vm502_vm14, %v2658_v53 }
0x14d8   :  { %3735 = vmatmul.msk.f32.gmra.mxu3 %vm502_vm14, %v2661_v51 }
0x14fe   :  { %v2827_v24 = vpop.f32.mrf.mxu1 }
0x14ff   :  { %v2833_v60 = vmul.f32 0.17677669, %v2827_v24 }
0x1501   :  { %v2835_v62 = vsel %vm502_vm14, %v2833_v60, -inf }
0x1502   :  { %2836 = vmax.xlane.f32.xlu0 %v2835_v62  ;;  %v2723_v12 = vpop.xlane.xlu1 %2722 }
0x1503   :  { %v2727_v1 = vsub.f32 %v2719_v15, %v2723_v12 }
0x1505   :  { %v2729_v25 = vmul.f32 1.442695, %v2727_v1 }
0x1507   :  { %4038 = vpow2.f32 %v2729_v25 }
0x150d   :  { %v4039_v33 = vpop.eup %4038 }
0x150e   :  { %v2733_v23 = vsel %vm502_vm14, %v4039_v33, 0.0 }
0x1516   :  { %3840 = vrot.lane.b32.xlu0 %v4885_v31, %s5898_s28 }
0x151a   :  { %v3836_v2 = vpop.permute.xlu1 %3835 }
0x151b   :  { %v3837_v7 = vunpack.i.l.bf16 %v3836_v2  ;;  %v3838_v13 = vunpack.i.h.bf16 %v3836_v2 }
0x151d   :  { %2773 = vmatpush.msrb.mxu2 %v3837_v7 }
0x151f   :  { %v2830_v46 = vpop.f32.mrf.mxu1  ;;  %2774 = vmatpush.msrb.mxu2 %v3838_v13 }
0x1520   :  { %v2834_v41 = vmul.f32 0.17677669, %v2830_v46 }
0x1522   :  { %v2838_v6 = vsel %vm502_vm14, %v2834_v41, -inf }
0x1523   :  { %v2726_v20 = vpop.xlane.xlu2 %2725  ;;  %2839 = vmax.xlane.f32.xlu2 %v2838_v6 }
0x1524   :  { %v2728_v18 = vsub.f32 %v2720_v61, %v2726_v20 }
0x1526   :  { %v2731_v22 = vmul.f32 1.442695, %v2728_v18 }
0x1528   :  { %4040 = vpow2.f32 %v2731_v22 }
0x152b   :  { %2734 = vadd.xlane.f32.xlu2 %v2733_v23 }
0x152e   :  { %v4041_v42 = vpop.eup %4040 }
0x152f   :  { %v2736_v45 = vsel %vm502_vm14, %v4041_v42, 0.0 }
0x1533   :  { %2737 = vadd.xlane.f32.xlu2 %v2736_v45 }
0x153a   :  { %v3061_v44 = vpop.f32.mrf.mxu1 }
0x153b   :  { %v3067_v47 = vmul.f32 0.17677669, %v3061_v44 }
0x153d   :  { %v3069_v39 = vsel %vm502_vm14, %v3067_v47, -inf }
0x153e   :  { %3070 = vmax.xlane.f32.xlu1 %v3069_v39 }
0x1542   :  { %v3064_v4 = vpop.f32.mrf.mxu1 }
0x1543   :  { %v3068_v16 = vmul.f32 0.17677669, %v3064_v4 }
0x1545   :  { %v3072_v58 = vsel %vm502_vm14, %v3068_v16, -inf }
0x1546   :  { %3073 = vmax.xlane.f32.xlu0 %v3072_v58 }
0x1553   :  { %v2947_v9 = vpop.f32.mrf.mxu3 }
0x1554   :  { %v2953_v54 = vmul.f32 0.17677669, %v2947_v9 }
0x1556   :  { %v2955_v35 = vsel %vm502_vm14, %v2953_v54, -inf }
0x1557   :  { %3850 = vrot.lane.b32.xlu1 %v4885_v31, %s5901_s4 }
0x155b   :  { %v2950_v37 = vpop.f32.mrf.mxu3 }
0x155c   :  { %v2954_v14 = vmul.f32 0.17677669, %v2950_v37  ;;  %v3709_v37 = vld [vmem:[%s5840_s14 + $0x60] sm:$0xff] }
0x155e   :  { %v2958_v24 = vsel %vm502_vm14, %v2954_v14, -inf }
0x1575   :  { %v2837_v34 = vpop.xlane.xlu0 %2836 }
0x1576   :  { %v2841_v29 = vsub.f32 %v2833_v60, %v2837_v34 }
0x1578   :  { %v2843_v49 = vmul.f32 1.442695, %v2841_v29 }
0x157a   :  { %4042 = vpow2.f32 %v2843_v49 }
0x1580   :  { %v5538_v11 = vpop.eup %4042 }
0x1581   :  { %2956 = vmax.xlane.f32.xlu1 %v2955_v35  ;;  %v2847_v28 = vsel %vm502_vm14, %v5538_v11, 0.0 }
0x1582   :  { %2848 = vadd.xlane.f32.xlu2 %v2847_v28 }
0x1588   :  { %v3841_v50 = vpop.permute.xlu0 %3840 }
0x1589   :  { %v3842_v59 = vunpack.i.l.bf16 %v3841_v50  ;;  %v3843_v27 = vunpack.i.h.bf16 %v3841_v50 }
0x158b   :  { %2775 = vmatpush.msrb.mxu2 %v3842_v59 }
0x158d   :  { %2776 = vmatpush.msrb.mxu2 %v3843_v27 }
0x1596   :  { %v2840_v31 = vpop.xlane.xlu2 %2839 }
0x1597   :  { %v2842_v17 = vsub.f32 %v2834_v41, %v2840_v31 }
0x1599   :  { %v2845_v38 = vmul.f32 1.442695, %v2842_v17 }
0x159a   :  { %3855 = vrot.lane.b32.xlu1 %v4897_v55, %s5901_s4  ;;  %3845 = vrot.lane.b32.xlu2 %v4874_v3, %s5901_s4 }
0x159b   :  { %4044 = vpow2.f32 %v2845_v38 }
0x159e   :  { %v2735_v32 = vpop.xlane.xlu2 %2734 }
0x159f   :  { %4046 = vrcp.f32 %v2735_v32 }
0x15a1   :  { %v4045_v53 = vpop.eup %4044 }
0x15a2   :  { %v2850_v0 = vsel %vm502_vm14, %v4045_v53, 0.0  ;;  %3870 = vrot.lane.b32.xlu1 %v4746_v5, %s5898_s28 }
0x15a3   :  { %2851 = vadd.xlane.f32.xlu0 %v2850_v0 }
0x15a5   :  { %v4047_v51 = vpop.eup %4046 }
0x15a6   :  { %v2741_v43 = vmul.f32 %v4047_v51, %v4039_v33  ;;  %v2738_v10 = vpop.xlane.xlu2 %2737 }
0x15a7   :  { %4048 = vrcp.f32 %v2738_v10 }
0x15a8   :  { %3720 = vmatmul.msk.f32.vlgmr.msrb.gmra.mxu2 %vm502_vm14, %v2741_v43 }
0x15ad   :  { %v4049_v15 = vpop.eup %4048 }
0x15ae   :  { %v2742_v19 = vmul.f32 %v4049_v15, %v4041_v42 }
0x15b0   :  { %3721 = vmatmul.msk.f32.gmra.mxu2 %vm502_vm14, %v2742_v19 }
0x15b1   :  { %v3071_v3 = vpop.xlane.xlu1 %3070 }
0x15b2   :  { %v3075_v56 = vsub.f32 %v3067_v47, %v3071_v3 }
0x15b4   :  { %v3077_v30 = vmul.f32 1.442695, %v3075_v56 }
0x15b6   :  { %4050 = vpow2.f32 %v3077_v30  ;;  %v3712_v30 = vld [vmem:[%s5840_s14 + $0x78] sm:$0xff] }
0x15b7   :  { %3169 = vmatpush.msra.mxu3 %v3712_v30  ;;  %v3755_v30 = vld [vmem:[%s5844_s16 + $0x58] sm:$0xff] }
0x15b9   :  { %v3074_v61 = vpop.xlane.xlu0 %3073 }
0x15ba   :  { %v3076_v36 = vsub.f32 %v3068_v16, %v3074_v61  ;;  %v3711_v61 = vld [vmem:[%s5840_s14 + $0x70] sm:$0xff] }
0x15bb   :  { %3170 = vmatpush.msra.mxu3 %v3711_v61  ;;  %v3754_v61 = vld [vmem:[%s5844_s16 + $0x50] sm:$0xff] }
0x15bc   :  { %v5552_v40 = vpop.eup %4050  ;;  %v3079_v63 = vmul.f32 1.442695, %v3076_v36  ;;  %v3710_v36 = vld [vmem:[%s5840_s14 + $0x68] sm:$0xff] }
0x15bd   :  { %v3081_v21 = vsel %vm502_vm14, %v5552_v40, 0.0  ;;  %3171 = vmatpush.msra.mxu3 %v3710_v36  ;;  %v3753_v36 = vld [vmem:[%s5844_s16 + $0x48] sm:$0xff] }
0x15be   :  { %3082 = vadd.xlane.f32.xlu0 %v3081_v21  ;;  %4052 = vpow2.f32 %v3079_v63  ;;  %v3708_v21 = vld [vmem:[%s5840_s14 + $0x58] sm:$0xff] }
0x15bf   :  { %3172 = vmatpush.msra.mxu3 %v3709_v37  ;;  %v3752_v37 = vld [vmem:[%s5844_s16 + $0x40] sm:$0xff] }
0x15c1   :  { %3173 = vmatpush.msra.mxu3 %v3708_v21 }
0x15c3   :  { %2959 = vmax.xlane.f32.xlu2 %v2958_v24  ;;  %v3706_v24 = vld [vmem:[%s5840_s14 + $0x48] sm:$0xff] }
0x15c4   :  { %v5557_v60 = vpop.eup %4052 }
0x15c5   :  { %v3084_v62 = vsel %vm502_vm14, %v5557_v60, 0.0 }
0x15c9   :  { %v3851_v12 = vpop.permute.xlu1 %3850 }
0x15ca   :  { %v3853_v22 = vunpack.i.h.bf16 %v3851_v12 }
0x15cb   :  { %3085 = vadd.xlane.f32.xlu2 %v3084_v62 }
0x15d2   :  { %3860 = vrot.lane.b32.xlu0 %v4746_v5, %s5901_s4  ;;  %v3852_v5 = vunpack.i.l.bf16 %v3851_v12 }
0x15e3   :  { %3865 = vrot.lane.b32.xlu2 %v4897_v55, %s5898_s28 }
0x15f4   :  { %v2957_v1 = vpop.xlane.xlu1 %2956 }
0x15f5   :  { %v2961_v2 = vsub.f32 %v2953_v54, %v2957_v1  ;;  %v2849_v7 = vpop.xlane.xlu2 %2848 }
0x15f7   :  { %v2963_v25 = vmul.f32 1.442695, %v2961_v2 }
0x15f9   :  { %4054 = vpow2.f32 %v2963_v25 }
0x15fa   :  { %4056 = vrcp.f32 %v2849_v7 }
0x15fd   :  { %v3846_v13 = vpop.permute.xlu2 %3845 }
0x15fe   :  { %v3847_v46 = vunpack.i.l.bf16 %v3846_v13  ;;  %v3848_v6 = vunpack.i.h.bf16 %v3846_v13 }
0x15ff   :  { %v4055_v41 = vpop.eup %4054 }
0x1600   :  { %2887 = vmatpush.msra.mxu2 %v3847_v46  ;;  %v2967_v20 = vsel %vm502_vm14, %v4055_v41, 0.0  ;;  %v4057_v18 = vpop.eup %4056 }
0x1601   :  { %2968 = vadd.xlane.f32.xlu0 %v2967_v20  ;;  %v2855_v55 = vmul.f32 %v4057_v18, %v5538_v11 }
0x1602   :  { %2888 = vmatpush.msra.mxu2 %v3848_v6 }
0x1604   :  { %2889 = vmatpush.msra.mxu2 %v3852_v5  ;;  %v3893_v5 = vld [vmem:[%s5841_s15 + $0x1] ss:$0 sm:$0xff] }
0x1606   :  { %2890 = vmatpush.msra.mxu2 %v3853_v22 }
0x1607   :  { %3728 = vmatmul.msk.f32.vlgmr.msra.gmra.mxu2 %vm502_vm14, %v2855_v55 }
0x160c   :  { %v3856_v33 = vpop.permute.xlu1 %3855 }
0x160d   :  { %v3857_v23 = vunpack.i.l.bf16 %v3856_v33  ;;  %v3858_v42 = vunpack.i.h.bf16 %v3856_v33 }
0x160f   :  { %3121 = vmatpush.msrb.mxu2 %v3857_v23 }
0x1611   :  { %3122 = vmatpush.msrb.mxu2 %v3858_v42 }
0x1614   :  { %v3871_v31 = vpop.permute.xlu1 %3870 }
0x1615   :  { %v3872_v32 = vunpack.i.l.bf16 %v3871_v31  ;;  %v3873_v0 = vunpack.i.h.bf16 %v3871_v31 }
0x1616   :  { %v2852_v45 = vpop.xlane.xlu0 %2851 }
0x1617   :  { %4058 = vrcp.f32 %v2852_v45 }
0x161d   :  { %v4059_v44 = vpop.eup %4058 }
0x161e   :  { %v2856_v47 = vmul.f32 %v4059_v44, %v4045_v53 }
0x1620   :  { %3729 = vmatmul.msk.f32.gmra.mxu2 %vm502_vm14, %v2856_v47 }
0x162b   :  { %v2778_v39 = vpop.f32.mrf.mxu2 }
0x162c   :  { %2784 = vst.msk [vmem:[#allocation2] sm:$0xff] %vm502_vm14, %v2778_v39 }
0x1631   :  { %v3083_v29 = vpop.xlane.xlu0 %3082 }
0x1633   :  { %v2781_v4 = vpop.f32.mrf.mxu2 }
0x1634   :  { %2785 = vst.msk [vmem:[#allocation2 + $0x8] sm:$0xff] %vm502_vm14, %v2781_v4 }
0x1636   :  { %v2960_v16 = vpop.xlane.xlu2 %2959 }
0x1637   :  { %v2962_v58 = vsub.f32 %v2954_v14, %v2960_v16  ;;  %v3707_v14 = vld [vmem:[%s5840_s14 + $0x50] sm:$0xff] }
0x1638   :  { %3174 = vmatpush.msra.mxu3 %v3707_v14 }
0x1639   :  { %v2965_v34 = vmul.f32 1.442695, %v2962_v58 }
0x163a   :  { %3175 = vmatpush.msra.mxu3 %v3706_v24 }
0x163b   :  { %4060 = vpow2.f32 %v2965_v34 }
0x163c   :  { %4062 = vrcp.f32 %v3083_v29 }
0x163e   :  { %v3086_v49 = vpop.xlane.xlu2 %3085 }
0x163f   :  { %4064 = vrcp.f32 %v3086_v49 }
0x1641   :  { %v4061_v9 = vpop.eup %4060 }
0x1642   :  { %v2970_v54 = vsel %vm502_vm14, %v4061_v9, 0.0  ;;  %v4063_v35 = vpop.eup %4062 }
0x1643   :  { %2971 = vadd.xlane.f32.xlu1 %v2970_v54  ;;  %v3089_v17 = vmul.f32 %v4063_v35, %v5552_v40 }
0x1644   :  { %v3861_v11 = vpop.permute.xlu0 %3860 }
0x1645   :  { %v3862_v28 = vunpack.i.l.bf16 %v3861_v11  ;;  %v3863_v59 = vunpack.i.h.bf16 %v3861_v11  ;;  %v4065_v53 = vpop.eup %4064 }
0x1646   :  { %v3866_v50 = vpop.permute.xlu2 %3865  ;;  %v3090_v51 = vmul.f32 %v4065_v53, %v5557_v60  ;;  %v3705_v60 = vld [vmem:[%s5840_s14 + $0x40] sm:$0xff] }
0x1647   :  { %v3867_v27 = vunpack.i.l.bf16 %v3866_v50  ;;  %3123 = vmatpush.msrb.mxu2 %v3862_v28  ;;  %v3868_v38 = vunpack.i.h.bf16 %v3866_v50  ;;  %3176 = vmatpush.msra.mxu3 %v3705_v60 }
0x1649   :  { %3007 = vmatpush.msra.mxu0 %v3867_v27  ;;  %3124 = vmatpush.msrb.mxu2 %v3863_v59 }
0x164a   :  { %3744 = vmatmul.msk.f32.vlgmr.msrb.gmra.mxu2 %vm502_vm14, %v3089_v17 }
0x164b   :  { %3008 = vmatpush.msra.mxu0 %v3868_v38 }
0x164d   :  { %3009 = vmatpush.msra.mxu0 %v3872_v32 }
0x164f   :  { %3010 = vmatpush.msra.mxu0 %v3873_v0 }
0x1652   :  { %3745 = vmatmul.msk.f32.gmra.mxu2 %vm502_vm14, %v3090_v51 }
0x1674   :  { %v2969_v43 = vpop.xlane.xlu0 %2968 }
0x1675   :  { %4066 = vrcp.f32 %v2969_v43 }
0x167b   :  { %v4067_v10 = vpop.eup %4066 }
0x167c   :  { %v2975_v15 = vmul.f32 %v4067_v10, %v4055_v41  ;;  %v3759_v10 = vld [vmem:[%s5844_s16 + $0x78] sm:$0xff] }
0x167d   :  { %3334 = vmatpush.msrb.mxu0 %v3759_v10  ;;  %v3775_v10 = vld [vmem:[%s5846_s18 + $0xd0] sm:$0xff] }
0x167e   :  { %3736 = vmatmul.msk.f32.vlgmr.msra.gmra.mxu0 %vm502_vm14, %v2975_v15 }
0x168a   :  { %v2892_v19 = vpop.f32.mrf.mxu2 }
0x168b   :  { %2900 = vrot.lane.b32.xlu2 %v2892_v19, %s5901_s4  ;;  %v3758_v19 = vld [vmem:[%s5844_s16 + $0x70] sm:$0xff] }
0x168c   :  { %3335 = vmatpush.msrb.mxu0 %v3758_v19  ;;  %v3773_v19 = vld [vmem:[%s5846_s18 + $0xc0] sm:$0xff] }
0x16a3   :  { %v2895_v3 = vpop.f32.mrf.mxu2 }
0x16a4   :  { %2902 = vrot.lane.b32.xlu2 %v2895_v3, %s5901_s4  ;;  %v3757_v3 = vld [vmem:[%s5844_s16 + $0x68] sm:$0xff] }
0x16a5   :  { %3336 = vmatpush.msrb.mxu0 %v3757_v3 }
0x16b6   :  { %v2972_v56 = vpop.xlane.xlu1 %2971 }
0x16b7   :  { %4068 = vrcp.f32 %v2972_v56  ;;  %v3756_v56 = vld [vmem:[%s5844_s16 + $0x60] sm:$0xff] }
0x16b8   :  { %3337 = vmatpush.msrb.mxu0 %v3756_v56  ;;  %v3772_v56 = vld [vmem:[%s5846_s18 + $0xb8] sm:$0xff] }
0x16ba   :  { %3338 = vmatpush.msrb.mxu0 %v3755_v30 }
0x16bc   :  { %3339 = vmatpush.msrb.mxu0 %v3754_v61  ;;  %v3771_v61 = vld [vmem:[%s5846_s18 + $0xb0] sm:$0xff] }
0x16bd   :  { %v4069_v40 = vpop.eup %4068 }
0x16be   :  { %v2976_v63 = vmul.f32 %v4069_v40, %v4061_v9  ;;  %3340 = vmatpush.msrb.mxu0 %v3753_v36 }
0x16c0   :  { %3737 = vmatmul.msk.f32.gmra.mxu0 %vm502_vm14, %v2976_v63 }
0x16c1   :  { %3341 = vmatpush.msrb.mxu0 %v3752_v37  ;;  %v3770_v37 = vld [vmem:[%s5846_s18 + $0xa8] sm:$0xff] }
0x16cd   :  { %v3126_v62 = vpop.f32.mrf.mxu2 }
0x16ce   :  { %3134 = vrot.lane.b32.xlu2 %v3126_v62, %s5901_s4 }
0x16d5   :  { %v3129_v12 = vpop.f32.mrf.mxu2 }
0x16d6   :  { %3136 = vrot.lane.b32.xlu0 %v3129_v12, %s5901_s4  ;;  %s5904_s4 = sld [smem:[#allocation17_spill]] }
0x16e5   :  { %v2901_v1 = vpop.permute.xlu2 %2900 }
0x16e6   :  { %2906 = vst.msk [vmem:[#allocation2] sm:$0xff] %vm698_vm1, %v2901_v1 }
0x16ed   :  { %v3142_v2 = vld [vmem:[#allocation2] sm:$0xff] }
0x16ee   :  { %3746 = vmatmul.msk.f32.vlgmr.msra.gmra.mxu3 %vm141_vm0, %v3142_v2  ;;  %v5691_v2 = vld [vmem:[%s5842_s24 + $0x1] ss:$0 sm:$0xff] }
0x16fb   :  { %v3012_v7 = vpop.f32.mrf.mxu0 }
0x16fc   :  { %3018 = vst.msk [vmem:[#allocation2 + $0x10] sm:$0xff] %vm502_vm14, %v3012_v7 }
0x16fe   :  { %v2903_v25 = vpop.permute.xlu2 %2902 }
0x16ff   :  { %2907 = vst.msk [vmem:[#allocation2 + $0x8] sm:$0xff] %vm698_vm1, %v2903_v25  ;;  %v5696_v25 = vld [vmem:[%s5843_s25 + $0x1] ss:$0 sm:$0xff] }
0x1706   :  { %v3143_v13 = vld [vmem:[#allocation2 + $0x8] sm:$0xff] }
0x1707   :  { %3747 = vmatmul.msk.f32.gmra.mxu3 %vm141_vm0, %v3143_v13 }
0x1728   :  { %v3135_v46 = vpop.permute.xlu2 %3134 }
0x1729   :  { %3140 = vst.msk [vmem:[#allocation2 + $0x10] sm:$0xff] %vm698_vm1, %v3135_v46 }
0x1730   :  { %v3144_v41 = vld [vmem:[#allocation2 + $0x10] sm:$0xff] }
0x1731   :  { %3748 = vmatmul.msk.f32.gmra.mxu3 %vm141_vm0, %v3144_v41 }
0x173d   :  { %v3015_v6 = vpop.f32.mrf.mxu0 }
0x173e   :  { %3019 = vst.msk [vmem:[#allocation2 + $0x18] sm:$0xff] %vm502_vm14, %v3015_v6 }
0x1748   :  { %v3137_v20 = vpop.permute.xlu0 %3136 }
0x1749   :  { %3141 = vst.msk [vmem:[#allocation2 + $0x18] sm:$0xff] %vm698_vm1, %v3137_v20 }
0x1750   :  { %v3145_v18 = vld [vmem:[#allocation2 + $0x18] sm:$0xff] }
0x1751   :  { %3749 = vmatmul.msk.f32.gmra.mxu3 %vm141_vm0, %v3145_v18 }
0x1771   :  { %v3178_v22 = vpop.f32.mrf.mxu3 }
0x1772   :  { %v3179_v55 = vadd.f32 %v3893_v5, %v3178_v22 }
0x1774   :  { %v5620_v33 = vadd.f32 %v3179_v55, %v5360_v57 }
0x1776   :  { %v3198_v23 = vsel %vm141_vm0, %v5620_v33, 0.0 }
0x1777   :  { %3199 = vadd.xlane.f32.xlu2 %v3198_v23 }
0x178a   :  { %v3181_v42 = vpop.f32.mrf.mxu3 }
0x178b   :  { %v3182_v45 = vadd.f32 %v3893_v5, %v3181_v42 }
0x178d   :  { %v5625_v44 = vadd.f32 %v3182_v45, %v5365_v8 }
0x178f   :  { %v3201_v47 = vsel %vm141_vm0, %v5625_v44, 0.0 }
0x1790   :  { %3202 = vadd.xlane.f32.xlu1 %v3201_v47 }
0x17b4   :  { %v3184_v39 = vpop.f32.mrf.mxu3 }
0x17b5   :  { %v3185_v4 = vadd.f32 %v3893_v5, %v3184_v39 }
0x17b7   :  { %v5630_v16 = vadd.f32 %v3185_v4, %v5370_v48 }
0x17b9   :  { %v3204_v57 = vsel %vm141_vm0, %v5630_v16, 0.0 }
0x17ba   :  { %3205 = vadd.xlane.f32.xlu0 %v3204_v57 }
0x17d4   :  { %v3187_v58 = vpop.f32.mrf.mxu3 }
0x17d5   :  { %v3188_v34 = vadd.f32 %v3893_v5, %v3187_v58 }
0x17d7   :  { %v5635_v29 = vadd.f32 %v3188_v34, %v5375_v52 }
0x17d9   :  { %v3207_v8 = vsel %vm141_vm0, %v5635_v29, 0.0 }
0x17da   :  { %3208 = vadd.xlane.f32.xlu1 %v3207_v8 }
0x17ea   :  { %v3200_v49 = vpop.xlane.xlu2 %3199 }
0x17eb   :  { %v3210_v9 = vmul.f32 %v3200_v49, %v4275_v26 }
0x17ed   :  { %v3214_v54 = vsub.f32 %v5620_v33, %v3210_v9 }
0x17ef   :  { %v3218_v48 = vmul.f32 %v3214_v54, %v3214_v54 }
0x17f1   :  { %v3222_v11 = vsel %vm141_vm0, %v3218_v48, 0.0 }
0x17f2   :  { %3223 = vadd.xlane.f32.xlu1 %v3222_v11 }
0x1803   :  { %v3203_v35 = vpop.xlane.xlu1 %3202 }
0x1804   :  { %v3211_v28 = vmul.f32 %v3203_v35, %v4275_v26 }
0x1806   :  { %v5644_v50 = vsub.f32 %v5625_v44, %v3211_v28 }
0x1808   :  { %v3219_v52 = vmul.f32 %v5644_v50, %v5644_v50 }
0x180a   :  { %v3225_v59 = vsel %vm141_vm0, %v3219_v52, 0.0 }
0x180b   :  { %3226 = vadd.xlane.f32.xlu1 %v3225_v59 }
0x182d   :  { %v3206_v27 = vpop.xlane.xlu0 %3205 }
0x182e   :  { %v3212_v31 = vmul.f32 %v3206_v27, %v4275_v26  ;;  %v3780_v27 = vld [vmem:[%s5846_s18 + $0xf8] sm:$0xff] }
0x182f   :  { %3376 = vmatpush.msrb.mxu1 %v3780_v27 }
0x1830   :  { %v5651_v17 = vsub.f32 %v5630_v16, %v3212_v31  ;;  %v3779_v31 = vld [vmem:[%s5846_s18 + $0xf0] sm:$0xff] }
0x1831   :  { %3377 = vmatpush.msrb.mxu1 %v3779_v31 }
0x1832   :  { %v3220_v38 = vmul.f32 %v5651_v17, %v5651_v17 }
0x1834   :  { %v3228_v32 = vsel %vm141_vm0, %v3220_v38, 0.0  ;;  %v3778_v38 = vld [vmem:[%s5846_s18 + $0xe8] sm:$0xff] }
0x1835   :  { %3229 = vadd.xlane.f32.xlu1 %v3228_v32  ;;  %3378 = vmatpush.msrb.mxu1 %v3778_v38 }
0x184d   :  { %v3209_v53 = vpop.xlane.xlu1 %3208 }
0x184e   :  { %v3213_v0 = vmul.f32 %v3209_v53, %v4275_v26  ;;  %v3777_v53 = vld [vmem:[%s5846_s18 + $0xe0] sm:$0xff] }
0x184f   :  { %3379 = vmatpush.msrb.mxu1 %v3777_v53 }
0x1850   :  { %v5658_v51 = vsub.f32 %v5635_v29, %v3213_v0 }
0x1852   :  { %v3221_v43 = vmul.f32 %v5658_v51, %v5658_v51 }
0x1854   :  { %v3231_v15 = vsel %vm141_vm0, %v3221_v43, 0.0  ;;  %v3776_v43 = vld [vmem:[%s5846_s18 + $0xd8] sm:$0xff] }
0x1855   :  { %3232 = vadd.xlane.f32.xlu2 %v3231_v15  ;;  %3380 = vmatpush.msrb.mxu1 %v3776_v43  ;;  %v3774_v15 = vld [vmem:[%s5846_s18 + $0xc8] sm:$0xff] }
0x1857   :  { %3381 = vmatpush.msrb.mxu1 %v3775_v10 }
0x1859   :  { %3382 = vmatpush.msrb.mxu1 %v3774_v15 }
0x185b   :  { %3383 = vmatpush.msrb.mxu1 %v3773_v19 }
0x185d   :  { %3384 = vmatpush.msrb.mxu1 %v3772_v56 }
0x185f   :  { %3385 = vmatpush.msrb.mxu1 %v3771_v61 }
0x1861   :  { %3386 = vmatpush.msrb.mxu1 %v3770_v37 }
0x1865   :  { %v3224_v40 = vpop.xlane.xlu1 %3223 }
0x1866   :  { %v3234_v63 = vmul.f32 %v3224_v40, %v4275_v26 }
0x1868   :  { %v3238_v21 = vadd.f32 1e-05, %v3234_v63  ;;  %v3769_v63 = vld [vmem:[%s5846_s18 + $0xa0] sm:$0xff] }
0x1869   :  { %3387 = vmatpush.msrb.mxu1 %v3769_v63 }
0x186a   :  { %4070 = vrsqrt.f32 %v3238_v21  ;;  %vm3248_vm1 = vweird.f32 %v3238_v21 }
0x1870   :  { %v4071_v14 = vpop.eup %4070 }
0x1871   :  { %v3243_v24 = vmul.f32 %v4071_v14, %v3238_v21  ;;  %vm3249_vm14 = vweird.f32 %v4071_v14 }
0x1872   :  { %vm3250_vm13 = vmor %vm3248_vm1, %vm3249_vm14 }
0x1873   :  { %v3244_v60 = vmul.f32 %v4071_v14, %v3243_v24 }
0x1875   :  { %v3245_v62 = vmul.f32 0.5, %v3244_v60 }
0x1877   :  { %v3246_v12 = vsub.f32 1.5, %v3245_v62 }
0x1879   :  { %v3247_v1 = vmul.f32 %v4071_v14, %v3246_v12  ;;  %v3767_v12 = vld [vmem:[%s5846_s18 + $0x90] sm:$0xff] }
0x187b   :  { %v3251_v7 = vsel %vm3250_vm13, %v4071_v14, %v3247_v1  ;;  %v3768_v14 = vld [vmem:[%s5846_s18 + $0x98] sm:$0xff] }
0x187c   :  { %v3282_v13 = vmul.f32 %v3251_v7, %v3214_v54  ;;  %3388 = vmatpush.msrb.mxu1 %v3768_v14  ;;  %v3766_v7 = vld [vmem:[%s5846_s18 + $0x88] sm:$0xff] }
0x187e   :  { %v3289_v46 = vmul.f32 %v5691_v2, %v3282_v13  ;;  %v3227_v41 = vpop.xlane.xlu1 %3226  ;;  %3389 = vmatpush.msrb.mxu1 %v3767_v12  ;;  %v3765_v13 = vld [vmem:[%s5846_s18 + $0x80] sm:$0xff] }
0x187f   :  { %v3235_v6 = vmul.f32 %v3227_v41, %v4275_v26 }
0x1880   :  { %v3296_v20 = vadd.f32 %v5696_v25, %v3289_v46  ;;  %3390 = vmatpush.msrb.mxu1 %v3766_v7 }
0x1881   :  { %v3239_v18 = vadd.f32 1e-05, %v3235_v6 }
0x1882   :  { %3761 = vmatmul.msk.f32.vlgmr.msrb.gmra.mxu0 %vm141_vm0, %v3296_v20  ;;  %3391 = vmatpush.msrb.mxu1 %v3765_v13  ;;  %v3899_v13 = vld [vmem:[%s5905_s7] ss:$0 sm:$0xff] }
0x1883   :  { %4072 = vrsqrt.f32 %v3239_v18  ;;  %vm3258_vm2 = vweird.f32 %v3239_v18 }
0x1889   :  { %v4073_v5 = vpop.eup %4072 }
0x188a   :  { %v3253_v22 = vmul.f32 %v4073_v5, %v3239_v18  ;;  %vm3259_vm15 = vweird.f32 %v4073_v5 }
0x188b   :  { %vm3260_vm3 = vmor %vm3258_vm2, %vm3259_vm15 }
0x188c   :  { %v3254_v55 = vmul.f32 %v4073_v5, %v3253_v22 }
0x188e   :  { %v3255_v23 = vmul.f32 0.5, %v3254_v55 }
0x1890   :  { %v3256_v42 = vsub.f32 1.5, %v3255_v23 }
0x1892   :  { %v3257_v45 = vmul.f32 %v4073_v5, %v3256_v42 }
0x1894   :  { %v3261_v47 = vsel %vm3260_vm3, %v4073_v5, %v3257_v45 }
0x1895   :  { %v3283_v39 = vmul.f32 %v3261_v47, %v5644_v50  ;;  %v3897_v47 = vld [vmem:[%s5847_s19 + $0x1] ss:$0 sm:$0xff] }
0x1897   :  { %v3290_v4 = vmul.f32 %v5691_v2, %v3283_v39 }
0x1899   :  { %v3297_v57 = vadd.f32 %v5696_v25, %v3290_v4 }
0x189b   :  { %3762 = vmatmul.msk.f32.gmra.mxu0 %vm141_vm0, %v3297_v57 }
0x18a8   :  { %v3230_v58 = vpop.xlane.xlu1 %3229 }
0x18a9   :  { %v3236_v34 = vmul.f32 %v3230_v58, %v4275_v26 }
0x18ab   :  { %v3240_v8 = vadd.f32 1e-05, %v3236_v34 }
0x18ad   :  { %4074 = vrsqrt.f32 %v3240_v8  ;;  %vm3268_vm5 = vweird.f32 %v3240_v8 }
0x18b3   :  { %v4075_v49 = vpop.eup %4074 }
0x18b4   :  { %v3263_v9 = vmul.f32 %v4075_v49, %v3240_v8  ;;  %vm3269_vm4 = vweird.f32 %v4075_v49 }
0x18b5   :  { %vm3270_vm6 = vmor %vm3268_vm5, %vm3269_vm4 }
0x18b6   :  { %v3264_v54 = vmul.f32 %v4075_v49, %v3263_v9 }
0x18b8   :  { %v3265_v48 = vmul.f32 0.5, %v3264_v54 }
0x18ba   :  { %v3266_v11 = vsub.f32 1.5, %v3265_v48 }
0x18bc   :  { %v3267_v35 = vmul.f32 %v4075_v49, %v3266_v11 }
0x18be   :  { %v3271_v28 = vsel %vm3270_vm6, %v4075_v49, %v3267_v35 }
0x18bf   :  { %v3284_v50 = vmul.f32 %v3271_v28, %v5651_v17 }
0x18c1   :  { %v3291_v52 = vmul.f32 %v5691_v2, %v3284_v50 }
0x18c3   :  { %v3298_v59 = vadd.f32 %v5696_v25, %v3291_v52 }
0x18c5   :  { %3763 = vmatmul.msk.f32.gmra.mxu0 %vm141_vm0, %v3298_v59 }
0x18c8   :  { %v3233_v17 = vpop.xlane.xlu2 %3232 }
0x18c9   :  { %v3237_v32 = vmul.f32 %v3233_v17, %v4275_v26 }
0x18cb   :  { %v3241_v0 = vadd.f32 1e-05, %v3237_v32 }
0x18cd   :  { %4076 = vrsqrt.f32 %v3241_v0  ;;  %vm3278_vm8 = vweird.f32 %v3241_v0 }
0x18d3   :  { %v4077_v3 = vpop.eup %4076 }
0x18d4   :  { %v3273_v30 = vmul.f32 %v4077_v3, %v3241_v0  ;;  %vm3279_vm7 = vweird.f32 %v4077_v3 }
0x18d5   :  { %vm3280_vm9 = vmor %vm3278_vm8, %vm3279_vm7 }
0x18d6   :  { %v3274_v36 = vmul.f32 %v4077_v3, %v3273_v30 }
0x18d8   :  { %v3275_v40 = vmul.f32 0.5, %v3274_v36 }
0x18da   :  { %v3276_v21 = vsub.f32 1.5, %v3275_v40 }
0x18dc   :  { %v3277_v24 = vmul.f32 %v4077_v3, %v3276_v21 }
0x18de   :  { %v3281_v60 = vsel %vm3280_vm9, %v4077_v3, %v3277_v24 }
0x18df   :  { %v3285_v62 = vmul.f32 %v3281_v60, %v5658_v51  ;;  %v3896_v51 = vld [vmem:[%s5903_s1 + $0x1] ss:$0 sm:$0xff] }
0x18e1   :  { %v3292_v1 = vmul.f32 %v5691_v2, %v3285_v62 }
0x18e3   :  { %v3299_v46 = vadd.f32 %v5696_v25, %v3292_v1  ;;  %v3898_v1 = vld [vmem:[%s5904_s4] ss:$0 sm:$0xff] }
0x18e5   :  { %3764 = vmatmul.msk.f32.gmra.mxu0 %vm141_vm0, %v3299_v46 }
0x18ff   :  { %v3343_v41 = vpop.f32.mrf.mxu0 }
0x1900   :  { %v3344_v2 = vadd.f32 %v3896_v51, %v3343_v41 }
0x1902   :  { %v3355_v6 = vmax.f32 %v3344_v2, 0.0 }
0x1904   :  { %3392 = vmatmul.f32.vlgmr.msrb.gmra.mxu1 %v3355_v6 }
0x1918   :  { %v3346_v20 = vpop.f32.mrf.mxu0 }
0x1919   :  { %v3347_v18 = vadd.f32 %v3896_v51, %v3346_v20 }
0x191b   :  { %v3356_v5 = vmax.f32 %v3347_v18, 0.0 }
0x191d   :  { %3395 = vmatmul.f32.gmra.mxu1 %v3356_v5 }
0x1942   :  { %v3349_v22 = vpop.f32.mrf.mxu0 }
0x1943   :  { %v3350_v55 = vadd.f32 %v3896_v51, %v3349_v22 }
0x1945   :  { %v3357_v23 = vmax.f32 %v3350_v55, 0.0 }
0x1947   :  { %3398 = vmatmul.f32.gmra.mxu1 %v3357_v23 }
0x1962   :  { %v3352_v25 = vpop.f32.mrf.mxu0 }
0x1963   :  { %v3353_v42 = vadd.f32 %v3896_v51, %v3352_v25 }
0x1965   :  { %v3358_v45 = vmax.f32 %v3353_v42, 0.0 }
0x1967   :  { %3401 = vmatmul.f32.gmra.mxu1 %v3358_v45 }
0x1981   :  { %v3393_v39 = vpop.f32.mrf.mxu1 }
0x1982   :  { %v3405_v4 = vadd.f32 %v3393_v39, %v5620_v33 }
0x1984   :  { %v3414_v57 = vadd.f32 %v3897_v47, %v3405_v4 }
0x1986   :  { %v3420_v58 = vsel %vm141_vm0, %v3414_v57, 0.0 }
0x1987   :  { %3421 = vadd.xlane.f32.xlu1 %v3420_v58 }
0x199a   :  { %v3396_v34 = vpop.f32.mrf.mxu1 }
0x199b   :  { %v3406_v8 = vadd.f32 %v3396_v34, %v5625_v44 }
0x199d   :  { %v3415_v49 = vadd.f32 %v3897_v47, %v3406_v8 }
0x199f   :  { %v3423_v9 = vsel %vm141_vm0, %v3415_v49, 0.0 }
0x19a0   :  { %3424 = vadd.xlane.f32.xlu2 %v3423_v9 }
0x19c4   :  { %v3399_v54 = vpop.f32.mrf.mxu1 }
0x19c5   :  { %v3407_v48 = vadd.f32 %v3399_v54, %v5630_v16 }
0x19c7   :  { %v3416_v11 = vadd.f32 %v3897_v47, %v3407_v48 }
0x19c9   :  { %v3426_v35 = vsel %vm141_vm0, %v3416_v11, 0.0 }
0x19ca   :  { %3427 = vadd.xlane.f32.xlu1 %v3426_v35 }
0x19e4   :  { %v3402_v28 = vpop.f32.mrf.mxu1 }
0x19e5   :  { %v3408_v33 = vadd.f32 %v3402_v28, %v5635_v29 }
0x19e7   :  { %v3417_v50 = vadd.f32 %v3897_v47, %v3408_v33 }
0x19e9   :  { %v3429_v52 = vsel %vm141_vm0, %v3417_v50, 0.0 }
0x19ea   :  { %3430 = vadd.xlane.f32.xlu0 %v3429_v52 }
0x19fa   :  { %v3422_v59 = vpop.xlane.xlu1 %3421 }
0x19fb   :  { %v3432_v44 = vmul.f32 %v3422_v59, %v4275_v26 }
0x19fd   :  { %v3436_v27 = vsub.f32 %v3414_v57, %v3432_v44 }
0x19ff   :  { %v3440_v31 = vmul.f32 %v3436_v27, %v3436_v27 }
0x1a01   :  { %v3444_v38 = vsel %vm141_vm0, %v3440_v31, 0.0 }
0x1a02   :  { %3445 = vadd.xlane.f32.xlu2 %v3444_v38 }
0x1a13   :  { %v3425_v16 = vpop.xlane.xlu2 %3424 }
0x1a14   :  { %v3433_v17 = vmul.f32 %v3425_v16, %v4275_v26 }
0x1a16   :  { %v3437_v32 = vsub.f32 %v3415_v49, %v3433_v17 }
0x1a18   :  { %v3441_v53 = vmul.f32 %v3437_v32, %v3437_v32 }
0x1a1a   :  { %v3447_v0 = vsel %vm141_vm0, %v3441_v53, 0.0 }
0x1a1b   :  { %3448 = vadd.xlane.f32.xlu1 %v3447_v0 }
0x1a3d   :  { %v3428_v29 = vpop.xlane.xlu1 %3427 }
0x1a3e   :  { %v3434_v43 = vmul.f32 %v3428_v29, %v4275_v26 }
0x1a40   :  { %v5783_v10 = vsub.f32 %v3416_v11, %v3434_v43 }
0x1a42   :  { %v3442_v15 = vmul.f32 %v5783_v10, %v5783_v10 }
0x1a44   :  { %v3450_v19 = vsel %vm141_vm0, %v3442_v15, 0.0 }
0x1a45   :  { %3451 = vadd.xlane.f32.xlu0 %v3450_v19 }
0x1a5d   :  { %v3431_v3 = vpop.xlane.xlu0 %3430 }
0x1a5e   :  { %v3435_v56 = vmul.f32 %v3431_v3, %v4275_v26 }
0x1a60   :  { %v5789_v30 = vsub.f32 %v3417_v50, %v3435_v56 }
0x1a62   :  { %v3443_v61 = vmul.f32 %v5789_v30, %v5789_v30 }
0x1a64   :  { %v3453_v36 = vsel %vm141_vm0, %v3443_v61, 0.0 }
0x1a65   :  { %3454 = vadd.xlane.f32.xlu2 %v3453_v36 }
0x1a75   :  { %v3446_v37 = vpop.xlane.xlu2 %3445 }
0x1a76   :  { %v3456_v40 = vmul.f32 %v3446_v37, %v4275_v26 }
0x1a78   :  { %v3460_v63 = vadd.f32 1e-05, %v3456_v40 }
0x1a7a   :  { %4078 = vrsqrt.f32 %v3460_v63  ;;  %vm3470_vm11 = vweird.f32 %v3460_v63 }
0x1a80   :  { %v4079_v21 = vpop.eup %4078 }
0x1a81   :  { %v3465_v14 = vmul.f32 %v4079_v21, %v3460_v63  ;;  %vm3471_vm10 = vweird.f32 %v4079_v21 }
0x1a82   :  { %vm3472_vm12 = vmor %vm3470_vm11, %vm3471_vm10 }
0x1a83   :  { %v3466_v24 = vmul.f32 %v4079_v21, %v3465_v14 }
0x1a85   :  { %v3467_v60 = vmul.f32 0.5, %v3466_v24 }
0x1a87   :  { %v3468_v62 = vsub.f32 1.5, %v3467_v60 }
0x1a89   :  { %v3469_v12 = vmul.f32 %v4079_v21, %v3468_v62 }
0x1a8b   :  { %v3473_v7 = vsel %vm3472_vm12, %v4079_v21, %v3469_v12 }
0x1a8c   :  { %v3504_v46 = vmul.f32 %v3473_v7, %v3436_v27 }
0x1a8e   :  { %v3511_v51 = vmul.f32 %v3898_v1, %v3504_v46  ;;  %v3449_v41 = vpop.xlane.xlu1 %3448 }
0x1a8f   :  { %v3457_v2 = vmul.f32 %v3449_v41, %v4275_v26 }
0x1a90   :  { %v3518_v6 = vadd.f32 %v3899_v13, %v3511_v51 }
0x1a91   :  { %v3461_v20 = vadd.f32 1e-05, %v3457_v2 }
0x1a92   :  { %3522 = vst.msk [vmem:[%s5906_s22] sm:$0xff] %vm141_vm0, %v3518_v6 }
0x1a93   :  { %4080 = vrsqrt.f32 %v3461_v20  ;;  %vm3480_vm1 = vweird.f32 %v3461_v20 }
0x1a99   :  { %v4081_v18 = vpop.eup %4080 }
0x1a9a   :  { %v3475_v5 = vmul.f32 %v4081_v18, %v3461_v20  ;;  %vm3481_vm14 = vweird.f32 %v4081_v18 }
0x1a9b   :  { %vm3482_vm13 = vmor %vm3480_vm1, %vm3481_vm14 }
0x1a9c   :  { %v3476_v22 = vmul.f32 %v4081_v18, %v3475_v5 }
0x1a9e   :  { %v3477_v55 = vmul.f32 0.5, %v3476_v22 }
0x1aa0   :  { %v3478_v23 = vsub.f32 1.5, %v3477_v55 }
0x1aa2   :  { %v3479_v25 = vmul.f32 %v4081_v18, %v3478_v23 }
0x1aa4   :  { %v3483_v42 = vsel %vm3482_vm13, %v4081_v18, %v3479_v25 }
0x1aa5   :  { %v3505_v45 = vmul.f32 %v3483_v42, %v3437_v32 }
0x1aa7   :  { %v3512_v47 = vmul.f32 %v3898_v1, %v3505_v45 }
0x1aa9   :  { %v3519_v39 = vadd.f32 %v3899_v13, %v3512_v47 }
0x1aab   :  { %3523 = vst.msk [vmem:[%s5906_s22 + $0x8] sm:$0xff] %vm141_vm0, %v3519_v39 }
0x1ab8   :  { %v3452_v4 = vpop.xlane.xlu0 %3451 }
0x1ab9   :  { %v3458_v57 = vmul.f32 %v3452_v4, %v4275_v26 }
0x1abb   :  { %v3462_v58 = vadd.f32 1e-05, %v3458_v57 }
0x1abd   :  { %4082 = vrsqrt.f32 %v3462_v58  ;;  %vm3490_vm2 = vweird.f32 %v3462_v58 }
0x1ac3   :  { %v4083_v34 = vpop.eup %4082 }
0x1ac4   :  { %v3485_v8 = vmul.f32 %v4083_v34, %v3462_v58  ;;  %vm3491_vm15 = vweird.f32 %v4083_v34 }
0x1ac5   :  { %vm3492_vm3 = vmor %vm3490_vm2, %vm3491_vm15 }
0x1ac6   :  { %v3486_v49 = vmul.f32 %v4083_v34, %v3485_v8 }
0x1ac8   :  { %v3487_v9 = vmul.f32 0.5, %v3486_v49 }
0x1aca   :  { %v3488_v54 = vsub.f32 1.5, %v3487_v9 }
0x1acc   :  { %v3489_v48 = vmul.f32 %v4083_v34, %v3488_v54 }
0x1ace   :  { %v3493_v11 = vsel %vm3492_vm3, %v4083_v34, %v3489_v48 }
0x1acf   :  { %v3506_v35 = vmul.f32 %v3493_v11, %v5783_v10 }
0x1ad1   :  { %v3513_v28 = vmul.f32 %v3898_v1, %v3506_v35 }
0x1ad3   :  { %v3520_v33 = vadd.f32 %v3899_v13, %v3513_v28 }
0x1ad5   :  { %3524 = vst.msk [vmem:[%s5906_s22 + $0x10] sm:$0xff] %vm141_vm0, %v3520_v33 }
0x1ad8   :  { %v3455_v50 = vpop.xlane.xlu2 %3454 }
0x1ad9   :  { %v3459_v52 = vmul.f32 %v3455_v50, %v4275_v26 }
0x1adb   :  { %v3463_v59 = vadd.f32 1e-05, %v3459_v52 }
0x1add   :  { %4084 = vrsqrt.f32 %v3463_v59  ;;  %vm3500_vm5 = vweird.f32 %v3463_v59 }
0x1ae3   :  { %v4085_v44 = vpop.eup %4084 }
0x1ae4   :  { %v3495_v27 = vmul.f32 %v4085_v44, %v3463_v59  ;;  %vm3501_vm4 = vweird.f32 %v4085_v44 }
0x1ae5   :  { %vm3502_vm6 = vmor %vm3500_vm5, %vm3501_vm4 }
0x1ae6   :  { %v3496_v31 = vmul.f32 %v4085_v44, %v3495_v27 }
0x1ae8   :  { %v3497_v38 = vmul.f32 0.5, %v3496_v31 }
0x1aea   :  { %v3498_v16 = vsub.f32 1.5, %v3497_v38 }
0x1aec   :  { %v3499_v17 = vmul.f32 %v4085_v44, %v3498_v16 }
0x1aee   :  { %v3503_v32 = vsel %vm3502_vm6, %v4085_v44, %v3499_v17 }
0x1aef   :  { %v3507_v53 = vmul.f32 %v3503_v32, %v5789_v30 }
0x1af1   :  { %v3514_v0 = vmul.f32 %v3898_v1, %v3507_v53 }
0x1af3   :  { %v3521_v29 = vadd.f32 %v3899_v13, %v3514_v0 }
0x1af5   :  { %3525 = vst.msk [vmem:[%s5906_s22 + $0x18] sm:$0xff] %vm141_vm0, %v3521_v29 }

</bundles_post_ra>
